<compile_context>
chip_gen: v6e
topology: v6e:2x2x1
jax: 0.10.0
libtpu: 0.0.40
codegen_flags: <defaults>
</compile_context>

<pallas_src>
import functools
import math

import jax
import jax.numpy as jnp
from jax.experimental import pallas as pl
from jax.experimental.pallas import tpu as pltpu


# ----------------------------- small helpers -----------------------------

def _round_up(x, m):
    return ((x + m - 1) // m) * m


def _vmem_limit_bytes():
    """Explicit scoped-VMEM budget (defaults 16/32 MiB are too small at real
    BERT scale).  ~48 MiB conservative fallback (safe on v7x's 64 MiB),
    capped at 100 MiB on 128 MiB chips (v5e/v6e)."""
    cap = 64 * 1024 * 1024
    try:
        cap = int(pltpu.get_tpu_info().vmem_capacity_bytes)
    except Exception:
        pass
    return min(100 * 1024 * 1024, (cap * 3) // 4)


def _pick_batch_block(B, S, target_rows=256, max_rows=1024):
    """Largest divisor of B with Bblk*S <= max_rows, stopping once the MXU
    M-dim target (256 on v6e/v7x) is reached."""
    best = 1
    for cand in range(1, B + 1):
        if B % cand:
            continue
        if cand * S > max_rows:
            break
        best = cand
        if cand * S >= target_rows:
            break
    return best


def _layernorm_f32(x, gamma, beta, eps=1e-5):
    mean = jnp.mean(x, axis=-1, keepdims=True)
    var = jnp.mean((x - mean) ** 2, axis=-1, keepdims=True)
    return (x - mean) * jax.lax.rsqrt(var + eps) * gamma + beta


# ----------------------------- encoder-layer kernel -----------------------------

def bert_layer_kernel(x_ref, wq_ref, wk_ref, wv_ref, bq_ref, bk_ref, bv_ref,
                      wo_ref, bo_ref, ln1g_ref, ln1b_ref,
                      w1_ref, b1_ref, w2_ref, b2_ref, ln2g_ref, ln2b_ref,
                      out_ref, *attn_refs, n_heads):
    """One transformer encoder layer for a block of Bblk batch elements.

    attn_refs is empty when attention patterns are not requested."""
    Bblk, S, D = x_ref.shape
    H = n_heads
    dh = D // H
    scale = 1.0 / math.sqrt(dh)
    M = Bblk * S

    x = x_ref[...].reshape(M, D)                              # (M, D) bf16

    # --- QKV projections (MXU bf16 operands, f32 accumulate) ---
    q = jnp.dot(x, wq_ref[...], preferred_element_type=jnp.float32)
    q = (q + bq_ref[0].astype(jnp.float32)) * scale           # scale folded into q
    k = jnp.dot(x, wk_ref[...], preferred_element_type=jnp.float32)
    k = k + bk_ref[0].astype(jnp.float32)
    v = jnp.dot(x, wv_ref[...], preferred_element_type=jnp.float32)
    v = v + bv_ref[0].astype(jnp.float32)

    # head-major relayout done once per operand per grid step; batch and head
    # axes are merged so the score/context dots have a single batch dim.
    def to_heads(t):
        t = t.astype(jnp.bfloat16).reshape(Bblk, S, H, dh)
        return t.transpose(0, 2, 1, 3).reshape(Bblk * H, S, dh)

    qh, kh, vh = to_heads(q), to_heads(k), to_heads(v)        # (N, S, dh)

    # TODO(synk): at BERT-base S on v7x, stream KV tiles (flash-style online
    # softmax) instead of materializing the full (N,S,S) f32 score tensor.
    scores = jnp.einsum('nqd,nkd->nqk', qh, kh,
                        preferred_element_type=jnp.float32)   # (N, S, S) f32
    scores = scores - jnp.max(scores, axis=-1, keepdims=True)
    p = jnp.exp(scores)
    attn = p * pl.reciprocal(jnp.sum(p, axis=-1, keepdims=True), approx=True)

    if attn_refs:                                             # optional output
        attn_refs[0][...] = attn.reshape(Bblk, H, S, S).astype(attn_refs[0].dtype)

    ctx = jnp.einsum('nqk,nkd->nqd', attn.astype(jnp.bfloat16), vh,
                     preferred_element_type=jnp.float32)      # (N, S, dh)
    ctx = (ctx.astype(jnp.bfloat16)
              .reshape(Bblk, H, S, dh).transpose(0, 2, 1, 3).reshape(M, D))

    attn_out = jnp.dot(ctx, wo_ref[...], preferred_element_type=jnp.float32)
    attn_out = attn_out + bo_ref[0].astype(jnp.float32)

    h1 = _layernorm_f32(x.astype(jnp.float32) + attn_out,
                        ln1g_ref[0].astype(jnp.float32),
                        ln1b_ref[0].astype(jnp.float32))
    h1_b = h1.astype(jnp.bfloat16)

    # TODO(synk): on v7x tile the FFN over DFF chunks with an (M,D) f32
    # accumulator to bound the VMEM working set (w1/w2 + GELU buffer).
    ff = jnp.dot(h1_b, w1_ref[...], preferred_element_type=jnp.float32)
    ff = ff + b1_ref[0].astype(jnp.float32)
    # bf16 GELU keeps the (M,DFF) elementwise work in bf16 (v6e/v7x VALU/EUP).
    # TODO(synk): PyTorch nn.GELU defaults to exact erf GELU; tanh approx here.
    ff_b = jax.nn.gelu(ff.astype(jnp.bfloat16), approximate=True)
    ff2 = jnp.dot(ff_b, w2_ref[...], preferred_element_type=jnp.float32)
    ff2 = ff2 + b2_ref[0].astype(jnp.float32)

    out = _layernorm_f32(h1 + ff2,
                         ln2g_ref[0].astype(jnp.float32),
                         ln2b_ref[0].astype(jnp.float32))
    out_ref[...] = out.reshape(Bblk, S, D).astype(out_ref.dtype)


# ----------------------------- MaskedTokenPred kernel -----------------------------

def mtp_kernel(x_ref, wm_ref, bm_ref, mtp_ref):
    """MaskedTokenPred logits for one (vocab-tile, M-tile) grid cell."""
    logits = jnp.dot(x_ref[...], wm_ref[...],
                     preferred_element_type=jnp.float32)
    logits = logits + bm_ref[0].astype(jnp.float32)           # (TM, TV) f32
    mtp_ref[...] = logits.astype(mtp_ref.dtype)


# ----------------------------- pallas_call builders -----------------------------

def _make_layer_call(B, Bblk, S, D, DFF, H, save_attn, single_buffer, vmem_limit):
    wkw = {}
    if single_buffer:
        # grid-invariant weights: one VMEM copy instead of double-buffering.
        wkw = dict(pipeline_mode=pl.Buffered(buffer_count=1))

    def wspec(shape):
        return pl.BlockSpec(shape, lambda b: (0,) * len(shape), **wkw)

    in_specs = [
        pl.BlockSpec((Bblk, S, D), lambda b: (b, 0, 0)),      # x
        wspec((D, D)), wspec((D, D)), wspec((D, D)),          # wq wk wv
        wspec((1, D)), wspec((1, D)), wspec((1, D)),          # bq bk bv
        wspec((D, D)), wspec((1, D)),                         # wo bo
        wspec((1, D)), wspec((1, D)),                         # ln1_g ln1_b
        wspec((D, DFF)), wspec((1, DFF)),                     # w1 b1
        wspec((DFF, D)), wspec((1, D)),                       # w2 b2
        wspec((1, D)), wspec((1, D)),                         # ln2_g ln2_b
    ]
    out_specs = [pl.BlockSpec((Bblk, S, D), lambda b: (b, 0, 0))]
    out_shape = [jax.ShapeDtypeStruct((B, S, D), jnp.bfloat16)]
    if save_attn:
        # TODO(synk): production path on v7x should keep save_attn=False
        # (the (B,H,S,S) writeback defeats flash-style VMEM tiling).
        out_specs.append(pl.BlockSpec((Bblk, H, S, S), lambda b: (b, 0, 0, 0)))
        out_shape.append(jax.ShapeDtypeStruct((B, H, S, S), jnp.bfloat16))

    return pl.pallas_call(
        functools.partial(bert_layer_kernel, n_heads=H),
        grid=(B // Bblk,),
        in_specs=in_specs,
        out_specs=out_specs,
        out_shape=out_shape,
        compiler_params=pltpu.CompilerParams(
            dimension_semantics=("parallel",),
            vmem_limit_bytes=vmem_limit),
    )


def _layer_args(lp):
    return (lp['wq'], lp['wk'], lp['wv'], lp['bq'], lp['bk'], lp['bv'],
            lp['wo'], lp['bo'], lp['ln1_g'], lp['ln1_b'],
            lp['w1'], lp['b1'], lp['w2'], lp['b2'], lp['ln2_g'], lp['ln2_b'])


# ----------------------------- forward pass -----------------------------

def bert_lm_forward(params, tokens, seg, save_attn_pattern=False):
    B, S = tokens.shape
    H = params['n_heads']

    # cast every floating-point parameter to bf16 at the kernel boundary
    def _cast(a):
        if isinstance(a, jax.Array) and jnp.issubdtype(a.dtype, jnp.floating):
            return a.astype(jnp.bfloat16)
        return a
    p = jax.tree.map(_cast, params)

    D = p['tok_emb'].shape[1]
    V = p['w_mtp'].shape[1]
    DFF = p['layers'][0]['w1'].shape[1]

    vmem_limit = _vmem_limit_bytes()
    Bblk = _pick_batch_block(B, S)

    # --- embeddings (glue, plain JAX gather) ---
    x = (p['tok_emb'][tokens]
         + p['seg_emb'][seg]
         + p['pos_emb'][None, :S, :]).astype(jnp.bfloat16)    # (B, S, D) bf16

    # --- encoder layers (Pallas, grid over batch blocks) ---
    layers = p['layers']
    single_buffer = hasattr(pl, "Buffered")
    try:
        layer_call = _make_layer_call(B, Bblk, S, D, DFF, H,
                                      save_attn_pattern, single_buffer, vmem_limit)
        outs = layer_call(x, *_layer_args(layers[0]))
    except Exception:
        if not single_buffer:
            raise
        # installed JAX/Mosaic rejects pipeline_mode=pl.Buffered(1): fall back.
        single_buffer = False
        layer_call = _make_layer_call(B, Bblk, S, D, DFF, H,
                                      save_attn_pattern, False, vmem_limit)
        outs = layer_call(x, *_layer_args(layers[0]))

    attn_patterns = []

    def unpack(outs):
        if save_attn_pattern:
            attn_patterns.append(outs[1])
        return outs[0]

    x = unpack(outs)
    for lp in layers[1:]:
        x = unpack(layer_call(x, *_layer_args(lp)))

    # --- NextSentencePred: tiny (B, D) @ (D, 2) -> plain XLA ---
    # (a lane-width-2 per-batch Pallas output would be masked partial stores)
    cls = x[:, 0, :]                                          # (B, D) bf16
    nsp = (jnp.dot(cls, p['w_nsp'], preferred_element_type=jnp.float32)
           + p['b_nsp'].astype(jnp.float32))                  # (B, 2) f32

    # --- MaskedTokenPred: vocab-tiled Pallas matmul ---
    # fixed 128-aligned tile (works for V=30522), zero-padded weights.
    BS = B * S
    xs = x.reshape(BS, D)                                     # (BS, D) bf16
    TV = min(2048, _round_up(V, 128))
    V_pad = _round_up(V, TV)
    w_mtp, b_mtp = p['w_mtp'], p['b_mtp']
    if V_pad != V:
        w_mtp = jnp.pad(w_mtp, ((0, 0), (0, V_pad - V)))
        b_mtp = jnp.pad(b_mtp, ((0, 0), (0, V_pad - V)))

    TM = BS
    for cand in (1024, 512, 256):
        if BS > cand and BS % cand == 0:
            TM = cand
            break
    nvt, nmt = V_pad // TV, BS // TM

    # TODO(synk): for training, gather only masked positions (or fuse the CE
    # log-softmax) so the (B,S,V) logits never hit HBM.
    mtp_call = pl.pallas_call(
        mtp_kernel,
        grid=(nvt, nmt),          # vocab tiles outer (slow), M tiles inner:
        in_specs=[                # each w_mtp tile is DMA'd from HBM once.
            pl.BlockSpec((TM, D), lambda j, i: (i, 0)),
            pl.BlockSpec((D, TV), lambda j, i: (0, j)),
            pl.BlockSpec((1, TV), lambda j, i: (0, j)),
        ],
        out_specs=pl.BlockSpec((TM, TV), lambda j, i: (i, j)),
        out_shape=jax.ShapeDtypeStruct((BS, V_pad), jnp.bfloat16),
        compiler_params=pltpu.CompilerParams(
            dimension_semantics=("parallel", "parallel"),
            vmem_limit_bytes=vmem_limit),
    )
    mtp = mtp_call(xs, w_mtp, b_mtp)[:, :V].reshape(B, S, V)  # bf16 logits

    return nsp, mtp, attn_patterns


# ----------------------------- parameter init -----------------------------

def init_params(key, vocab_size, d_model, n_layers, n_heads, d_ff,
                max_len, n_segments=2):
    scale = 0.02
    keys = jax.random.split(key, 4 + n_layers)
    params = {
        'tok_emb': scale * jax.random.normal(keys[0], (vocab_size, d_model), jnp.float32),
        'seg_emb': scale * jax.random.normal(keys[1], (n_segments, d_model), jnp.float32),
        'pos_emb': scale * jax.random.normal(keys[2], (max_len, d_model), jnp.float32),
        'n_heads': n_heads,
        'layers': [],
    }
    for i in range(n_layers):
        k = jax.random.split(keys[4 + i], 6)
        params['layers'].append({
            'wq': scale * jax.random.normal(k[0], (d_model, d_model), jnp.float32),
            'wk': scale * jax.random.normal(k[1], (d_model, d_model), jnp.float32),
            'wv': scale * jax.random.normal(k[2], (d_model, d_model), jnp.float32),
            'bq': jnp.zeros((1, d_model), jnp.float32),
            'bk': jnp.zeros((1, d_model), jnp.float32),
            'bv': jnp.zeros((1, d_model), jnp.float32),
            'wo': scale * jax.random.normal(k[3], (d_model, d_model), jnp.float32),
            'bo': jnp.zeros((1, d_model), jnp.float32),
            'ln1_g': jnp.ones((1, d_model), jnp.float32),
            'ln1_b': jnp.zeros((1, d_model), jnp.float32),
            'w1': scale * jax.random.normal(k[4], (d_model, d_ff), jnp.float32),
            'b1': jnp.zeros((1, d_ff), jnp.float32),
            'w2': scale * jax.random.normal(k[5], (d_ff, d_model), jnp.float32),
            'b2': jnp.zeros((1, d_model), jnp.float32),
            'ln2_g': jnp.ones((1, d_model), jnp.float32),
            'ln2_b': jnp.zeros((1, d_model), jnp.float32),
        })
    kh = jax.random.split(keys[3], 2)
    params['w_nsp'] = scale * jax.random.normal(kh[0], (d_model, 2), jnp.float32)
    params['b_nsp'] = jnp.zeros((1, 2), jnp.float32)
    params['w_mtp'] = scale * jax.random.normal(kh[1], (d_model, vocab_size), jnp.float32)
    params['b_mtp'] = jnp.zeros((1, vocab_size), jnp.float32)
    return params


# ----------------------------- main -----------------------------

if __name__ == "__main__":
    B, S = 2, 8
    VOCAB, D_MODEL, N_HEADS, D_FF, N_LAYERS = 64, 32, 2, 64, 2

    key = jax.random.PRNGKey(0)
    pkey, tkey = jax.random.split(key)
    params = init_params(pkey, VOCAB, D_MODEL, N_LAYERS, N_HEADS, D_FF, max_len=S)

    tokens = jax.random.randint(tkey, (B, S), 0, VOCAB, dtype=jnp.int32)
    seg = jnp.concatenate(
        [jnp.zeros((B, S // 2), jnp.int32), jnp.ones((B, S // 2), jnp.int32)], axis=1)

    # variant with attention patterns
    nsp, mtp, attn_patterns = bert_lm_forward(params, tokens, seg,
                                              save_attn_pattern=True)
    jax.block_until_ready((nsp, mtp, attn_patterns))
    assert nsp.shape == (B, 2)
    assert mtp.shape == (B, S, VOCAB)
    assert len(attn_patterns) == N_LAYERS
    assert attn_patterns[0].shape == (B, N_HEADS, S, S)

    # variant without attention patterns (no (B,H,S,S) HBM writeback)
    nsp2, mtp2, attn2 = bert_lm_forward(params, tokens, seg,
                                        save_attn_pattern=False)
    jax.block_until_ready((nsp2, mtp2))
    assert nsp2.shape == (B, 2)
    assert mtp2.shape == (B, S, VOCAB)
    assert attn2 == []

    print("KERNEL_OK")
</pallas_src>

<mosaic_0001>
module attributes {stable_mosaic.version = 11 : i64} {
  func.func @bert_layer_kernel(%arg0: i32, %arg1: memref<2x8x32xbf16, #tpu.memory_space<vmem>>, %arg2: memref<32x32xbf16, #tpu.memory_space<vmem>>, %arg3: memref<32x32xbf16, #tpu.memory_space<vmem>>, %arg4: memref<32x32xbf16, #tpu.memory_space<vmem>>, %arg5: memref<1x32xbf16, #tpu.memory_space<vmem>>, %arg6: memref<1x32xbf16, #tpu.memory_space<vmem>>, %arg7: memref<1x32xbf16, #tpu.memory_space<vmem>>, %arg8: memref<32x32xbf16, #tpu.memory_space<vmem>>, %arg9: memref<1x32xbf16, #tpu.memory_space<vmem>>, %arg10: memref<1x32xbf16, #tpu.memory_space<vmem>>, %arg11: memref<1x32xbf16, #tpu.memory_space<vmem>>, %arg12: memref<32x64xbf16, #tpu.memory_space<vmem>>, %arg13: memref<1x64xbf16, #tpu.memory_space<vmem>>, %arg14: memref<64x32xbf16, #tpu.memory_space<vmem>>, %arg15: memref<1x32xbf16, #tpu.memory_space<vmem>>, %arg16: memref<1x32xbf16, #tpu.memory_space<vmem>>, %arg17: memref<1x32xbf16, #tpu.memory_space<vmem>>, %arg18: memref<2x8x32xbf16, #tpu.memory_space<vmem>>, %arg19: memref<2x2x8x8xbf16, #tpu.memory_space<vmem>>) attributes {dimension_semantics = [#tpu.dimension_semantics<parallel>], iteration_bounds = array<i64: 1>, scalar_prefetch = 0 : i64, scratch_operands = 0 : i64, tpu.core_type = #tpu.core_type<tc>, window_params = [{transform_indices = @transform_0, window_bounds = array<i64: 2, 8, 32>}, {pipeline_mode = #tpu.pipeline_mode<synchronous>, transform_indices = @transform_1, window_bounds = array<i64: 32, 32>}, {pipeline_mode = #tpu.pipeline_mode<synchronous>, transform_indices = @transform_2, window_bounds = array<i64: 32, 32>}, {pipeline_mode = #tpu.pipeline_mode<synchronous>, transform_indices = @transform_3, window_bounds = array<i64: 32, 32>}, {pipeline_mode = #tpu.pipeline_mode<synchronous>, transform_indices = @transform_4, window_bounds = array<i64: 1, 32>}, {pipeline_mode = #tpu.pipeline_mode<synchronous>, transform_indices = @transform_5, window_bounds = array<i64: 1, 32>}, {pipeline_mode = #tpu.pipeline_mode<synchronous>, transform_indices = @transform_6, window_bounds = array<i64: 1, 32>}, {pipeline_mode = #tpu.pipeline_mode<synchronous>, transform_indices = @transform_7, window_bounds = array<i64: 32, 32>}, {pipeline_mode = #tpu.pipeline_mode<synchronous>, transform_indices = @transform_8, window_bounds = array<i64: 1, 32>}, {pipeline_mode = #tpu.pipeline_mode<synchronous>, transform_indices = @transform_9, window_bounds = array<i64: 1, 32>}, {pipeline_mode = #tpu.pipeline_mode<synchronous>, transform_indices = @transform_10, window_bounds = array<i64: 1, 32>}, {pipeline_mode = #tpu.pipeline_mode<synchronous>, transform_indices = @transform_11, window_bounds = array<i64: 32, 64>}, {pipeline_mode = #tpu.pipeline_mode<synchronous>, transform_indices = @transform_12, window_bounds = array<i64: 1, 64>}, {pipeline_mode = #tpu.pipeline_mode<synchronous>, transform_indices = @transform_13, window_bounds = array<i64: 64, 32>}, {pipeline_mode = #tpu.pipeline_mode<synchronous>, transform_indices = @transform_14, window_bounds = array<i64: 1, 32>}, {pipeline_mode = #tpu.pipeline_mode<synchronous>, transform_indices = @transform_15, window_bounds = array<i64: 1, 32>}, {pipeline_mode = #tpu.pipeline_mode<synchronous>, transform_indices = @transform_16, window_bounds = array<i64: 1, 32>}, {transform_indices = @transform_17, window_bounds = array<i64: 2, 8, 32>}, {transform_indices = @transform_18, window_bounds = array<i64: 2, 2, 8, 8>}]} {
    %c0 = arith.constant 0 : index
    %c0_0 = arith.constant 0 : index
    %c0_1 = arith.constant 0 : index
    %0 = vector.load %arg1[%c0, %c0_0, %c0_1] : memref<2x8x32xbf16, #tpu.memory_space<vmem>>, vector<2x8x32xbf16>
    %1 = vector.shape_cast %0 : vector<2x8x32xbf16> to vector<16x32xbf16>
    %c0_2 = arith.constant 0 : index
    %c0_3 = arith.constant 0 : index
    %2 = vector.load %arg2[%c0_2, %c0_3] : memref<32x32xbf16, #tpu.memory_space<vmem>>, vector<32x32xbf16>
    %cst = arith.constant dense<0.000000e+00> : vector<16x32xf32>
    %3 = tpu.matmul %1, %2, %cst {dimension_numbers = #tpu.dot_dimension_numbers<[1], [0], [0], [1], [0, 0, 1, 1], [], []>} : vector<16x32xbf16>, vector<32x32xbf16>, vector<16x32xf32> -> vector<16x32xf32>
    %c0_4 = arith.constant 0 : index
    %c0_5 = arith.constant 0 : index
    %4 = vector.load %arg5[%c0_4, %c0_5] : memref<1x32xbf16, #tpu.memory_space<vmem>>, vector<1x32xbf16>
    %5 = vector.shape_cast %4 : vector<1x32xbf16> to vector<32xbf16>
    %6 = arith.extf %5 : vector<32xbf16> to vector<32xf32>
    %7 = vector.shape_cast %6 : vector<32xf32> to vector<1x32xf32>
    %8 = vector.broadcast %7 : vector<1x32xf32> to vector<16x32xf32>
    %9 = arith.addf %3, %8 : vector<16x32xf32>
    %cst_6 = arith.constant 2.500000e-01 : f32
    %10 = vector.broadcast %cst_6 : f32 to vector<16x32xf32>
    %11 = arith.mulf %9, %10 : vector<16x32xf32>
    %c0_7 = arith.constant 0 : index
    %c0_8 = arith.constant 0 : index
    %12 = vector.load %arg3[%c0_7, %c0_8] : memref<32x32xbf16, #tpu.memory_space<vmem>>, vector<32x32xbf16>
    %cst_9 = arith.constant dense<0.000000e+00> : vector<16x32xf32>
    %13 = tpu.matmul %1, %12, %cst_9 {dimension_numbers = #tpu.dot_dimension_numbers<[1], [0], [0], [1], [0, 0, 1, 1], [], []>} : vector<16x32xbf16>, vector<32x32xbf16>, vector<16x32xf32> -> vector<16x32xf32>
    %c0_10 = arith.constant 0 : index
    %c0_11 = arith.constant 0 : index
    %14 = vector.load %arg6[%c0_10, %c0_11] : memref<1x32xbf16, #tpu.memory_space<vmem>>, vector<1x32xbf16>
    %15 = vector.shape_cast %14 : vector<1x32xbf16> to vector<32xbf16>
    %16 = arith.extf %15 : vector<32xbf16> to vector<32xf32>
    %17 = vector.shape_cast %16 : vector<32xf32> to vector<1x32xf32>
    %18 = vector.broadcast %17 : vector<1x32xf32> to vector<16x32xf32>
    %19 = arith.addf %13, %18 : vector<16x32xf32>
    %c0_12 = arith.constant 0 : index
    %c0_13 = arith.constant 0 : index
    %20 = vector.load %arg4[%c0_12, %c0_13] : memref<32x32xbf16, #tpu.memory_space<vmem>>, vector<32x32xbf16>
    %cst_14 = arith.constant dense<0.000000e+00> : vector<16x32xf32>
    %21 = tpu.matmul %1, %20, %cst_14 {dimension_numbers = #tpu.dot_dimension_numbers<[1], [0], [0], [1], [0, 0, 1, 1], [], []>} : vector<16x32xbf16>, vector<32x32xbf16>, vector<16x32xf32> -> vector<16x32xf32>
    %c0_15 = arith.constant 0 : index
    %c0_16 = arith.constant 0 : index
    %22 = vector.load %arg7[%c0_15, %c0_16] : memref<1x32xbf16, #tpu.memory_space<vmem>>, vector<1x32xbf16>
    %23 = vector.shape_cast %22 : vector<1x32xbf16> to vector<32xbf16>
    %24 = arith.extf %23 : vector<32xbf16> to vector<32xf32>
    %25 = vector.shape_cast %24 : vector<32xf32> to vector<1x32xf32>
    %26 = vector.broadcast %25 : vector<1x32xf32> to vector<16x32xf32>
    %27 = arith.addf %21, %26 : vector<16x32xf32>
    %28 = arith.truncf %11 : vector<16x32xf32> to vector<16x32xbf16>
    %29 = vector.shape_cast %28 : vector<16x32xbf16> to vector<2x8x2x16xbf16>
    %30 = tpu.transpose %29, [0, 2, 1, 3] : vector<2x8x2x16xbf16> -> vector<2x2x8x16xbf16>
    %31 = vector.shape_cast %30 : vector<2x2x8x16xbf16> to vector<4x8x16xbf16>
    %32 = arith.truncf %19 : vector<16x32xf32> to vector<16x32xbf16>
    %33 = vector.shape_cast %32 : vector<16x32xbf16> to vector<2x8x2x16xbf16>
    %34 = tpu.transpose %33, [0, 2, 1, 3] : vector<2x8x2x16xbf16> -> vector<2x2x8x16xbf16>
    %35 = vector.shape_cast %34 : vector<2x2x8x16xbf16> to vector<4x8x16xbf16>
    %36 = arith.truncf %27 : vector<16x32xf32> to vector<16x32xbf16>
    %37 = vector.shape_cast %36 : vector<16x32xbf16> to vector<2x8x2x16xbf16>
    %38 = tpu.transpose %37, [0, 2, 1, 3] : vector<2x8x2x16xbf16> -> vector<2x2x8x16xbf16>
    %39 = vector.shape_cast %38 : vector<2x2x8x16xbf16> to vector<4x8x16xbf16>
    "tpu.trace_start"() <{level = 10 : i32, message = "nqd,nkd->nqk"}> : () -> ()
    %cst_17 = arith.constant dense<0.000000e+00> : vector<4x8x8xf32>
    %40 = tpu.matmul %31, %35, %cst_17 {dimension_numbers = #tpu.dot_dimension_numbers<[2], [2], [1], [1], [0, 0, 0, 1, 1, 1], [0], [0]>} : vector<4x8x16xbf16>, vector<4x8x16xbf16>, vector<4x8x8xf32> -> vector<4x8x8xf32>
    "tpu.trace_stop"() : () -> ()
    %cst_18 = arith.constant dense<0xFF800000> : vector<4x8xf32>
    %41 = vector.multi_reduction <maximumf>, %40, %cst_18 [2] : vector<4x8x8xf32> to vector<4x8xf32>
    %42 = vector.shape_cast %41 : vector<4x8xf32> to vector<4x8x1xf32>
    %43 = vector.broadcast %42 : vector<4x8x1xf32> to vector<4x8x8xf32>
    %44 = arith.subf %40, %43 : vector<4x8x8xf32>
    %45 = math.exp %44 : vector<4x8x8xf32>
    %cst_19 = arith.constant dense<0.000000e+00> : vector<4x8xf32>
    %46 = vector.multi_reduction <add>, %45, %cst_19 [2] : vector<4x8x8xf32> to vector<4x8xf32>
    %47 = vector.shape_cast %46 : vector<4x8xf32> to vector<4x8x1xf32>
    %48 = tpu.reciprocal %47 {approx = true} : vector<4x8x1xf32> -> vector<4x8x1xf32>
    %49 = vector.broadcast %48 : vector<4x8x1xf32> to vector<4x8x8xf32>
    %50 = arith.mulf %45, %49 : vector<4x8x8xf32>
    %51 = vector.shape_cast %50 : vector<4x8x8xf32> to vector<2x2x8x8xf32>
    %52 = arith.truncf %51 : vector<2x2x8x8xf32> to vector<2x2x8x8xbf16>
    %c0_20 = arith.constant 0 : index
    %c0_21 = arith.constant 0 : index
    %c0_22 = arith.constant 0 : index
    %c0_23 = arith.constant 0 : index
    %53 = vector.load %arg19[%c0_20, %c0_21, %c0_22, %c0_23] : memref<2x2x8x8xbf16, #tpu.memory_space<vmem>>, vector<2x2x8x8xbf16>
    tpu.vector_store %arg19[%c0_20, %c0_21, %c0_22, %c0_23], %52 {strides = array<i32>} : memref<2x2x8x8xbf16, #tpu.memory_space<vmem>>, vector<2x2x8x8xbf16>,
    %54 = arith.truncf %50 : vector<4x8x8xf32> to vector<4x8x8xbf16>
    "tpu.trace_start"() <{level = 10 : i32, message = "nqk,nkd->nqd"}> : () -> ()
    %cst_24 = arith.constant dense<0.000000e+00> : vector<4x8x16xf32>
    %55 = tpu.matmul %54, %39, %cst_24 {dimension_numbers = #tpu.dot_dimension_numbers<[2], [1], [1], [2], [0, 0, 0, 1, 1, 2], [0], [0]>} : vector<4x8x8xbf16>, vector<4x8x16xbf16>, vector<4x8x16xf32> -> vector<4x8x16xf32>
    "tpu.trace_stop"() : () -> ()
    %56 = arith.truncf %55 : vector<4x8x16xf32> to vector<4x8x16xbf16>
    %57 = vector.shape_cast %56 : vector<4x8x16xbf16> to vector<2x2x8x16xbf16>
    %58 = tpu.transpose %57, [0, 2, 1, 3] : vector<2x2x8x16xbf16> -> vector<2x8x2x16xbf16>
    %59 = vector.shape_cast %58 : vector<2x8x2x16xbf16> to vector<16x32xbf16>
    %c0_25 = arith.constant 0 : index
    %c0_26 = arith.constant 0 : index
    %60 = vector.load %arg8[%c0_25, %c0_26] : memref<32x32xbf16, #tpu.memory_space<vmem>>, vector<32x32xbf16>
    %cst_27 = arith.constant dense<0.000000e+00> : vector<16x32xf32>
    %61 = tpu.matmul %59, %60, %cst_27 {dimension_numbers = #tpu.dot_dimension_numbers<[1], [0], [0], [1], [0, 0, 1, 1], [], []>} : vector<16x32xbf16>, vector<32x32xbf16>, vector<16x32xf32> -> vector<16x32xf32>
    %c0_28 = arith.constant 0 : index
    %c0_29 = arith.constant 0 : index
    %62 = vector.load %arg9[%c0_28, %c0_29] : memref<1x32xbf16, #tpu.memory_space<vmem>>, vector<1x32xbf16>
    %63 = vector.shape_cast %62 : vector<1x32xbf16> to vector<32xbf16>
    %64 = arith.extf %63 : vector<32xbf16> to vector<32xf32>
    %65 = vector.shape_cast %64 : vector<32xf32> to vector<1x32xf32>
    %66 = vector.broadcast %65 : vector<1x32xf32> to vector<16x32xf32>
    %67 = arith.addf %61, %66 : vector<16x32xf32>
    %68 = arith.extf %1 : vector<16x32xbf16> to vector<16x32xf32>
    %69 = arith.addf %68, %67 : vector<16x32xf32>
    %c0_30 = arith.constant 0 : index
    %c0_31 = arith.constant 0 : index
    %70 = vector.load %arg10[%c0_30, %c0_31] : memref<1x32xbf16, #tpu.memory_space<vmem>>, vector<1x32xbf16>
    %71 = vector.shape_cast %70 : vector<1x32xbf16> to vector<32xbf16>
    %72 = arith.extf %71 : vector<32xbf16> to vector<32xf32>
    %c0_32 = arith.constant 0 : index
    %c0_33 = arith.constant 0 : index
    %73 = vector.load %arg11[%c0_32, %c0_33] : memref<1x32xbf16, #tpu.memory_space<vmem>>, vector<1x32xbf16>
    %74 = vector.shape_cast %73 : vector<1x32xbf16> to vector<32xbf16>
    %75 = arith.extf %74 : vector<32xbf16> to vector<32xf32>
    %cst_34 = arith.constant dense<0.000000e+00> : vector<16xf32>
    %76 = vector.multi_reduction <add>, %69, %cst_34 [1] : vector<16x32xf32> to vector<16xf32>
    %77 = vector.shape_cast %76 : vector<16xf32> to vector<16x1xf32>
    %cst_35 = arith.constant 3.200000e+01 : f32
    %78 = vector.broadcast %cst_35 : f32 to vector<16x1xf32>
    %79 = arith.divf %77, %78 : vector<16x1xf32>
    %80 = vector.broadcast %79 : vector<16x1xf32> to vector<16x32xf32>
    %81 = arith.subf %69, %80 : vector<16x32xf32>
    %82 = arith.mulf %81, %81 : vector<16x32xf32>
    %cst_36 = arith.constant dense<0.000000e+00> : vector<16xf32>
    %83 = vector.multi_reduction <add>, %82, %cst_36 [1] : vector<16x32xf32> to vector<16xf32>
    %84 = vector.shape_cast %83 : vector<16xf32> to vector<16x1xf32>
    %cst_37 = arith.constant 3.200000e+01 : f32
    %85 = vector.broadcast %cst_37 : f32 to vector<16x1xf32>
    %86 = arith.divf %84, %85 : vector<16x1xf32>
    %87 = vector.broadcast %79 : vector<16x1xf32> to vector<16x32xf32>
    %88 = arith.subf %69, %87 : vector<16x32xf32>
    %cst_38 = arith.constant 9.99999974E-6 : f32
    %89 = vector.broadcast %cst_38 : f32 to vector<16x1xf32>
    %90 = arith.addf %86, %89 : vector<16x1xf32>
    %91 = math.rsqrt %90 : vector<16x1xf32>
    %92 = vector.broadcast %91 : vector<16x1xf32> to vector<16x32xf32>
    %93 = arith.mulf %88, %92 : vector<16x32xf32>
    %94 = vector.shape_cast %72 : vector<32xf32> to vector<1x32xf32>
    %95 = vector.broadcast %94 : vector<1x32xf32> to vector<16x32xf32>
    %96 = arith.mulf %93, %95 : vector<16x32xf32>
    %97 = vector.shape_cast %75 : vector<32xf32> to vector<1x32xf32>
    %98 = vector.broadcast %97 : vector<1x32xf32> to vector<16x32xf32>
    %99 = arith.addf %96, %98 : vector<16x32xf32>
    %100 = arith.truncf %99 : vector<16x32xf32> to vector<16x32xbf16>
    %c0_39 = arith.constant 0 : index
    %c0_40 = arith.constant 0 : index
    %101 = vector.load %arg12[%c0_39, %c0_40] : memref<32x64xbf16, #tpu.memory_space<vmem>>, vector<32x64xbf16>
    %cst_41 = arith.constant dense<0.000000e+00> : vector<16x64xf32>
    %102 = tpu.matmul %100, %101, %cst_41 {dimension_numbers = #tpu.dot_dimension_numbers<[1], [0], [0], [1], [0, 0, 1, 1], [], []>} : vector<16x32xbf16>, vector<32x64xbf16>, vector<16x64xf32> -> vector<16x64xf32>
    %c0_42 = arith.constant 0 : index
    %c0_43 = arith.constant 0 : index
    %103 = vector.load %arg13[%c0_42, %c0_43] : memref<1x64xbf16, #tpu.memory_space<vmem>>, vector<1x64xbf16>
    %104 = vector.shape_cast %103 : vector<1x64xbf16> to vector<64xbf16>
    %105 = arith.extf %104 : vector<64xbf16> to vector<64xf32>
    %106 = vector.shape_cast %105 : vector<64xf32> to vector<1x64xf32>
    %107 = vector.broadcast %106 : vector<1x64xf32> to vector<16x64xf32>
    %108 = arith.addf %102, %107 : vector<16x64xf32>
    %109 = arith.truncf %108 : vector<16x64xf32> to vector<16x64xbf16>
    %110 = arith.mulf %109, %109 : vector<16x64xbf16>
    %111 = arith.mulf %109, %110 : vector<16x64xbf16>
    %cst_44 = arith.constant 4.467770e-02 : bf16
    %112 = vector.broadcast %cst_44 : bf16 to vector<16x64xbf16>
    %113 = arith.mulf %112, %111 : vector<16x64xbf16>
    %114 = arith.addf %109, %113 : vector<16x64xbf16>
    %cst_45 = arith.constant 7.968750e-01 : bf16
    %115 = vector.broadcast %cst_45 : bf16 to vector<16x64xbf16>
    %116 = arith.mulf %115, %114 : vector<16x64xbf16>
    %117 = math.tanh %116 : vector<16x64xbf16>
    %cst_46 = arith.constant 1.000000e+00 : bf16
    %118 = vector.broadcast %cst_46 : bf16 to vector<16x64xbf16>
    %119 = arith.addf %118, %117 : vector<16x64xbf16>
    %cst_47 = arith.constant 5.000000e-01 : bf16
    %120 = vector.broadcast %cst_47 : bf16 to vector<16x64xbf16>
    %121 = arith.mulf %120, %119 : vector<16x64xbf16>
    %122 = arith.mulf %109, %121 : vector<16x64xbf16>
    %c0_48 = arith.constant 0 : index
    %c0_49 = arith.constant 0 : index
    %123 = vector.load %arg14[%c0_48, %c0_49] : memref<64x32xbf16, #tpu.memory_space<vmem>>, vector<64x32xbf16>
    %cst_50 = arith.constant dense<0.000000e+00> : vector<16x32xf32>
    %124 = tpu.matmul %122, %123, %cst_50 {dimension_numbers = #tpu.dot_dimension_numbers<[1], [0], [0], [1], [0, 0, 1, 1], [], []>} : vector<16x64xbf16>, vector<64x32xbf16>, vector<16x32xf32> -> vector<16x32xf32>
    %c0_51 = arith.constant 0 : index
    %c0_52 = arith.constant 0 : index
    %125 = vector.load %arg15[%c0_51, %c0_52] : memref<1x32xbf16, #tpu.memory_space<vmem>>, vector<1x32xbf16>
    %126 = vector.shape_cast %125 : vector<1x32xbf16> to vector<32xbf16>
    %127 = arith.extf %126 : vector<32xbf16> to vector<32xf32>
    %128 = vector.shape_cast %127 : vector<32xf32> to vector<1x32xf32>
    %129 = vector.broadcast %128 : vector<1x32xf32> to vector<16x32xf32>
    %130 = arith.addf %124, %129 : vector<16x32xf32>
    %131 = arith.addf %99, %130 : vector<16x32xf32>
    %c0_53 = arith.constant 0 : index
    %c0_54 = arith.constant 0 : index
    %132 = vector.load %arg16[%c0_53, %c0_54] : memref<1x32xbf16, #tpu.memory_space<vmem>>, vector<1x32xbf16>
    %133 = vector.shape_cast %132 : vector<1x32xbf16> to vector<32xbf16>
    %134 = arith.extf %133 : vector<32xbf16> to vector<32xf32>
    %c0_55 = arith.constant 0 : index
    %c0_56 = arith.constant 0 : index
    %135 = vector.load %arg17[%c0_55, %c0_56] : memref<1x32xbf16, #tpu.memory_space<vmem>>, vector<1x32xbf16>
    %136 = vector.shape_cast %135 : vector<1x32xbf16> to vector<32xbf16>
    %137 = arith.extf %136 : vector<32xbf16> to vector<32xf32>
    %cst_57 = arith.constant dense<0.000000e+00> : vector<16xf32>
    %138 = vector.multi_reduction <add>, %131, %cst_57 [1] : vector<16x32xf32> to vector<16xf32>
    %139 = vector.shape_cast %138 : vector<16xf32> to vector<16x1xf32>
    %cst_58 = arith.constant 3.200000e+01 : f32
    %140 = vector.broadcast %cst_58 : f32 to vector<16x1xf32>
    %141 = arith.divf %139, %140 : vector<16x1xf32>
    %142 = vector.broadcast %141 : vector<16x1xf32> to vector<16x32xf32>
    %143 = arith.subf %131, %142 : vector<16x32xf32>
    %144 = arith.mulf %143, %143 : vector<16x32xf32>
    %cst_59 = arith.constant dense<0.000000e+00> : vector<16xf32>
    %145 = vector.multi_reduction <add>, %144, %cst_59 [1] : vector<16x32xf32> to vector<16xf32>
    %146 = vector.shape_cast %145 : vector<16xf32> to vector<16x1xf32>
    %cst_60 = arith.constant 3.200000e+01 : f32
    %147 = vector.broadcast %cst_60 : f32 to vector<16x1xf32>
    %148 = arith.divf %146, %147 : vector<16x1xf32>
    %149 = vector.broadcast %141 : vector<16x1xf32> to vector<16x32xf32>
    %150 = arith.subf %131, %149 : vector<16x32xf32>
    %cst_61 = arith.constant 9.99999974E-6 : f32
    %151 = vector.broadcast %cst_61 : f32 to vector<16x1xf32>
    %152 = arith.addf %148, %151 : vector<16x1xf32>
    %153 = math.rsqrt %152 : vector<16x1xf32>
    %154 = vector.broadcast %153 : vector<16x1xf32> to vector<16x32xf32>
    %155 = arith.mulf %150, %154 : vector<16x32xf32>
    %156 = vector.shape_cast %134 : vector<32xf32> to vector<1x32xf32>
    %157 = vector.broadcast %156 : vector<1x32xf32> to vector<16x32xf32>
    %158 = arith.mulf %155, %157 : vector<16x32xf32>
    %159 = vector.shape_cast %137 : vector<32xf32> to vector<1x32xf32>
    %160 = vector.broadcast %159 : vector<1x32xf32> to vector<16x32xf32>
    %161 = arith.addf %158, %160 : vector<16x32xf32>
    %162 = vector.shape_cast %161 : vector<16x32xf32> to vector<2x8x32xf32>
    %163 = arith.truncf %162 : vector<2x8x32xf32> to vector<2x8x32xbf16>
    %c0_62 = arith.constant 0 : index
    %c0_63 = arith.constant 0 : index
    %c0_64 = arith.constant 0 : index
    %164 = vector.load %arg18[%c0_62, %c0_63, %c0_64] : memref<2x8x32xbf16, #tpu.memory_space<vmem>>, vector<2x8x32xbf16>
    tpu.vector_store %arg18[%c0_62, %c0_63, %c0_64], %163 {strides = array<i32>} : memref<2x8x32xbf16, #tpu.memory_space<vmem>>, vector<2x8x32xbf16>,
    return
  }
  func.func @transform_0(%arg0: i32) -> (i32, i32, i32) {
    %c0_i32 = arith.constant 0 : i32
    %c0_i32_0 = arith.constant 0 : i32
    %c0_i32_1 = arith.constant 0 : i32
    return %arg0, %c0_i32, %c0_i32_0 : i32, i32, i32
  }
  func.func @transform_1(%arg0: i32) -> (i32, i32) {
    %c0_i32 = arith.constant 0 : i32
    %c0_i32_0 = arith.constant 0 : i32
    %c0_i32_1 = arith.constant 0 : i32
    return %c0_i32, %c0_i32_0 : i32, i32
  }
  func.func @transform_2(%arg0: i32) -> (i32, i32) {
    %c0_i32 = arith.constant 0 : i32
    %c0_i32_0 = arith.constant 0 : i32
    %c0_i32_1 = arith.constant 0 : i32
    return %c0_i32, %c0_i32_0 : i32, i32
  }
  func.func @transform_3(%arg0: i32) -> (i32, i32) {
    %c0_i32 = arith.constant 0 : i32
    %c0_i32_0 = arith.constant 0 : i32
    %c0_i32_1 = arith.constant 0 : i32
    return %c0_i32, %c0_i32_0 : i32, i32
  }
  func.func @transform_4(%arg0: i32) -> (i32, i32) {
    %c0_i32 = arith.constant 0 : i32
    %c0_i32_0 = arith.constant 0 : i32
    %c0_i32_1 = arith.constant 0 : i32
    return %c0_i32, %c0_i32_0 : i32, i32
  }
  func.func @transform_5(%arg0: i32) -> (i32, i32) {
    %c0_i32 = arith.constant 0 : i32
    %c0_i32_0 = arith.constant 0 : i32
    %c0_i32_1 = arith.constant 0 : i32
    return %c0_i32, %c0_i32_0 : i32, i32
  }
  func.func @transform_6(%arg0: i32) -> (i32, i32) {
    %c0_i32 = arith.constant 0 : i32
    %c0_i32_0 = arith.constant 0 : i32
    %c0_i32_1 = arith.constant 0 : i32
    return %c0_i32, %c0_i32_0 : i32, i32
  }
  func.func @transform_7(%arg0: i32) -> (i32, i32) {
    %c0_i32 = arith.constant 0 : i32
    %c0_i32_0 = arith.constant 0 : i32
    %c0_i32_1 = arith.constant 0 : i32
    return %c0_i32, %c0_i32_0 : i32, i32
  }
  func.func @transform_8(%arg0: i32) -> (i32, i32) {
    %c0_i32 = arith.constant 0 : i32
    %c0_i32_0 = arith.constant 0 : i32
    %c0_i32_1 = arith.constant 0 : i32
    return %c0_i32, %c0_i32_0 : i32, i32
  }
  func.func @transform_9(%arg0: i32) -> (i32, i32) {
    %c0_i32 = arith.constant 0 : i32
    %c0_i32_0 = arith.constant 0 : i32
    %c0_i32_1 = arith.constant 0 : i32
    return %c0_i32, %c0_i32_0 : i32, i32
  }
  func.func @transform_10(%arg0: i32) -> (i32, i32) {
    %c0_i32 = arith.constant 0 : i32
    %c0_i32_0 = arith.constant 0 : i32
    %c0_i32_1 = arith.constant 0 : i32
    return %c0_i32, %c0_i32_0 : i32, i32
  }
  func.func @transform_11(%arg0: i32) -> (i32, i32) {
    %c0_i32 = arith.constant 0 : i32
    %c0_i32_0 = arith.constant 0 : i32
    %c0_i32_1 = arith.constant 0 : i32
    return %c0_i32, %c0_i32_0 : i32, i32
  }
  func.func @transform_12(%arg0: i32) -> (i32, i32) {
    %c0_i32 = arith.constant 0 : i32
    %c0_i32_0 = arith.constant 0 : i32
    %c0_i32_1 = arith.constant 0 : i32
    return %c0_i32, %c0_i32_0 : i32, i32
  }
  func.func @transform_13(%arg0: i32) -> (i32, i32) {
    %c0_i32 = arith.constant 0 : i32
    %c0_i32_0 = arith.constant 0 : i32
    %c0_i32_1 = arith.constant 0 : i32
    return %c0_i32, %c0_i32_0 : i32, i32
  }
  func.func @transform_14(%arg0: i32) -> (i32, i32) {
    %c0_i32 = arith.constant 0 : i32
    %c0_i32_0 = arith.constant 0 : i32
    %c0_i32_1 = arith.constant 0 : i32
    return %c0_i32, %c0_i32_0 : i32, i32
  }
  func.func @transform_15(%arg0: i32) -> (i32, i32) {
    %c0_i32 = arith.constant 0 : i32
    %c0_i32_0 = arith.constant 0 : i32
    %c0_i32_1 = arith.constant 0 : i32
    return %c0_i32, %c0_i32_0 : i32, i32
  }
  func.func @transform_16(%arg0: i32) -> (i32, i32) {
    %c0_i32 = arith.constant 0 : i32
    %c0_i32_0 = arith.constant 0 : i32
    %c0_i32_1 = arith.constant 0 : i32
    return %c0_i32, %c0_i32_0 : i32, i32
  }
  func.func @transform_17(%arg0: i32) -> (i32, i32, i32) {
    %c0_i32 = arith.constant 0 : i32
    %c0_i32_0 = arith.constant 0 : i32
    %c0_i32_1 = arith.constant 0 : i32
    return %arg0, %c0_i32, %c0_i32_0 : i32, i32, i32
  }
  func.func @transform_18(%arg0: i32) -> (i32, i32, i32, i32) {
    %c0_i32 = arith.constant 0 : i32
    %c0_i32_0 = arith.constant 0 : i32
    %c0_i32_1 = arith.constant 0 : i32
    %c0_i32_2 = arith.constant 0 : i32
    return %arg0, %c0_i32, %c0_i32_0, %c0_i32_1 : i32, i32, i32, i32
  }
}

module attributes {stable_mosaic.version = 11 : i64} {
  func.func @bert_layer_kernel(%arg0: i32, %arg1: memref<2x8x32xbf16, #tpu.memory_space<vmem>>, %arg2: memref<32x32xbf16, #tpu.memory_space<vmem>>, %arg3: memref<32x32xbf16, #tpu.memory_space<vmem>>, %arg4: memref<32x32xbf16, #tpu.memory_space<vmem>>, %arg5: memref<1x32xbf16, #tpu.memory_space<vmem>>, %arg6: memref<1x32xbf16, #tpu.memory_space<vmem>>, %arg7: memref<1x32xbf16, #tpu.memory_space<vmem>>, %arg8: memref<32x32xbf16, #tpu.memory_space<vmem>>, %arg9: memref<1x32xbf16, #tpu.memory_space<vmem>>, %arg10: memref<1x32xbf16, #tpu.memory_space<vmem>>, %arg11: memref<1x32xbf16, #tpu.memory_space<vmem>>, %arg12: memref<32x64xbf16, #tpu.memory_space<vmem>>, %arg13: memref<1x64xbf16, #tpu.memory_space<vmem>>, %arg14: memref<64x32xbf16, #tpu.memory_space<vmem>>, %arg15: memref<1x32xbf16, #tpu.memory_space<vmem>>, %arg16: memref<1x32xbf16, #tpu.memory_space<vmem>>, %arg17: memref<1x32xbf16, #tpu.memory_space<vmem>>, %arg18: memref<2x8x32xbf16, #tpu.memory_space<vmem>>, %arg19: memref<2x2x8x8xbf16, #tpu.memory_space<vmem>>) attributes {dimension_semantics = [#tpu.dimension_semantics<parallel>], iteration_bounds = array<i64: 1>, scalar_prefetch = 0 : i64, scratch_operands = 0 : i64, tpu.core_type = #tpu.core_type<tc>, window_params = [{transform_indices = @transform_0, window_bounds = array<i64: 2, 8, 32>}, {pipeline_mode = #tpu.pipeline_mode<synchronous>, transform_indices = @transform_1, window_bounds = array<i64: 32, 32>}, {pipeline_mode = #tpu.pipeline_mode<synchronous>, transform_indices = @transform_2, window_bounds = array<i64: 32, 32>}, {pipeline_mode = #tpu.pipeline_mode<synchronous>, transform_indices = @transform_3, window_bounds = array<i64: 32, 32>}, {pipeline_mode = #tpu.pipeline_mode<synchronous>, transform_indices = @transform_4, window_bounds = array<i64: 1, 32>}, {pipeline_mode = #tpu.pipeline_mode<synchronous>, transform_indices = @transform_5, window_bounds = array<i64: 1, 32>}, {pipeline_mode = #tpu.pipeline_mode<synchronous>, transform_indices = @transform_6, window_bounds = array<i64: 1, 32>}, {pipeline_mode = #tpu.pipeline_mode<synchronous>, transform_indices = @transform_7, window_bounds = array<i64: 32, 32>}, {pipeline_mode = #tpu.pipeline_mode<synchronous>, transform_indices = @transform_8, window_bounds = array<i64: 1, 32>}, {pipeline_mode = #tpu.pipeline_mode<synchronous>, transform_indices = @transform_9, window_bounds = array<i64: 1, 32>}, {pipeline_mode = #tpu.pipeline_mode<synchronous>, transform_indices = @transform_10, window_bounds = array<i64: 1, 32>}, {pipeline_mode = #tpu.pipeline_mode<synchronous>, transform_indices = @transform_11, window_bounds = array<i64: 32, 64>}, {pipeline_mode = #tpu.pipeline_mode<synchronous>, transform_indices = @transform_12, window_bounds = array<i64: 1, 64>}, {pipeline_mode = #tpu.pipeline_mode<synchronous>, transform_indices = @transform_13, window_bounds = array<i64: 64, 32>}, {pipeline_mode = #tpu.pipeline_mode<synchronous>, transform_indices = @transform_14, window_bounds = array<i64: 1, 32>}, {pipeline_mode = #tpu.pipeline_mode<synchronous>, transform_indices = @transform_15, window_bounds = array<i64: 1, 32>}, {pipeline_mode = #tpu.pipeline_mode<synchronous>, transform_indices = @transform_16, window_bounds = array<i64: 1, 32>}, {transform_indices = @transform_17, window_bounds = array<i64: 2, 8, 32>}, {transform_indices = @transform_18, window_bounds = array<i64: 2, 2, 8, 8>}]} {
    %c0 = arith.constant 0 : index
    %c0_0 = arith.constant 0 : index
    %c0_1 = arith.constant 0 : index
    %0 = vector.load %arg1[%c0, %c0_0, %c0_1] : memref<2x8x32xbf16, #tpu.memory_space<vmem>>, vector<2x8x32xbf16>
    %1 = vector.shape_cast %0 : vector<2x8x32xbf16> to vector<16x32xbf16>
    %c0_2 = arith.constant 0 : index
    %c0_3 = arith.constant 0 : index
    %2 = vector.load %arg2[%c0_2, %c0_3] : memref<32x32xbf16, #tpu.memory_space<vmem>>, vector<32x32xbf16>
    %cst = arith.constant dense<0.000000e+00> : vector<16x32xf32>
    %3 = tpu.matmul %1, %2, %cst {dimension_numbers = #tpu.dot_dimension_numbers<[1], [0], [0], [1], [0, 0, 1, 1], [], []>} : vector<16x32xbf16>, vector<32x32xbf16>, vector<16x32xf32> -> vector<16x32xf32>
    %c0_4 = arith.constant 0 : index
    %c0_5 = arith.constant 0 : index
    %4 = vector.load %arg5[%c0_4, %c0_5] : memref<1x32xbf16, #tpu.memory_space<vmem>>, vector<1x32xbf16>
    %5 = vector.shape_cast %4 : vector<1x32xbf16> to vector<32xbf16>
    %6 = arith.extf %5 : vector<32xbf16> to vector<32xf32>
    %7 = vector.shape_cast %6 : vector<32xf32> to vector<1x32xf32>
    %8 = vector.broadcast %7 : vector<1x32xf32> to vector<16x32xf32>
    %9 = arith.addf %3, %8 : vector<16x32xf32>
    %cst_6 = arith.constant 2.500000e-01 : f32
    %10 = vector.broadcast %cst_6 : f32 to vector<16x32xf32>
    %11 = arith.mulf %9, %10 : vector<16x32xf32>
    %c0_7 = arith.constant 0 : index
    %c0_8 = arith.constant 0 : index
    %12 = vector.load %arg3[%c0_7, %c0_8] : memref<32x32xbf16, #tpu.memory_space<vmem>>, vector<32x32xbf16>
    %cst_9 = arith.constant dense<0.000000e+00> : vector<16x32xf32>
    %13 = tpu.matmul %1, %12, %cst_9 {dimension_numbers = #tpu.dot_dimension_numbers<[1], [0], [0], [1], [0, 0, 1, 1], [], []>} : vector<16x32xbf16>, vector<32x32xbf16>, vector<16x32xf32> -> vector<16x32xf32>
    %c0_10 = arith.constant 0 : index
    %c0_11 = arith.constant 0 : index
    %14 = vector.load %arg6[%c0_10, %c0_11] : memref<1x32xbf16, #tpu.memory_space<vmem>>, vector<1x32xbf16>
    %15 = vector.shape_cast %14 : vector<1x32xbf16> to vector<32xbf16>
    %16 = arith.extf %15 : vector<32xbf16> to vector<32xf32>
    %17 = vector.shape_cast %16 : vector<32xf32> to vector<1x32xf32>
    %18 = vector.broadcast %17 : vector<1x32xf32> to vector<16x32xf32>
    %19 = arith.addf %13, %18 : vector<16x32xf32>
    %c0_12 = arith.constant 0 : index
    %c0_13 = arith.constant 0 : index
    %20 = vector.load %arg4[%c0_12, %c0_13] : memref<32x32xbf16, #tpu.memory_space<vmem>>, vector<32x32xbf16>
    %cst_14 = arith.constant dense<0.000000e+00> : vector<16x32xf32>
    %21 = tpu.matmul %1, %20, %cst_14 {dimension_numbers = #tpu.dot_dimension_numbers<[1], [0], [0], [1], [0, 0, 1, 1], [], []>} : vector<16x32xbf16>, vector<32x32xbf16>, vector<16x32xf32> -> vector<16x32xf32>
    %c0_15 = arith.constant 0 : index
    %c0_16 = arith.constant 0 : index
    %22 = vector.load %arg7[%c0_15, %c0_16] : memref<1x32xbf16, #tpu.memory_space<vmem>>, vector<1x32xbf16>
    %23 = vector.shape_cast %22 : vector<1x32xbf16> to vector<32xbf16>
    %24 = arith.extf %23 : vector<32xbf16> to vector<32xf32>
    %25 = vector.shape_cast %24 : vector<32xf32> to vector<1x32xf32>
    %26 = vector.broadcast %25 : vector<1x32xf32> to vector<16x32xf32>
    %27 = arith.addf %21, %26 : vector<16x32xf32>
    %28 = arith.truncf %11 : vector<16x32xf32> to vector<16x32xbf16>
    %29 = vector.shape_cast %28 : vector<16x32xbf16> to vector<2x8x2x16xbf16>
    %30 = tpu.transpose %29, [0, 2, 1, 3] : vector<2x8x2x16xbf16> -> vector<2x2x8x16xbf16>
    %31 = vector.shape_cast %30 : vector<2x2x8x16xbf16> to vector<4x8x16xbf16>
    %32 = arith.truncf %19 : vector<16x32xf32> to vector<16x32xbf16>
    %33 = vector.shape_cast %32 : vector<16x32xbf16> to vector<2x8x2x16xbf16>
    %34 = tpu.transpose %33, [0, 2, 1, 3] : vector<2x8x2x16xbf16> -> vector<2x2x8x16xbf16>
    %35 = vector.shape_cast %34 : vector<2x2x8x16xbf16> to vector<4x8x16xbf16>
    %36 = arith.truncf %27 : vector<16x32xf32> to vector<16x32xbf16>
    %37 = vector.shape_cast %36 : vector<16x32xbf16> to vector<2x8x2x16xbf16>
    %38 = tpu.transpose %37, [0, 2, 1, 3] : vector<2x8x2x16xbf16> -> vector<2x2x8x16xbf16>
    %39 = vector.shape_cast %38 : vector<2x2x8x16xbf16> to vector<4x8x16xbf16>
    "tpu.trace_start"() <{level = 10 : i32, message = "nqd,nkd->nqk"}> : () -> ()
    %cst_17 = arith.constant dense<0.000000e+00> : vector<4x8x8xf32>
    %40 = tpu.matmul %31, %35, %cst_17 {dimension_numbers = #tpu.dot_dimension_numbers<[2], [2], [1], [1], [0, 0, 0, 1, 1, 1], [0], [0]>} : vector<4x8x16xbf16>, vector<4x8x16xbf16>, vector<4x8x8xf32> -> vector<4x8x8xf32>
    "tpu.trace_stop"() : () -> ()
    %cst_18 = arith.constant dense<0xFF800000> : vector<4x8xf32>
    %41 = vector.multi_reduction <maximumf>, %40, %cst_18 [2] : vector<4x8x8xf32> to vector<4x8xf32>
    %42 = vector.shape_cast %41 : vector<4x8xf32> to vector<4x8x1xf32>
    %43 = vector.broadcast %42 : vector<4x8x1xf32> to vector<4x8x8xf32>
    %44 = arith.subf %40, %43 : vector<4x8x8xf32>
    %45 = math.exp %44 : vector<4x8x8xf32>
    %cst_19 = arith.constant dense<0.000000e+00> : vector<4x8xf32>
    %46 = vector.multi_reduction <add>, %45, %cst_19 [2] : vector<4x8x8xf32> to vector<4x8xf32>
    %47 = vector.shape_cast %46 : vector<4x8xf32> to vector<4x8x1xf32>
    %48 = tpu.reciprocal %47 {approx = true} : vector<4x8x1xf32> -> vector<4x8x1xf32>
    %49 = vector.broadcast %48 : vector<4x8x1xf32> to vector<4x8x8xf32>
    %50 = arith.mulf %45, %49 : vector<4x8x8xf32>
    %51 = vector.shape_cast %50 : vector<4x8x8xf32> to vector<2x2x8x8xf32>
    %52 = arith.truncf %51 : vector<2x2x8x8xf32> to vector<2x2x8x8xbf16>
    %c0_20 = arith.constant 0 : index
    %c0_21 = arith.constant 0 : index
    %c0_22 = arith.constant 0 : index
    %c0_23 = arith.constant 0 : index
    %53 = vector.load %arg19[%c0_20, %c0_21, %c0_22, %c0_23] : memref<2x2x8x8xbf16, #tpu.memory_space<vmem>>, vector<2x2x8x8xbf16>
    tpu.vector_store %arg19[%c0_20, %c0_21, %c0_22, %c0_23], %52 {strides = array<i32>} : memref<2x2x8x8xbf16, #tpu.memory_space<vmem>>, vector<2x2x8x8xbf16>,
    %54 = arith.truncf %50 : vector<4x8x8xf32> to vector<4x8x8xbf16>
    "tpu.trace_start"() <{level = 10 : i32, message = "nqk,nkd->nqd"}> : () -> ()
    %cst_24 = arith.constant dense<0.000000e+00> : vector<4x8x16xf32>
    %55 = tpu.matmul %54, %39, %cst_24 {dimension_numbers = #tpu.dot_dimension_numbers<[2], [1], [1], [2], [0, 0, 0, 1, 1, 2], [0], [0]>} : vector<4x8x8xbf16>, vector<4x8x16xbf16>, vector<4x8x16xf32> -> vector<4x8x16xf32>
    "tpu.trace_stop"() : () -> ()
    %56 = arith.truncf %55 : vector<4x8x16xf32> to vector<4x8x16xbf16>
    %57 = vector.shape_cast %56 : vector<4x8x16xbf16> to vector<2x2x8x16xbf16>
    %58 = tpu.transpose %57, [0, 2, 1, 3] : vector<2x2x8x16xbf16> -> vector<2x8x2x16xbf16>
    %59 = vector.shape_cast %58 : vector<2x8x2x16xbf16> to vector<16x32xbf16>
    %c0_25 = arith.constant 0 : index
    %c0_26 = arith.constant 0 : index
    %60 = vector.load %arg8[%c0_25, %c0_26] : memref<32x32xbf16, #tpu.memory_space<vmem>>, vector<32x32xbf16>
    %cst_27 = arith.constant dense<0.000000e+00> : vector<16x32xf32>
    %61 = tpu.matmul %59, %60, %cst_27 {dimension_numbers = #tpu.dot_dimension_numbers<[1], [0], [0], [1], [0, 0, 1, 1], [], []>} : vector<16x32xbf16>, vector<32x32xbf16>, vector<16x32xf32> -> vector<16x32xf32>
    %c0_28 = arith.constant 0 : index
    %c0_29 = arith.constant 0 : index
    %62 = vector.load %arg9[%c0_28, %c0_29] : memref<1x32xbf16, #tpu.memory_space<vmem>>, vector<1x32xbf16>
    %63 = vector.shape_cast %62 : vector<1x32xbf16> to vector<32xbf16>
    %64 = arith.extf %63 : vector<32xbf16> to vector<32xf32>
    %65 = vector.shape_cast %64 : vector<32xf32> to vector<1x32xf32>
    %66 = vector.broadcast %65 : vector<1x32xf32> to vector<16x32xf32>
    %67 = arith.addf %61, %66 : vector<16x32xf32>
    %68 = arith.extf %1 : vector<16x32xbf16> to vector<16x32xf32>
    %69 = arith.addf %68, %67 : vector<16x32xf32>
    %c0_30 = arith.constant 0 : index
    %c0_31 = arith.constant 0 : index
    %70 = vector.load %arg10[%c0_30, %c0_31] : memref<1x32xbf16, #tpu.memory_space<vmem>>, vector<1x32xbf16>
    %71 = vector.shape_cast %70 : vector<1x32xbf16> to vector<32xbf16>
    %72 = arith.extf %71 : vector<32xbf16> to vector<32xf32>
    %c0_32 = arith.constant 0 : index
    %c0_33 = arith.constant 0 : index
    %73 = vector.load %arg11[%c0_32, %c0_33] : memref<1x32xbf16, #tpu.memory_space<vmem>>, vector<1x32xbf16>
    %74 = vector.shape_cast %73 : vector<1x32xbf16> to vector<32xbf16>
    %75 = arith.extf %74 : vector<32xbf16> to vector<32xf32>
    %cst_34 = arith.constant dense<0.000000e+00> : vector<16xf32>
    %76 = vector.multi_reduction <add>, %69, %cst_34 [1] : vector<16x32xf32> to vector<16xf32>
    %77 = vector.shape_cast %76 : vector<16xf32> to vector<16x1xf32>
    %cst_35 = arith.constant 3.200000e+01 : f32
    %78 = vector.broadcast %cst_35 : f32 to vector<16x1xf32>
    %79 = arith.divf %77, %78 : vector<16x1xf32>
    %80 = vector.broadcast %79 : vector<16x1xf32> to vector<16x32xf32>
    %81 = arith.subf %69, %80 : vector<16x32xf32>
    %82 = arith.mulf %81, %81 : vector<16x32xf32>
    %cst_36 = arith.constant dense<0.000000e+00> : vector<16xf32>
    %83 = vector.multi_reduction <add>, %82, %cst_36 [1] : vector<16x32xf32> to vector<16xf32>
    %84 = vector.shape_cast %83 : vector<16xf32> to vector<16x1xf32>
    %cst_37 = arith.constant 3.200000e+01 : f32
    %85 = vector.broadcast %cst_37 : f32 to vector<16x1xf32>
    %86 = arith.divf %84, %85 : vector<16x1xf32>
    %87 = vector.broadcast %79 : vector<16x1xf32> to vector<16x32xf32>
    %88 = arith.subf %69, %87 : vector<16x32xf32>
    %cst_38 = arith.constant 9.99999974E-6 : f32
    %89 = vector.broadcast %cst_38 : f32 to vector<16x1xf32>
    %90 = arith.addf %86, %89 : vector<16x1xf32>
    %91 = math.rsqrt %90 : vector<16x1xf32>
    %92 = vector.broadcast %91 : vector<16x1xf32> to vector<16x32xf32>
    %93 = arith.mulf %88, %92 : vector<16x32xf32>
    %94 = vector.shape_cast %72 : vector<32xf32> to vector<1x32xf32>
    %95 = vector.broadcast %94 : vector<1x32xf32> to vector<16x32xf32>
    %96 = arith.mulf %93, %95 : vector<16x32xf32>
    %97 = vector.shape_cast %75 : vector<32xf32> to vector<1x32xf32>
    %98 = vector.broadcast %97 : vector<1x32xf32> to vector<16x32xf32>
    %99 = arith.addf %96, %98 : vector<16x32xf32>
    %100 = arith.truncf %99 : vector<16x32xf32> to vector<16x32xbf16>
    %c0_39 = arith.constant 0 : index
    %c0_40 = arith.constant 0 : index
    %101 = vector.load %arg12[%c0_39, %c0_40] : memref<32x64xbf16, #tpu.memory_space<vmem>>, vector<32x64xbf16>
    %cst_41 = arith.constant dense<0.000000e+00> : vector<16x64xf32>
    %102 = tpu.matmul %100, %101, %cst_41 {dimension_numbers = #tpu.dot_dimension_numbers<[1], [0], [0], [1], [0, 0, 1, 1], [], []>} : vector<16x32xbf16>, vector<32x64xbf16>, vector<16x64xf32> -> vector<16x64xf32>
    %c0_42 = arith.constant 0 : index
    %c0_43 = arith.constant 0 : index
    %103 = vector.load %arg13[%c0_42, %c0_43] : memref<1x64xbf16, #tpu.memory_space<vmem>>, vector<1x64xbf16>
    %104 = vector.shape_cast %103 : vector<1x64xbf16> to vector<64xbf16>
    %105 = arith.extf %104 : vector<64xbf16> to vector<64xf32>
    %106 = vector.shape_cast %105 : vector<64xf32> to vector<1x64xf32>
    %107 = vector.broadcast %106 : vector<1x64xf32> to vector<16x64xf32>
    %108 = arith.addf %102, %107 : vector<16x64xf32>
    %109 = arith.truncf %108 : vector<16x64xf32> to vector<16x64xbf16>
    %110 = arith.mulf %109, %109 : vector<16x64xbf16>
    %111 = arith.mulf %109, %110 : vector<16x64xbf16>
    %cst_44 = arith.constant 4.467770e-02 : bf16
    %112 = vector.broadcast %cst_44 : bf16 to vector<16x64xbf16>
    %113 = arith.mulf %112, %111 : vector<16x64xbf16>
    %114 = arith.addf %109, %113 : vector<16x64xbf16>
    %cst_45 = arith.constant 7.968750e-01 : bf16
    %115 = vector.broadcast %cst_45 : bf16 to vector<16x64xbf16>
    %116 = arith.mulf %115, %114 : vector<16x64xbf16>
    %117 = math.tanh %116 : vector<16x64xbf16>
    %cst_46 = arith.constant 1.000000e+00 : bf16
    %118 = vector.broadcast %cst_46 : bf16 to vector<16x64xbf16>
    %119 = arith.addf %118, %117 : vector<16x64xbf16>
    %cst_47 = arith.constant 5.000000e-01 : bf16
    %120 = vector.broadcast %cst_47 : bf16 to vector<16x64xbf16>
    %121 = arith.mulf %120, %119 : vector<16x64xbf16>
    %122 = arith.mulf %109, %121 : vector<16x64xbf16>
    %c0_48 = arith.constant 0 : index
    %c0_49 = arith.constant 0 : index
    %123 = vector.load %arg14[%c0_48, %c0_49] : memref<64x32xbf16, #tpu.memory_space<vmem>>, vector<64x32xbf16>
    %cst_50 = arith.constant dense<0.000000e+00> : vector<16x32xf32>
    %124 = tpu.matmul %122, %123, %cst_50 {dimension_numbers = #tpu.dot_dimension_numbers<[1], [0], [0], [1], [0, 0, 1, 1], [], []>} : vector<16x64xbf16>, vector<64x32xbf16>, vector<16x32xf32> -> vector<16x32xf32>
    %c0_51 = arith.constant 0 : index
    %c0_52 = arith.constant 0 : index
    %125 = vector.load %arg15[%c0_51, %c0_52] : memref<1x32xbf16, #tpu.memory_space<vmem>>, vector<1x32xbf16>
    %126 = vector.shape_cast %125 : vector<1x32xbf16> to vector<32xbf16>
    %127 = arith.extf %126 : vector<32xbf16> to vector<32xf32>
    %128 = vector.shape_cast %127 : vector<32xf32> to vector<1x32xf32>
    %129 = vector.broadcast %128 : vector<1x32xf32> to vector<16x32xf32>
    %130 = arith.addf %124, %129 : vector<16x32xf32>
    %131 = arith.addf %99, %130 : vector<16x32xf32>
    %c0_53 = arith.constant 0 : index
    %c0_54 = arith.constant 0 : index
    %132 = vector.load %arg16[%c0_53, %c0_54] : memref<1x32xbf16, #tpu.memory_space<vmem>>, vector<1x32xbf16>
    %133 = vector.shape_cast %132 : vector<1x32xbf16> to vector<32xbf16>
    %134 = arith.extf %133 : vector<32xbf16> to vector<32xf32>
    %c0_55 = arith.constant 0 : index
    %c0_56 = arith.constant 0 : index
    %135 = vector.load %arg17[%c0_55, %c0_56] : memref<1x32xbf16, #tpu.memory_space<vmem>>, vector<1x32xbf16>
    %136 = vector.shape_cast %135 : vector<1x32xbf16> to vector<32xbf16>
    %137 = arith.extf %136 : vector<32xbf16> to vector<32xf32>
    %cst_57 = arith.constant dense<0.000000e+00> : vector<16xf32>
    %138 = vector.multi_reduction <add>, %131, %cst_57 [1] : vector<16x32xf32> to vector<16xf32>
    %139 = vector.shape_cast %138 : vector<16xf32> to vector<16x1xf32>
    %cst_58 = arith.constant 3.200000e+01 : f32
    %140 = vector.broadcast %cst_58 : f32 to vector<16x1xf32>
    %141 = arith.divf %139, %140 : vector<16x1xf32>
    %142 = vector.broadcast %141 : vector<16x1xf32> to vector<16x32xf32>
    %143 = arith.subf %131, %142 : vector<16x32xf32>
    %144 = arith.mulf %143, %143 : vector<16x32xf32>
    %cst_59 = arith.constant dense<0.000000e+00> : vector<16xf32>
    %145 = vector.multi_reduction <add>, %144, %cst_59 [1] : vector<16x32xf32> to vector<16xf32>
    %146 = vector.shape_cast %145 : vector<16xf32> to vector<16x1xf32>
    %cst_60 = arith.constant 3.200000e+01 : f32
    %147 = vector.broadcast %cst_60 : f32 to vector<16x1xf32>
    %148 = arith.divf %146, %147 : vector<16x1xf32>
    %149 = vector.broadcast %141 : vector<16x1xf32> to vector<16x32xf32>
    %150 = arith.subf %131, %149 : vector<16x32xf32>
    %cst_61 = arith.constant 9.99999974E-6 : f32
    %151 = vector.broadcast %cst_61 : f32 to vector<16x1xf32>
    %152 = arith.addf %148, %151 : vector<16x1xf32>
    %153 = math.rsqrt %152 : vector<16x1xf32>
    %154 = vector.broadcast %153 : vector<16x1xf32> to vector<16x32xf32>
    %155 = arith.mulf %150, %154 : vector<16x32xf32>
    %156 = vector.shape_cast %134 : vector<32xf32> to vector<1x32xf32>
    %157 = vector.broadcast %156 : vector<1x32xf32> to vector<16x32xf32>
    %158 = arith.mulf %155, %157 : vector<16x32xf32>
    %159 = vector.shape_cast %137 : vector<32xf32> to vector<1x32xf32>
    %160 = vector.broadcast %159 : vector<1x32xf32> to vector<16x32xf32>
    %161 = arith.addf %158, %160 : vector<16x32xf32>
    %162 = vector.shape_cast %161 : vector<16x32xf32> to vector<2x8x32xf32>
    %163 = arith.truncf %162 : vector<2x8x32xf32> to vector<2x8x32xbf16>
    %c0_62 = arith.constant 0 : index
    %c0_63 = arith.constant 0 : index
    %c0_64 = arith.constant 0 : index
    %164 = vector.load %arg18[%c0_62, %c0_63, %c0_64] : memref<2x8x32xbf16, #tpu.memory_space<vmem>>, vector<2x8x32xbf16>
    tpu.vector_store %arg18[%c0_62, %c0_63, %c0_64], %163 {strides = array<i32>} : memref<2x8x32xbf16, #tpu.memory_space<vmem>>, vector<2x8x32xbf16>,
    return
  }
  func.func @transform_0(%arg0: i32) -> (i32, i32, i32) {
    %c0_i32 = arith.constant 0 : i32
    %c0_i32_0 = arith.constant 0 : i32
    %c0_i32_1 = arith.constant 0 : i32
    return %arg0, %c0_i32, %c0_i32_0 : i32, i32, i32
  }
  func.func @transform_1(%arg0: i32) -> (i32, i32) {
    %c0_i32 = arith.constant 0 : i32
    %c0_i32_0 = arith.constant 0 : i32
    %c0_i32_1 = arith.constant 0 : i32
    return %c0_i32, %c0_i32_0 : i32, i32
  }
  func.func @transform_2(%arg0: i32) -> (i32, i32) {
    %c0_i32 = arith.constant 0 : i32
    %c0_i32_0 = arith.constant 0 : i32
    %c0_i32_1 = arith.constant 0 : i32
    return %c0_i32, %c0_i32_0 : i32, i32
  }
  func.func @transform_3(%arg0: i32) -> (i32, i32) {
    %c0_i32 = arith.constant 0 : i32
    %c0_i32_0 = arith.constant 0 : i32
    %c0_i32_1 = arith.constant 0 : i32
    return %c0_i32, %c0_i32_0 : i32, i32
  }
  func.func @transform_4(%arg0: i32) -> (i32, i32) {
    %c0_i32 = arith.constant 0 : i32
    %c0_i32_0 = arith.constant 0 : i32
    %c0_i32_1 = arith.constant 0 : i32
    return %c0_i32, %c0_i32_0 : i32, i32
  }
  func.func @transform_5(%arg0: i32) -> (i32, i32) {
    %c0_i32 = arith.constant 0 : i32
    %c0_i32_0 = arith.constant 0 : i32
    %c0_i32_1 = arith.constant 0 : i32
    return %c0_i32, %c0_i32_0 : i32, i32
  }
  func.func @transform_6(%arg0: i32) -> (i32, i32) {
    %c0_i32 = arith.constant 0 : i32
    %c0_i32_0 = arith.constant 0 : i32
    %c0_i32_1 = arith.constant 0 : i32
    return %c0_i32, %c0_i32_0 : i32, i32
  }
  func.func @transform_7(%arg0: i32) -> (i32, i32) {
    %c0_i32 = arith.constant 0 : i32
    %c0_i32_0 = arith.constant 0 : i32
    %c0_i32_1 = arith.constant 0 : i32
    return %c0_i32, %c0_i32_0 : i32, i32
  }
  func.func @transform_8(%arg0: i32) -> (i32, i32) {
    %c0_i32 = arith.constant 0 : i32
    %c0_i32_0 = arith.constant 0 : i32
    %c0_i32_1 = arith.constant 0 : i32
    return %c0_i32, %c0_i32_0 : i32, i32
  }
  func.func @transform_9(%arg0: i32) -> (i32, i32) {
    %c0_i32 = arith.constant 0 : i32
    %c0_i32_0 = arith.constant 0 : i32
    %c0_i32_1 = arith.constant 0 : i32
    return %c0_i32, %c0_i32_0 : i32, i32
  }
  func.func @transform_10(%arg0: i32) -> (i32, i32) {
    %c0_i32 = arith.constant 0 : i32
    %c0_i32_0 = arith.constant 0 : i32
    %c0_i32_1 = arith.constant 0 : i32
    return %c0_i32, %c0_i32_0 : i32, i32
  }
  func.func @transform_11(%arg0: i32) -> (i32, i32) {
    %c0_i32 = arith.constant 0 : i32
    %c0_i32_0 = arith.constant 0 : i32
    %c0_i32_1 = arith.constant 0 : i32
    return %c0_i32, %c0_i32_0 : i32, i32
  }
  func.func @transform_12(%arg0: i32) -> (i32, i32) {
    %c0_i32 = arith.constant 0 : i32
    %c0_i32_0 = arith.constant 0 : i32
    %c0_i32_1 = arith.constant 0 : i32
    return %c0_i32, %c0_i32_0 : i32, i32
  }
  func.func @transform_13(%arg0: i32) -> (i32, i32) {
    %c0_i32 = arith.constant 0 : i32
    %c0_i32_0 = arith.constant 0 : i32
    %c0_i32_1 = arith.constant 0 : i32
    return %c0_i32, %c0_i32_0 : i32, i32
  }
  func.func @transform_14(%arg0: i32) -> (i32, i32) {
    %c0_i32 = arith.constant 0 : i32
    %c0_i32_0 = arith.constant 0 : i32
    %c0_i32_1 = arith.constant 0 : i32
    return %c0_i32, %c0_i32_0 : i32, i32
  }
  func.func @transform_15(%arg0: i32) -> (i32, i32) {
    %c0_i32 = arith.constant 0 : i32
    %c0_i32_0 = arith.constant 0 : i32
    %c0_i32_1 = arith.constant 0 : i32
    return %c0_i32, %c0_i32_0 : i32, i32
  }
  func.func @transform_16(%arg0: i32) -> (i32, i32) {
    %c0_i32 = arith.constant 0 : i32
    %c0_i32_0 = arith.constant 0 : i32
    %c0_i32_1 = arith.constant 0 : i32
    return %c0_i32, %c0_i32_0 : i32, i32
  }
  func.func @transform_17(%arg0: i32) -> (i32, i32, i32) {
    %c0_i32 = arith.constant 0 : i32
    %c0_i32_0 = arith.constant 0 : i32
    %c0_i32_1 = arith.constant 0 : i32
    return %arg0, %c0_i32, %c0_i32_0 : i32, i32, i32
  }
  func.func @transform_18(%arg0: i32) -> (i32, i32, i32, i32) {
    %c0_i32 = arith.constant 0 : i32
    %c0_i32_0 = arith.constant 0 : i32
    %c0_i32_1 = arith.constant 0 : i32
    %c0_i32_2 = arith.constant 0 : i32
    return %arg0, %c0_i32, %c0_i32_0, %c0_i32_1 : i32, i32, i32, i32
  }
}

</mosaic_0001>

<bundles_post_ra>
// kernel: tpu_custom_call.1
= control target key start
LH: loop header
LB: loop body
LE: loop exit
PB: predicated region body
PF: predicated region fallthrough
CT: control target
= control target key end

     0   :  { %s2821_s0 = inlined_call_operand.hbm [shape: bf16[2,8,32], index: 0, kind: input, shape index: {}]   ;;  %s2822_s1 = inlined_call_operand.vmem [shape: bf16[32,32], index: 1, kind: input, shape index: {}]   ;;  %s2823_s2 = inlined_call_operand.vmem [shape: bf16[32,32], index: 2, kind: input, shape index: {}]   ;;  %s2824_s3 = inlined_call_operand.vmem [shape: bf16[32,32], index: 3, kind: input, shape index: {}]   ;;  %s2825_s4 = inlined_call_operand.vmem [shape: bf16[1,32], index: 4, kind: input, shape index: {}]   ;;  %s2826_s5 = inlined_call_operand.vmem [shape: bf16[1,32], index: 5, kind: input, shape index: {}]   ;;  %s2827_s6 = inlined_call_operand.vmem [shape: bf16[1,32], index: 6, kind: input, shape index: {}]   ;;  %s2828_s7 = inlined_call_operand.hbm [shape: bf16[32,32], index: 7, kind: input, shape index: {}]   ;;  %s2829_s8 = inlined_call_operand.vmem [shape: bf16[1,32], index: 8, kind: input, shape index: {}]   ;;  %s2830_s9 = inlined_call_operand.vmem [shape: bf16[1,32], index: 9, kind: input, shape index: {}]   ;;  %s2831_s10 = inlined_call_operand.vmem [shape: bf16[1,32], index: 10, kind: input, shape index: {}]   ;;  %s2832_s11 = inlined_call_operand.hbm [shape: bf16[32,64], index: 11, kind: input, shape index: {}]   ;;  %s2833_s12 = inlined_call_operand.vmem [shape: bf16[1,64], index: 12, kind: input, shape index: {}]   ;;  %s2834_s13 = inlined_call_operand.vmem [shape: bf16[64,32], index: 13, kind: input, shape index: {}]   ;;  %s2835_s14 = inlined_call_operand.vmem [shape: bf16[1,32], index: 14, kind: input, shape index: {}]   ;;  %s2836_s15 = inlined_call_operand.vmem [shape: bf16[1,32], index: 15, kind: input, shape index: {}]   ;;  %s2837_s16 = inlined_call_operand.vmem [shape: bf16[1,32], index: 16, kind: input, shape index: {}]   ;;  %s2838_s17 = inlined_call_operand.hbm [shape: bf16[2,8,32], index: 17, kind: output, shape index: {0}]   ;;  %s2839_s18 = inlined_call_operand.hbm [shape: bf16[2,2,8,8], index: 18, kind: output, shape index: {1}]  }
   0x1   :  { %2842 = sst [smem:[#allocation15_spill]] %s2821_s0 }
   0x2   :  { %2843 = sst [smem:[#allocation16_spill]] %s2822_s1 }
   0x3   :  { %2844 = sst [smem:[#allocation17_spill]] %s2823_s2 }
   0x4   :  { %24 = vsyncpa [#allocation3], 0 }
   0x5   :  { %25 = vsyncpa [#allocation6], 0 }
   0x6   :  { %26 = vsyncpa [#allocation4], 0 }
   0x7   :  { %27 = vsyncpa [#allocation10], 0  ;;  %s2361_s27 = smov [#allocation5]   ;;  %s2362_s29 = smov [#allocation2]  }
   0x8   :  { %s57_s28 = sshll.u32 %s2361_s27, 4  ;;  %s33_s30 = sshll.u32 %s2362_s29, 4  ;;  %s58_s28 = int_to_ptr.vmem [resolvable:$true] %s57_s28  ;;  %s34_s30 = int_to_ptr.vmem [resolvable:$true] %s33_s30 }
   0x9   :  { %s2261_s0 = scalar_lea.vmem %s58_s28, 256  ;;  %p2266_p1 = scmp.lt.s32.totalorder %s58_s28, %s58_s28 }
   0xa   :  { %p2262_p0 = scmp.ne.s32.totalorder %s58_s28, %s2261_s0  ;;  %p2267_p2 = scmp.lt.s32.totalorder %s2261_s0, %s2261_s0 }
   0xc   :  { %p2268_p3 = por %p2267_p2, %p2266_p1 }
   0xe   :  { %p2269_p4 = pnand %p2268_p3, %p2262_p0 }
  0x10   :  { %2272 = shalt.err (!%p2269_p4)
}
  0x11   :  { %s2363_s19 = smov 64   ;;  %s2364_s1 = smov 4  }
  0x12   :  { %63 = dma.hbm_to_vmem [thread:$0]  %s2828_s7, 256, %s58_s28, [#allocation6], %s2363_s19, %s2363_s19, %s2364_s1  }
  0x13   :  { %s2281_s22 = scalar_lea.vmem %s34_s30, 128  ;;  %p2286_p6 = scmp.lt.s32.totalorder %s34_s30, %s34_s30 }
  0x14   :  { %p2282_p5 = scmp.ne.s32.totalorder %s34_s30, %s2281_s22  ;;  %p2287_p7 = scmp.lt.s32.totalorder %s2281_s22, %s2281_s22 }
  0x16   :  { %p2288_p8 = por %p2287_p7, %p2286_p6 }
  0x18   :  { %p2289_p9 = pnand %p2288_p8, %p2282_p5 }
  0x1a   :  { %2292 = shalt.err (!%p2289_p9)
}
  0x1b   :  { %s2845_s24 = sld [smem:[#allocation15_spill]]  ;;  %s2365_s25 = smov [#allocation7]  }
  0x1c   :  { %s75_s26 = sshll.u32 %s2365_s25, 4  ;;  %s76_s26 = int_to_ptr.vmem [resolvable:$true] %s75_s26 }
  0x1d   :  { %s2301_s27 = scalar_lea.vmem %s76_s26, 256  ;;  %p2306_p11 = scmp.lt.s32.totalorder %s76_s26, %s76_s26 }
  0x1e   :  { %p2302_p10 = scmp.ne.s32.totalorder %s76_s26, %s2301_s27  ;;  %p2307_p12 = scmp.lt.s32.totalorder %s2301_s27, %s2301_s27 }
  0x20   :  { %p2308_p13 = por %p2307_p12, %p2306_p11 }
  0x21   :  { %39 = dma.hbm_to_vmem [thread:$0]  %s2845_s24, 128, %s34_s30, [#allocation3], %s2363_s19, %s2363_s19, %s2364_s1  }
  0x22   :  { %p2309_p0 = pnand %p2308_p13, %p2302_p10 }
  0x24   :  { %2312 = shalt.err (!%p2309_p0)
}
  0x25   :  { %81 = dma.hbm_to_vmem [thread:$0]  %s2832_s11, 256, %s76_s26, [#allocation6], %s2363_s19, %s2363_s19, %s2364_s1  }
  0x26   :  { %2353 = dma.done.wait [#allocation3], 128  }
  0x27   :  { %2354 = vsyncadd [#allocation3], 4294967168 }
  0x28   :  { %2355 = dma.done.wait [#allocation6], 512  }
  0x29   :  { %2356 = vsyncadd [#allocation6], 4294966784  ;;  %v2366_v0 = vmov 0.0   ;;  %vm2367_vm0 = vmmov 0   ;;  %s2846_s0 = sld [smem:[#allocation17_spill]]  ;;  %v2508_v5 = vld [vmem:[#allocation2] sm:$0xff]   ;;  %v114_v6 = vlaneseq }
  0x2a   :  { %2105 = vmatprep.subr.bf16.mxu1 %v2366_v0  ;;  %2097 = vmatprep.subr.bf16.mxu0 %v2366_v0  ;;  %s2847_s21 = sld [smem:[#allocation16_spill]]  ;;  %vm135_vm1 = vcmask 261120   ;;  %v112_v7 = vld [vmem:[%s2825_s4] sm:$0x1]  ;;  %s2368_s4 = smov 112   ;;  %v2216_v31 = vld [vmem:[%s2824_s3 + $0x8] sm:$0xff]  }
  0x2b   :  { %2109 = vmatprep.mubr.msk.bf16.mxu1 %vm2367_vm0, %v2366_v0  ;;  %2101 = vmatprep.mubr.msk.bf16.mxu0 %vm2367_vm0, %v2366_v0  ;;  %v115_v8 = vshrl.u32 %v114_v6, 7  ;;  %v186_v9 = vld [vmem:[%s2826_s5] sm:$0x1]  ;;  %v113_v10 = vunpack.c.l.bf16 %v112_v7  ;;  %v2369_v33 = vmov 1983009808   ;;  %v2371_v40 = vmov 0  }
  0x2c   :  { %v187_v12 = vunpack.c.l.bf16 %v186_v9  ;;  %v2217_v32 = vld [vmem:[%s2824_s3] sm:$0xff]   ;;  %v328_v34 = vunpack.c.l.s4 %v2369_v33  ;;  %v2370_v36 = vmov 1934713408   ;;  %v2548_v41 = vpack.i.b16 %v2371_v40, %v2371_v40 }
  0x2d   :  { %v2526_v11 = vsub.s32 0, %v115_v8  ;;  %v343_v37 = vunpack.c.l.s4 %v2370_v36  ;;  %vm968_vm2 = vcmask 130048   ;;  %vm1153_vm3 = vcmask 64512  }
  0x2e   :  { %v329_v35 = vunpack.c.0.s8 %v328_v34  ;;  %vm1202_vm4 = vcmask 60416   ;;  %vm1210_vm5 = vcmask 1043456   ;;  %vm1892_vm6 = vcmask 523264  }
  0x2f   :  { %v2211_v1 = vld [vmem:[%s2846_s0 + $0x8] sm:$0xff]   ;;  %v2213_v3 = vld [vmem:[%s2846_s0] sm:$0xff]   ;;  %v117_v13 = vrot.slane %v113_v10, %v2526_v11  ;;  %v191_v15 = vrot.slane %v187_v12, %v2526_v11  ;;  %v344_v39 = vunpack.c.0.s8 %v343_v37 }
  0x30   :  { %v2212_v2 = vld [vmem:[%s2847_s21 + $0x8] sm:$0xff]   ;;  %2106 = vmatpush3.bf16.msra.mxu1 %v2211_v1  ;;  %v2214_v4 = vld [vmem:[%s2847_s21] sm:$0xff]   ;;  %v2544_v38 = vsub.s32 %v329_v35, %v115_v8 }
  0x31   :  { %2098 = vmatpush3.bf16.msra.mxu0 %v2212_v2  ;;  %2107 = vmatprep.subr.bf16.mxu1 %v2366_v0  ;;  %v2550_v46 = vsub.s32 %v344_v39, %v115_v8 }
  0x32   :  { %2099 = vmatprep.subr.bf16.mxu0 %v2366_v0 }
  0x34   :  { %2108 = vmatpush3.bf16.msra.mxu1 %v2213_v3 }
  0x35   :  { %2100 = vmatpush3.bf16.msra.mxu0 %v2214_v4  ;;  %2121 = vmatprep.subr.bf16.mxu1 %v2366_v0 }
  0x36   :  { %2113 = vmatprep.subr.bf16.mxu0 %v2366_v0 }
  0x37   :  { %2110 = vmatmul.mubr.msk.bf16.vlgmr.msra.gmra.mxu1 %vm135_vm1, %v2508_v5 }
  0x38   :  { %2102 = vmatmul.mubr.msk.bf16.vlgmr.msra.gmra.mxu0 %vm135_vm1, %v2508_v5  ;;  %2123 = vmatprep.mubr.msk.bf16.mxu1 %vm2367_vm0, %v2366_v0 }
  0x39   :  { %2117 = vmatprep.mubr.msk.bf16.mxu0 %vm2367_vm0, %v2366_v0  ;;  %2114 = vmatpush3.bf16.msra.mxu0 %v2216_v31 }
  0x3a   :  { %2115 = vmatprep.subr.bf16.mxu0 %v2366_v0 }
  0x3d   :  { %2116 = vmatpush3.bf16.msra.mxu0 %v2217_v32 }
  0x3e   :  { %2127 = vmatprep.subr.bf16.mxu0 %v2366_v0 }
  0x40   :  { %2118 = vmatmul.mubr.msk.bf16.vlgmr.msra.gmra.mxu0 %vm135_vm1, %v2508_v5 }
  0x41   :  { %2129 = vmatprep.mubr.msk.bf16.mxu0 %vm2367_vm0, %v2366_v0 }
  0xf7   :  { %v238_v14 = vpop.f32.mrf.mxu1 }
  0xf8   :  { %v173_v16 = vpop.f32.mrf.mxu0  ;;  %v239_v21 = vadd.f32 %v238_v14, %v191_v15 }
  0xf9   :  { %v174_v17 = vadd.f32 %v173_v16, %v117_v13  ;;  %v2111_v18 = vpop.f32.mrf.mxu1 }
  0xfa   :  { %v2103_v19 = vpop.f32.mrf.mxu0 }
  0xfb   :  { %v241_v20 = vpop.f32.mrf.mxu1  ;;  %v180_v24 = vmul.f32 0.25, %v174_v17 }
  0xfc   :  { %v242_v22 = vadd.f32 %v241_v20, %v191_v15  ;;  %v176_v23 = vpop.f32.mrf.mxu0 }
  0xfd   :  { %v177_v25 = vadd.f32 %v176_v23, %v117_v13  ;;  %v2112_v26 = vpop.f32.mrf.mxu1 }
  0xfe   :  { %v532_v27 = vpack.c.bf16 %v242_v22, %v239_v21  ;;  %v2104_v28 = vpop.f32.mrf.mxu0 }
  0xff   :  { %v181_v29 = vmul.f32 0.25, %v177_v25 }
 0x100   :  { %534 = vrot.lane.b32.xlu0 %v532_v27, %s2368_s4  ;;  %v540_v44 = vshrl.u32 %v532_v27, 16 }
 0x101   :  { %v308_v30 = vpack.c.bf16 %v181_v29, %v180_v24 }
 0x103   :  { %v316_v56 = vshrl.u32 %v308_v30, 16 }
 0x104   :  { %310 = vrot.lane.b32.xlu0 %v308_v30, %s2368_s4 }
 0x172   :  { %v535_v42 = vpop.permute.xlu0 %534 }
 0x173   :  { %v538_v43 = vpack.i.b16 %v535_v42, %v532_v27  ;;  %v541_v45 = vshrl.u32 %v535_v42, 16 }
 0x175   :  { %v542_v47 = vpack.i.b16 %v541_v45, %v540_v44  ;;  %v544_v48 = vcombine.high %v538_v43, %v2548_v41  ;;  %v551_v49 = vrot.slane %v538_v43, %v2544_v38 }
 0x176   :  { %v311_v50 = vpop.permute.xlu0 %310 }
 0x177   :  { %v558_v51 = vrot.slane %v544_v48, %v2544_v38  ;;  %v559_v52 = vcombine.high %v551_v49, %v2371_v40  ;;  %v593_v53 = vcombine.high %v542_v47, %v2548_v41  ;;  %v600_v54 = vrot.slane %v542_v47, %v2544_v38 }
 0x178   :  { %v314_v55 = vpack.i.b16 %v311_v50, %v308_v30  ;;  %v317_v57 = vshrl.u32 %v311_v50, 16  ;;  %v566_v58 = vrot.slane %v551_v49, %v2550_v46 }
 0x179   :  { %v573_v59 = vrot.slane %v559_v52, %v2550_v46  ;;  %v574_v60 = vcombine.high %v558_v51, %v2371_v40  ;;  %v607_v61 = vrot.slane %v593_v53, %v2544_v38  ;;  %v608_v62 = vcombine.high %v600_v54, %v2371_v40 }
 0x17a   :  { %v615_v63 = vrot.slane %v600_v54, %v2550_v46  ;;  %v326_v1 = vcombine.high %v314_v55, %v2548_v41  ;;  %v318_v6 = vpack.i.b16 %v317_v57, %v316_v56  ;;  %v333_v9 = vrot.slane %v314_v55, %v2544_v38 }
 0x17b   :  { %v588_v2 = vrot.slane %v574_v60, %v2550_v46  ;;  %v623_v3 = vcombine.high %v607_v61, %v2371_v40  ;;  %v642_v4 = vcombine.low %v566_v58, %v573_v59  ;;  %v622_v7 = vrot.slane %v608_v62, %v2550_v46 }
 0x17c   :  { %v2034_v8 = vcombine.high %v566_v58, %v573_v59  ;;  %v340_v10 = vrot.slane %v326_v1, %v2544_v38  ;;  %v581_v12 = vrot.slane %v558_v51, %v2550_v46  ;;  %v341_v17 = vcombine.high %v333_v9, %v2371_v40 }
 0x17d   :  { %v649_v13 = vrot.slane %v642_v4, %v2544_v38  ;;  %v666_v15 = vcombine.low %v615_v63, %v622_v7  ;;  %v2035_v16 = vcombine.high %v615_v63, %v622_v7  ;;  %v630_v18 = vrot.slane %v607_v61, %v2550_v46 }
 0x17e   :  { %v657_v14 = vrot.slane %v2034_v8, %v2544_v38  ;;  %v637_v19 = vrot.slane %v623_v3, %v2550_v46  ;;  %v690_v20 = vcombine.low %v581_v12, %v588_v2  ;;  %v356_v21 = vcombine.high %v340_v10, %v2371_v40 }
 0x17f   :  { %v348_v22 = vrot.slane %v333_v9, %v2550_v46  ;;  %v355_v23 = vrot.slane %v341_v17, %v2550_v46  ;;  %v375_v24 = vcombine.high %v318_v6, %v2548_v41  ;;  %v382_v25 = vrot.slane %v318_v6, %v2544_v38 }
 0x180   :  { %v370_v26 = vrot.slane %v356_v21, %v2550_v46  ;;  %v658_v27 = vcombine.low %v649_v13, %v657_v14  ;;  %v673_v28 = vrot.slane %v666_v15, %v2544_v38  ;;  %v681_v29 = vrot.slane %v2035_v16, %v2544_v38 }
 0x181   :  { %v2036_v30 = vcombine.high %v581_v12, %v588_v2  ;;  %v389_v31 = vrot.slane %v375_v24, %v2544_v38  ;;  %v390_v32 = vcombine.high %v382_v25, %v2371_v40  ;;  %v424_v33 = vcombine.low %v348_v22, %v355_v23 }
 0x182   :  { %v714_v34 = vcombine.low %v630_v18, %v637_v19  ;;  %v2037_v35 = vcombine.high %v630_v18, %v637_v19  ;;  %v363_v36 = vrot.slane %v340_v10, %v2550_v46  ;;  %v2030_v37 = vcombine.high %v348_v22, %v355_v23 }
 0x183   :  { %v397_v39 = vrot.slane %v382_v25, %v2550_v46  ;;  %v404_v42 = vrot.slane %v390_v32, %v2550_v46  ;;  %v405_v43 = vcombine.high %v389_v31, %v2371_v40  ;;  %v431_v44 = vrot.slane %v424_v33, %v2544_v38 }
 0x184   :  { %v439_v45 = vrot.slane %v2030_v37, %v2544_v38  ;;  %v472_v47 = vcombine.low %v363_v36, %v370_v26  ;;  %v665_v48 = vrot.slane %v658_v27, %v2550_v46  ;;  %v682_v49 = vcombine.low %v673_v28, %v681_v29 }
 0x185   :  { %v412_v50 = vrot.slane %v389_v31, %v2550_v46  ;;  %v419_v51 = vrot.slane %v405_v43, %v2550_v46  ;;  %v448_v52 = vcombine.low %v397_v39, %v404_v42  ;;  %v2031_v53 = vcombine.high %v397_v39, %v404_v42  ;;  %v249_v42 = vld [vmem:[%s2827_s6] sm:$0x1]  ;;  %s2372_s6 = smov 16  }
 0x186   :  { %v440_v54 = vcombine.low %v431_v44, %v439_v45  ;;  %v2032_v55 = vcombine.high %v363_v36, %v370_v26  ;;  %v689_v56 = vrot.slane %v682_v49, %v2550_v46  ;;  %v697_v57 = vrot.slane %v690_v20, %v2544_v38  ;;  %v301_v45 = vpop.f32.mrf.mxu0 }
 0x187   :  { %v455_v58 = vrot.slane %v448_v52, %v2544_v38  ;;  %v463_v59 = vrot.slane %v2031_v53, %v2544_v38  ;;  %v496_v60 = vcombine.low %v412_v50, %v419_v51  ;;  %v2033_v61 = vcombine.high %v412_v50, %v419_v51 }
 0x188   :  { %v740_v62 = vpack.i.b16 %v689_v56, %v665_v48  ;;  %v741_v63 = vshrl.u32 %v665_v48, 16  ;;  %v742_v1 = vshrl.u32 %v689_v56, 16  ;;  %v705_v2 = vrot.slane %v2036_v30, %v2544_v38 }
 0x189   :  { %v464_v3 = vcombine.low %v455_v58, %v463_v59  ;;  %v503_v4 = vrot.slane %v496_v60, %v2544_v38  ;;  %v511_v6 = vrot.slane %v2033_v61, %v2544_v38  ;;  %v721_v7 = vrot.slane %v714_v34, %v2544_v38 }
 0x18a   :  { %v973_v8 = vsel %vm968_vm2, %v740_v62, 0  ;;  %v743_v9 = vpack.i.b16 %v742_v1, %v741_v63  ;;  %v706_v10 = vcombine.low %v697_v57, %v705_v2  ;;  %v729_v12 = vrot.slane %v2037_v35, %v2544_v38 }
 0x18b   :  { %v447_v13 = vrot.slane %v440_v54, %v2550_v46  ;;  %v479_v14 = vrot.slane %v472_v47, %v2544_v38  ;;  %v487_v15 = vrot.slane %v2032_v55, %v2544_v38  ;;  %2122 = vmatpush3.bf16.xpose.msra.mxu1 %v973_v8  ;;  %v471_v16 = vrot.slane %v464_v3, %v2550_v46  ;;  %v2119_v47 = vpop.f32.mrf.mxu0 }
 0x18c   :  { %v1019_v17 = vsel %vm968_vm2, %v743_v9, 0  ;;  %2133 = vmatprep.subr.bf16.mxu1 %v2366_v0  ;;  %v713_v18 = vrot.slane %v706_v10, %v2550_v46  ;;  %v730_v19 = vcombine.low %v721_v7, %v729_v12  ;;  %v512_v20 = vcombine.low %v503_v4, %v511_v6 }
 0x18d   :  { %2128 = vmatpush3.bf16.xpose.msra.mxu0 %v1019_v17  ;;  %v524_v22 = vshrl.u32 %v471_v16, 16  ;;  %v488_v23 = vcombine.low %v479_v14, %v487_v15  ;;  %v523_v24 = vshrl.u32 %v447_v13, 16  ;;  %v522_v25 = vpack.i.b16 %v471_v16, %v447_v13  ;;  %v304_v49 = vpop.f32.mrf.mxu0 }
 0x18e   :  { %v737_v21 = vrot.slane %v730_v19, %v2550_v46  ;;  %2139 = vmatprep.subr.bf16.mxu0 %v2366_v0  ;;  %v747_v27 = vshrl.u32 %v713_v18, 16  ;;  %v519_v32 = vrot.slane %v512_v20, %v2550_v46  ;;  %v250_v43 = vunpack.c.l.bf16 %v249_v42 }
 0x18f   :  { %v525_v30 = vpack.i.b16 %v524_v22, %v523_v24  ;;  %v495_v34 = vrot.slane %v488_v23, %v2550_v46  ;;  %v2120_v51 = vpop.f32.mrf.mxu0 }
 0x190   :  { %v746_v26 = vpack.i.b16 %v737_v21, %v713_v18  ;;  %v748_v28 = vshrl.u32 %v737_v21, 16  ;;  %v530_v35 = vshrl.u32 %v519_v32, 16  ;;  %v254_v44 = vrot.slane %v250_v43, %v2526_v11 }
 0x191   :  { %v528_v36 = vpack.i.b16 %v519_v32, %v495_v34  ;;  %v529_v37 = vshrl.u32 %v495_v34, 16 }
 0x192   :  { %2124 = vmatmul.mubr.msk.bf16.vlgmr.msra.gmra.mxu1 %vm968_vm2, %v522_v25  ;;  %v1065_v29 = vsel %vm968_vm2, %v746_v26, 0  ;;  %v749_v31 = vpack.i.b16 %v748_v28, %v747_v27  ;;  %v302_v48 = vadd.f32 %v301_v45, %v254_v44  ;;  %v305_v50 = vadd.f32 %v304_v49, %v254_v44 }
 0x193   :  { %2134 = vmatpush3.bf16.xpose.msra.mxu1 %v1065_v29  ;;  %2135 = vmatprep.mubr.msk.bf16.mxu1 %vm2367_vm0, %v2366_v0  ;;  %v531_v39 = vpack.i.b16 %v530_v35, %v529_v37 }
 0x194   :  { %2130 = vmatmul.mubr.msk.bf16.vlgmr.msra.gmra.mxu0 %vm968_vm2, %v525_v30  ;;  %v1111_v33 = vsel %vm968_vm2, %v749_v31, 0  ;;  %2145 = vmatprep.subr.bf16.mxu1 %v2366_v0  ;;  %v2636_v52 = vpack.c.bf16 %v305_v50, %v302_v48 }
 0x195   :  { %2140 = vmatpush3.bf16.xpose.msra.mxu0 %v1111_v33  ;;  %2141 = vmatprep.mubr.msk.bf16.mxu0 %vm2367_vm0, %v2366_v0 }
 0x196   :  { %2151 = vmatprep.subr.bf16.mxu0 %v2366_v0  ;;  %v758_v35 = vshrl.u32 %v2636_v52, 16 }
 0x19a   :  { %2136 = vmatmul.mubr.msk.bf16.vlgmr.msra.gmra.mxu1 %vm968_vm2, %v528_v36 }
 0x19b   :  { %2147 = vmatprep.mubr.msk.bf16.mxu1 %vm2367_vm0, %v2366_v0 }
 0x19c   :  { %2142 = vmatmul.mubr.msk.bf16.vlgmr.msra.gmra.mxu0 %vm968_vm2, %v531_v39 }
 0x19d   :  { %2153 = vmatprep.mubr.msk.bf16.mxu0 %vm2367_vm0, %v2366_v0 }
 0x252   :  { %v1009_v53 = vpop.f32.mrf.mxu1 }
 0x253   :  { %v1154_v54 = vsel %vm1153_vm3, %v1009_v53, -inf }
 0x254   :  { %1155 = vmax.xlane.f32.xlu1 %v1154_v54  ;;  %v2125_v55 = vpop.f32.mrf.mxu1  ;;  %v1055_v56 = vpop.f32.mrf.mxu0 }
 0x255   :  { %v1157_v59 = vsel %vm1153_vm3, %v1055_v56, -inf }
 0x256   :  { %v1012_v57 = vpop.f32.mrf.mxu1  ;;  %v2131_v58 = vpop.f32.mrf.mxu0 }
 0x258   :  { %v2126_v60 = vpop.f32.mrf.mxu1  ;;  %1158 = vmax.xlane.f32.xlu1 %v1157_v59  ;;  %v1058_v61 = vpop.f32.mrf.mxu0 }
 0x25a   :  { %v2132_v62 = vpop.f32.mrf.mxu0  ;;  %v1101_v63 = vpop.f32.mrf.mxu1 }
 0x25b   :  { %v1160_v1 = vsel %vm1153_vm3, %v1101_v63, -inf }
 0x25c   :  { %1161 = vmax.xlane.f32.xlu0 %v1160_v1  ;;  %v2137_v2 = vpop.f32.mrf.mxu1  ;;  %v1147_v3 = vpop.f32.mrf.mxu0 }
 0x25d   :  { %v1163_v4 = vsel %vm1153_vm3, %v1147_v3, -inf }
 0x25e   :  { %v1104_v6 = vpop.f32.mrf.mxu1  ;;  %1164 = vmax.xlane.f32.xlu1 %v1163_v4  ;;  %v2143_v7 = vpop.f32.mrf.mxu0 }
 0x260   :  { %v2138_v8 = vpop.f32.mrf.mxu1  ;;  %v1150_v9 = vpop.f32.mrf.mxu0 }
 0x262   :  { %v2144_v10 = vpop.f32.mrf.mxu0 }
 0x2dd   :  { %v1156_v12 = vpop.xlane.xlu1 %1155 }
 0x2de   :  { %v1166_v13 = vsub.f32 %v1009_v53, %v1156_v12 }
 0x2e0   :  { %v1170_v14 = vmul.f32 1.442695, %v1166_v13 }
 0x2e1   :  { %v1159_v15 = vpop.xlane.xlu1 %1158 }
 0x2e2   :  { %2227 = vpow2.f32 %v1170_v14  ;;  %v1167_v16 = vsub.f32 %v1055_v56, %v1159_v15 }
 0x2e4   :  { %v1172_v17 = vmul.f32 1.442695, %v1167_v16 }
 0x2e5   :  { %v1162_v27 = vpop.xlane.xlu0 %1161 }
 0x2e6   :  { %2229 = vpow2.f32 %v1172_v17  ;;  %v1168_v28 = vsub.f32 %v1101_v63, %v1162_v27 }
 0x2e7   :  { %v1165_v18 = vpop.xlane.xlu1 %1164 }
 0x2e8   :  { %v1169_v19 = vsub.f32 %v1147_v3, %v1165_v18  ;;  %v1174_v29 = vmul.f32 1.442695, %v1168_v28 }
 0x2ea   :  { %v1176_v20 = vmul.f32 1.442695, %v1169_v19 }
 0x2ec   :  { %2231 = vpow2.f32 %v1176_v20 }
 0x2ed   :  { %2233 = vpow2.f32 %v1174_v29 }
 0x2ef   :  { %v2228_v21 = vpop.eup %2227 }
 0x2f0   :  { %v1178_v22 = vsel %vm1153_vm3, %v2228_v21, 0.0 }
 0x2f1   :  { %1179 = vadd.xlane.f32.xlu1 %v1178_v22 }
 0x2f3   :  { %v2230_v23 = vpop.eup %2229 }
 0x2f4   :  { %v1181_v24 = vsel %vm1153_vm3, %v2230_v23, 0.0 }
 0x2f5   :  { %1182 = vadd.xlane.f32.xlu1 %v1181_v24 }
 0x2f9   :  { %v2644_v25 = vpop.eup %2231 }
 0x2fa   :  { %v1187_v26 = vsel %vm1153_vm3, %v2644_v25, 0.0  ;;  %v2650_v30 = vpop.eup %2233 }
 0x2fb   :  { %1188 = vadd.xlane.f32.xlu0 %v1187_v26  ;;  %v1184_v31 = vsel %vm1153_vm3, %v2650_v30, 0.0 }
 0x306   :  { %752 = vrot.lane.b32.xlu1 %v2636_v52, %s2368_s4 }
 0x32a   :  { %1185 = vadd.xlane.f32.xlu1 %v1184_v31 }
 0x37a   :  { %v1180_v32 = vpop.xlane.xlu1 %1179 }
 0x37b   :  { %2235 = vrcp.f32 %v1180_v32 }
 0x37e   :  { %v1183_v33 = vpop.xlane.xlu1 %1182 }
 0x37f   :  { %2237 = vrcp.f32 %v1183_v33 }
 0x382   :  { %v753_v34 = vpop.permute.xlu1 %752 }
 0x383   :  { %v756_v36 = vpack.i.b16 %v753_v34, %v2636_v52  ;;  %v759_v37 = vshrl.u32 %v753_v34, 16 }
 0x384   :  { %v1189_v39 = vpop.xlane.xlu0 %1188 }
 0x385   :  { %v760_v42 = vpack.i.b16 %v759_v37, %v758_v35  ;;  %v762_v43 = vcombine.high %v756_v36, %v2548_v41  ;;  %v769_v44 = vrot.slane %v756_v36, %v2544_v38  ;;  %2239 = vrcp.f32 %v1189_v39 }
 0x387   :  { %v776_v45 = vrot.slane %v762_v43, %v2544_v38  ;;  %v777_v47 = vcombine.high %v769_v44, %v2371_v40  ;;  %v811_v48 = vcombine.high %v760_v42, %v2548_v41  ;;  %v818_v50 = vrot.slane %v760_v42, %v2544_v38 }
 0x388   :  { %v2236_v49 = vpop.eup %2235  ;;  %v784_v51 = vrot.slane %v769_v44, %v2550_v46 }
 0x389   :  { %v791_v52 = vrot.slane %v777_v47, %v2550_v46  ;;  %v792_v53 = vcombine.high %v776_v45, %v2371_v40  ;;  %v825_v54 = vrot.slane %v811_v48, %v2544_v38  ;;  %v799_v55 = vrot.slane %v776_v45, %v2550_v46 }
 0x38a   :  { %v826_v56 = vcombine.high %v818_v50, %v2371_v40  ;;  %v1194_v57 = vmul.f32 %v2236_v49, %v2228_v21  ;;  %v833_v41 = vrot.slane %v818_v50, %v2550_v46 }
 0x38b   :  { %v806_v58 = vrot.slane %v792_v53, %v2550_v46  ;;  %v841_v59 = vcombine.high %v825_v54, %v2371_v40  ;;  %v860_v60 = vcombine.low %v784_v51, %v791_v52  ;;  %v848_v63 = vrot.slane %v825_v54, %v2550_v46  ;;  %v2218_v54 = vld [vmem:[#allocation5 + $0x8] sm:$0xff]  }
 0x38c   :  { %v2238_v61 = vpop.eup %2237  ;;  %v840_v62 = vrot.slane %v826_v56, %v2550_v46  ;;  %v2038_v1 = vcombine.high %v784_v51, %v791_v52  ;;  %v1198_v2 = vpack.c.bf16 %v1194_v57, %v1194_v57 }
 0x38d   :  { %v855_v3 = vrot.slane %v841_v59, %v2550_v46  ;;  %v867_v4 = vrot.slane %v860_v60, %v2544_v38  ;;  %v908_v6 = vcombine.low %v799_v55, %v806_v58  ;;  %v2040_v7 = vcombine.high %v799_v55, %v806_v58  ;;  %v2219_v55 = vld [vmem:[#allocation5] sm:$0xff]  }
 0x38e   :  { %v875_v8 = vrot.slane %v2038_v1, %v2544_v38  ;;  %v884_v9 = vcombine.low %v833_v41, %v840_v62  ;;  %v2039_v10 = vcombine.high %v833_v41, %v840_v62  ;;  %v1195_v12 = vmul.f32 %v2238_v61, %v2230_v23  ;;  %1203 = vst.msk [vmem:[#allocation9] sm:$0xf] %vm1202_vm4, %v1198_v2 }
 0x38f   :  { %v932_v13 = vcombine.low %v848_v63, %v855_v3  ;;  %v2041_v14 = vcombine.high %v848_v63, %v855_v3  ;;  %v915_v15 = vrot.slane %v908_v6, %v2544_v38  ;;  %v923_v16 = vrot.slane %v2040_v7, %v2544_v38 }
 0x390   :  { %v876_v17 = vcombine.low %v867_v4, %v875_v8  ;;  %v891_v18 = vrot.slane %v884_v9, %v2544_v38  ;;  %v899_v19 = vrot.slane %v2039_v10, %v2544_v38  ;;  %v1199_v20 = vpack.c.bf16 %v1195_v12, %v1195_v12 }
 0x391   :  { %v924_v21 = vcombine.low %v915_v15, %v923_v16  ;;  %v939_v22 = vrot.slane %v932_v13, %v2544_v38  ;;  %v947_v24 = vrot.slane %v2041_v14, %v2544_v38 }
 0x392   :  { %v2240_v23 = vpop.eup %2239  ;;  %v883_v26 = vrot.slane %v876_v17, %v2550_v46  ;;  %v900_v27 = vcombine.low %v891_v18, %v899_v19  ;;  %1204 = vst.msk [vmem:[#allocation9 + $0x4] sm:$0xf] %vm1202_vm4, %v1199_v20 }
 0x393   :  { %v948_v28 = vcombine.low %v939_v22, %v947_v24  ;;  %v1197_v29 = vmul.f32 %v2240_v23, %v2644_v25  ;;  %v931_v32 = vrot.slane %v924_v21, %v2550_v46 }
 0x394   :  { %v907_v31 = vrot.slane %v900_v27, %v2550_v46  ;;  %v959_v36 = vshrl.u32 %v883_v26, 16 }
 0x395   :  { %v955_v33 = vrot.slane %v948_v28, %v2550_v46  ;;  %v1201_v34 = vpack.c.bf16 %v1197_v29, %v1197_v29  ;;  %v965_v45 = vshrl.u32 %v931_v32, 16 }
 0x396   :  { %v958_v35 = vpack.i.b16 %v907_v31, %v883_v26  ;;  %v960_v37 = vshrl.u32 %v907_v31, 16 }
 0x397   :  { %v966_v39 = vshrl.u32 %v955_v33, 16  ;;  %1206 = vst.msk [vmem:[#allocation9 + $0xc] sm:$0xf] %vm1202_vm4, %v1201_v34  ;;  %v964_v44 = vpack.i.b16 %v955_v33, %v931_v32 }
 0x398   :  { %v1212_v42 = vsel %vm1210_vm5, %v958_v35, 0  ;;  %v961_v43 = vpack.i.b16 %v960_v37, %v959_v36 }
 0x399   :  { %2146 = vmatpush3.bf16.msra.mxu1 %v1212_v42  ;;  %v967_v47 = vpack.i.b16 %v966_v39, %v965_v45  ;;  %v1304_v48 = vsel %vm1210_vm5, %v964_v44, 0 }
 0x39a   :  { %v1258_v25 = vsel %vm1210_vm5, %v961_v43, 0  ;;  %2157 = vmatprep.subr.bf16.mxu1 %v2366_v0 }
 0x39b   :  { %2152 = vmatpush3.bf16.msra.mxu0 %v1258_v25  ;;  %v1350_v49 = vsel %vm1210_vm5, %v967_v47, 0 }
 0x39c   :  { %2148 = vmatmul.mubr.msk.bf16.vlgmr.msra.gmra.mxu1 %vm1153_vm3, %v1198_v2  ;;  %2163 = vmatprep.subr.bf16.mxu0 %v2366_v0 }
 0x39d   :  { %2158 = vmatpush3.bf16.msra.mxu1 %v1304_v48  ;;  %2159 = vmatprep.mubr.msk.bf16.mxu1 %vm2367_vm0, %v2366_v0 }
 0x39e   :  { %2154 = vmatmul.mubr.msk.bf16.vlgmr.msra.gmra.mxu0 %vm1153_vm3, %v1199_v20  ;;  %2169 = vmatprep.subr.bf16.mxu1 %v2366_v0 }
 0x39f   :  { %2164 = vmatpush3.bf16.msra.mxu0 %v1350_v49  ;;  %2165 = vmatprep.mubr.msk.bf16.mxu0 %vm2367_vm0, %v2366_v0 }
 0x3a0   :  { %2177 = vmatprep.subr.bf16.mxu0 %v2366_v0 }
 0x3a6   :  { %2166 = vmatmul.mubr.msk.bf16.vlgmr.msra.gmra.mxu0 %vm1153_vm3, %v1201_v34 }
 0x3a7   :  { %2181 = vmatprep.mubr.msk.bf16.mxu0 %vm2367_vm0, %v2366_v0 }
 0x3b3   :  { %v1186_v50 = vpop.xlane.xlu1 %1185 }
 0x3b4   :  { %2241 = vrcp.f32 %v1186_v50 }
 0x3c1   :  { %v2242_v51 = vpop.eup %2241 }
 0x3c2   :  { %v1196_v52 = vmul.f32 %v2242_v51, %v2650_v30 }
 0x3c4   :  { %v1200_v53 = vpack.c.bf16 %v1196_v52, %v1196_v52 }
 0x3c6   :  { %2160 = vmatmul.mubr.msk.bf16.vlgmr.msra.gmra.mxu1 %vm1153_vm3, %v1200_v53  ;;  %1205 = vst.msk [vmem:[#allocation9 + $0x8] sm:$0xf] %vm1202_vm4, %v1200_v53 }
 0x3c7   :  { %2173 = vmatprep.mubr.msk.bf16.mxu1 %vm2367_vm0, %v2366_v0  ;;  %2170 = vmatpush3.bf16.msra.mxu1 %v2218_v54 }
 0x3c8   :  { %2171 = vmatprep.subr.bf16.mxu1 %v2366_v0 }
 0x3cb   :  { %2172 = vmatpush3.bf16.msra.mxu1 %v2219_v55 }
 0x3cc   :  { %2185 = vmatprep.subr.bf16.mxu1 %v2366_v0 }
 0x45c   :  { %v1248_v56 = vpop.f32.mrf.mxu1 }
 0x45d   :  { %v1392_v4 = vpack.c.bf16 %v1248_v56, %v1248_v56 }
 0x45e   :  { %v2149_v57 = vpop.f32.mrf.mxu1  ;;  %v1294_v58 = vpop.f32.mrf.mxu0 }
 0x45f   :  { %v1417_v3 = vpack.c.bf16 %v1294_v58, %v1294_v58  ;;  %v1399_v7 = vrot.slane %v1392_v4, %v2544_v38 }
 0x460   :  { %v1251_v30 = vpop.f32.mrf.mxu1  ;;  %v2155_v41 = vpop.f32.mrf.mxu0 }
 0x461   :  { %v1424_v6 = vrot.slane %v1417_v3, %v2544_v38  ;;  %v1400_v9 = vcombine.high %v1399_v7, %v2371_v40  ;;  %v1407_v16 = vrot.slane %v1399_v7, %v2550_v46 }
 0x462   :  { %v2150_v59 = vpop.f32.mrf.mxu1  ;;  %v1297_v60 = vpop.f32.mrf.mxu0 }
 0x463   :  { %v1425_v8 = vcombine.high %v1424_v6, %v2371_v40  ;;  %v1414_v13 = vrot.slane %v1400_v9, %v2550_v46  ;;  %v1432_v14 = vrot.slane %v1424_v6, %v2550_v46  ;;  %v1415_v21 = vcombine.high %v1407_v16, %v2371_v40 }
 0x464   :  { %v2156_v61 = vpop.f32.mrf.mxu0  ;;  %v1496_v36 = vshrl.u32 %v1407_v16, 16 }
 0x465   :  { %v1439_v12 = vrot.slane %v1425_v8, %v2550_v46  ;;  %v1416_v18 = vcombine.high %v1414_v13, %v2371_v40  ;;  %v1440_v19 = vcombine.high %v1432_v14, %v2371_v40  ;;  %v1512_v27 = vshrl.u32 %v1414_v13, 16 }
 0x466   :  { %v1386_v62 = vpop.f32.mrf.mxu0  ;;  %v1497_v32 = vshrl.u32 %v1432_v14, 16  ;;  %v1504_v43 = vshrl.u32 %v1415_v21, 16  ;;  %v1494_v48 = vpack.i.b16 %v1432_v14, %v1407_v16 }
 0x467   :  { %v1467_v10 = vpack.c.bf16 %v1386_v62, %v1386_v62  ;;  %v1441_v17 = vcombine.high %v1439_v12, %v2371_v40  ;;  %v1513_v22 = vshrl.u32 %v1439_v12, 16  ;;  %v1520_v31 = vshrl.u32 %v1416_v18, 16 }
 0x468   :  { %v2167_v63 = vpop.f32.mrf.mxu0  ;;  %v1502_v33 = vpack.i.b16 %v1440_v19, %v1415_v21  ;;  %v1505_v34 = vshrl.u32 %v1440_v19, 16  ;;  %v1510_v37 = vpack.i.b16 %v1439_v12, %v1414_v13  ;;  %v1498_v52 = vpack.i.b16 %v1497_v32, %v1496_v36 }
 0x469   :  { %v1474_v15 = vrot.slane %v1467_v10, %v2544_v38  ;;  %v1518_v24 = vpack.i.b16 %v1441_v17, %v1416_v18  ;;  %v1521_v23 = vshrl.u32 %v1441_v17, 16  ;;  %v1514_v44 = vpack.i.b16 %v1513_v22, %v1512_v27 }
 0x46a   :  { %v1389_v1 = vpop.f32.mrf.mxu0  ;;  %v1506_v53 = vpack.i.b16 %v1505_v34, %v1504_v43  ;;  %v1556_v55 = vcombine.low %v1494_v48, %v1510_v37  ;;  %v1730_v48 = vunpack.c.l.bf16 %v2508_v5 }
 0x46b   :  { %v1475_v20 = vcombine.high %v1474_v15, %v2371_v40  ;;  %v1482_v28 = vrot.slane %v1474_v15, %v2550_v46  ;;  %v1522_v45 = vpack.i.b16 %v1521_v23, %v1520_v31  ;;  %v1564_v25 = vcombine.low %v1502_v33, %v1518_v24 }
 0x46c   :  { %v2168_v2 = vpop.f32.mrf.mxu0  ;;  %v1605_v30 = vcombine.low %v1498_v52, %v1514_v44  ;;  %v1563_v12 = vrot.slane %v1556_v55, %v2544_v38 }
 0x46d   :  { %v1489_v39 = vrot.slane %v1475_v20, %v2550_v46  ;;  %v1490_v49 = vcombine.high %v1482_v28, %v2371_v40  ;;  %v1613_v41 = vcombine.low %v1506_v53, %v1522_v45  ;;  %v1571_v60 = vrot.slane %v1564_v25, %v2544_v38  ;;  %v1669_v25 = vld [vmem:[%s2829_s8] sm:$0x1] }
 0x46e   :  { %v1529_v61 = vshrl.u32 %v1482_v28, 16  ;;  %v1612_v20 = vrot.slane %v1605_v30, %v2544_v38  ;;  %v1731_v53 = vunpack.c.h.bf16 %v2508_v5 }
 0x46f   :  { %v1491_v56 = vcombine.high %v1489_v39, %v2371_v40  ;;  %v1537_v62 = vshrl.u32 %v1490_v49, 16  ;;  %v1545_v2 = vshrl.u32 %v1489_v39, 16  ;;  %v1620_v19 = vrot.slane %v1613_v41, %v2544_v38 }
 0x470   :  { %v1588_v23 = vcombine.low %v1563_v12, %v1571_v60 }
 0x471   :  { %v1553_v7 = vshrl.u32 %v1491_v56, 16 }
 0x472   :  { %v1595_v31 = vrot.slane %v1588_v23, %v2550_v46 }
 0x486   :  { %v1340_v26 = vpop.f32.mrf.mxu1 }
 0x487   :  { %v1442_v29 = vpack.c.bf16 %v1340_v26, %v1340_v26 }
 0x488   :  { %v2161_v35 = vpop.f32.mrf.mxu1 }
 0x489   :  { %v1449_v42 = vrot.slane %v1442_v29, %v2544_v38  ;;  %v1637_v29 = vcombine.low %v1612_v20, %v1620_v19 }
 0x48a   :  { %v1343_v47 = vpop.f32.mrf.mxu1 }
 0x48b   :  { %v1450_v50 = vcombine.high %v1449_v42, %v2371_v40  ;;  %v1457_v51 = vrot.slane %v1449_v42, %v2550_v46  ;;  %v1644_v35 = vrot.slane %v1637_v29, %v2550_v46  ;;  %v2222_v29 = vld [vmem:[%s2834_s13 + $0x18] sm:$0xff]  }
 0x48c   :  { %v2162_v54 = vpop.f32.mrf.mxu1 }
 0x48d   :  { %v1464_v57 = vrot.slane %v1450_v50, %v2550_v46  ;;  %v1465_v58 = vcombine.high %v1457_v51, %v2371_v40  ;;  %v1528_v59 = vshrl.u32 %v1457_v51, 16  ;;  %v1526_v3 = vpack.i.b16 %v1482_v28, %v1457_v51 }
 0x48f   :  { %v1466_v63 = vcombine.high %v1464_v57, %v2371_v40  ;;  %v1536_v1 = vshrl.u32 %v1465_v58, 16  ;;  %v1542_v4 = vpack.i.b16 %v1489_v39, %v1464_v57  ;;  %v1544_v6 = vshrl.u32 %v1464_v57, 16 }
 0x490   :  { %v1534_v8 = vpack.i.b16 %v1490_v49, %v1465_v58  ;;  %v1530_v13 = vpack.i.b16 %v1529_v61, %v1528_v59 }
 0x491   :  { %v1550_v9 = vpack.i.b16 %v1491_v56, %v1466_v63  ;;  %v1552_v10 = vshrl.u32 %v1466_v63, 16  ;;  %v1546_v14 = vpack.i.b16 %v1545_v2, %v1544_v6  ;;  %v1572_v15 = vcombine.low %v1526_v3, %v1542_v4  ;;  %v2220_v4 = vld [vmem:[#allocation7 + $0x8] sm:$0xff]   ;;  %v2221_v6 = vld [vmem:[#allocation7] sm:$0xff]  }
 0x492   :  { %v1538_v16 = vpack.i.b16 %v1537_v62, %v1536_v1  ;;  %2178 = vmatpush3.bf16.msra.mxu0 %v2220_v4 }
 0x493   :  { %v1554_v17 = vpack.i.b16 %v1553_v7, %v1552_v10  ;;  %v1580_v18 = vcombine.low %v1534_v8, %v1550_v9  ;;  %v1621_v40 = vcombine.low %v1530_v13, %v1546_v14  ;;  %v1579_v21 = vrot.slane %v1572_v15, %v2544_v38  ;;  %2179 = vmatprep.subr.bf16.mxu0 %v2366_v0  ;;  %v1734_v14 = vld [vmem:[%s2830_s9] sm:$0x1] }
 0x494   :  { %v1735_v15 = vunpack.c.l.bf16 %v1734_v14 }
 0x495   :  { %v1629_v22 = vcombine.low %v1538_v16, %v1554_v17  ;;  %v1587_v24 = vrot.slane %v1580_v18, %v2544_v38  ;;  %v1628_v27 = vrot.slane %v1621_v40, %v2544_v38  ;;  %v1736_v16 = vld [vmem:[%s2831_s10] sm:$0x1] }
 0x496   :  { %2180 = vmatpush3.bf16.msra.mxu0 %v2221_v6  ;;  %v1737_v19 = vunpack.c.l.bf16 %v1736_v16  ;;  %v1768_v40 = vrot.slane %v1735_v15, %v2526_v11 }
 0x497   :  { %v1596_v26 = vcombine.low %v1579_v21, %v1587_v24  ;;  %v1636_v28 = vrot.slane %v1629_v22, %v2544_v38 }
 0x498   :  { %v1774_v24 = vrot.slane %v1737_v19, %v2526_v11 }
 0x499   :  { %v1603_v32 = vrot.slane %v1596_v26, %v2550_v46  ;;  %v1645_v33 = vcombine.low %v1628_v27, %v1636_v28 }
 0x49b   :  { %v1604_v34 = vcombine.low %v1595_v31, %v1603_v32  ;;  %v1652_v36 = vrot.slane %v1645_v33, %v2550_v46  ;;  %v1670_v46 = vunpack.c.l.bf16 %v1669_v25  ;;  %v2223_v31 = vld [vmem:[%s2834_s13 + $0x10] sm:$0xff]   ;;  %v2224_v32 = vld [vmem:[%s2834_s13 + $0x8] sm:$0xff]   ;;  %v2225_v33 = vld [vmem:[%s2834_s13] sm:$0xff]  }
 0x49d   :  { %v1653_v37 = vcombine.low %v1644_v35, %v1652_v36  ;;  %v1657_v39 = vshrl.u32 %v1604_v34, 16  ;;  %v1674_v47 = vrot.slane %v1670_v46, %v2526_v11 }
 0x49f   :  { %v1658_v42 = vshrl.u32 %v1653_v37, 16  ;;  %v1656_v43 = vpack.i.b16 %v1653_v37, %v1604_v34  ;;  %v1782_v34 = vld [vmem:[%s2833_s12] sm:$0x1] }
 0x4a0   :  { %v1783_v35 = vunpack.c.l.bf16 %v1782_v34 }
 0x4a1   :  { %v1659_v44 = vpack.i.b16 %v1658_v42, %v1657_v39 }
 0x4a2   :  { %v1787_v37 = vrot.slane %v1783_v35, %v2526_v11 }
 0x4a3   :  { %1660 = vrot.lane.b32.xlu0 %v1659_v44, %s2372_s6 }
 0x515   :  { %v1661_v45 = vpop.permute.xlu0 %1660 }
 0x516   :  { %v1664_v38 = vsel %vm968_vm2, %v1656_v43, %v1661_v45 }
 0x517   :  { %2174 = vmatmul.mubr.msk.bf16.vlgmr.msra.gmra.mxu1 %vm135_vm1, %v1664_v38 }
 0x518   :  { %2193 = vmatprep.mubr.msk.bf16.mxu1 %vm2367_vm0, %v2366_v0  ;;  %2186 = vmatpush3.bf16.msra.mxu1 %v2222_v29 }
 0x519   :  { %2187 = vmatprep.subr.bf16.mxu1 %v2366_v0 }
 0x51c   :  { %2188 = vmatpush3.bf16.msra.mxu1 %v2223_v31 }
 0x51d   :  { %2189 = vmatprep.subr.bf16.mxu1 %v2366_v0 }
 0x520   :  { %2190 = vmatpush3.bf16.msra.mxu1 %v2224_v32 }
 0x521   :  { %2191 = vmatprep.subr.bf16.mxu1 %v2366_v0 }
 0x524   :  { %2192 = vmatpush3.bf16.msra.mxu1 %v2225_v33 }
 0x5d7   :  { %v1723_v49 = vpop.f32.mrf.mxu1 }
 0x5d8   :  { %v1724_v50 = vadd.f32 %v1723_v49, %v1674_v47 }
 0x5d9   :  { %v2175_v51 = vpop.f32.mrf.mxu1 }
 0x5da   :  { %v1732_v52 = vadd.f32 %v1730_v48, %v1724_v50 }
 0x5db   :  { %v1726_v54 = vpop.f32.mrf.mxu1 }
 0x5dc   :  { %v1727_v55 = vadd.f32 %v1726_v54, %v1674_v47  ;;  %v1738_v56 = vsel %vm135_vm1, %v1732_v52, 0.0 }
 0x5dd   :  { %1739 = vadd.xlane.f32.xlu0 %v1738_v56  ;;  %v2176_v57 = vpop.f32.mrf.mxu1 }
 0x5de   :  { %v1733_v58 = vadd.f32 %v1731_v53, %v1727_v55  ;;  %v1862_v53 = vld [vmem:[%s2835_s14] sm:$0x1]  ;;  %s2373_s14 = smov [#allocation9]  }
 0x5df   :  { %v1863_v54 = vunpack.c.l.bf16 %v1862_v53  ;;  %s2003_s28 = sshll.u32 %s2373_s14, 4  ;;  %s2004_s28 = int_to_ptr.vmem [resolvable:$true] %s2003_s28 }
 0x5e0   :  { %v1741_v30 = vsel %vm135_vm1, %v1733_v58, 0.0  ;;  %s2313_s29 = scalar_lea.vmem %s2004_s28, 256  ;;  %p2318_p2 = scmp.lt.s32.totalorder %s2004_s28, %s2004_s28 }
 0x5e1   :  { %1742 = vadd.xlane.f32.xlu1 %v1741_v30  ;;  %v1867_v55 = vrot.slane %v1863_v54, %v2526_v11  ;;  %p2314_p1 = scmp.ne.s32.totalorder %s2004_s28, %s2313_s29  ;;  %p2319_p3 = scmp.lt.s32.totalorder %s2313_s29, %s2313_s29 }
 0x5e3   :  { %p2320_p4 = por %p2319_p3, %p2318_p2 }
 0x5e5   :  { %p2321_p5 = pnand %p2320_p4, %p2314_p1 }
 0x666   :  { %v1740_v41 = vpop.xlane.xlu0 %1739 }
 0x667   :  { %v1745_v59 = vmul.f32 0.03125, %v1740_v41 }
 0x669   :  { %v1747_v60 = vsub.f32 %v1732_v52, %v1745_v59 }
 0x66a   :  { %v1743_v61 = vpop.xlane.xlu1 %1742 }
 0x66b   :  { %v1746_v62 = vmul.f32 0.03125, %v1743_v61  ;;  %v1749_v63 = vmul.f32 %v1747_v60, %v1747_v60 }
 0x66d   :  { %v1748_v1 = vsub.f32 %v1733_v58, %v1746_v62  ;;  %v1751_v2 = vsel %vm135_vm1, %v1749_v63, 0.0 }
 0x66e   :  { %1752 = vadd.xlane.f32.xlu1 %v1751_v2 }
 0x66f   :  { %v1750_v5 = vmul.f32 %v1748_v1, %v1748_v1 }
 0x671   :  { %v1754_v3 = vsel %vm135_vm1, %v1750_v5, 0.0 }
 0x672   :  { %1755 = vadd.xlane.f32.xlu1 %v1754_v3 }
 0x6f7   :  { %v1753_v7 = vpop.xlane.xlu1 %1752 }
 0x6f8   :  { %v1757_v8 = vmul.f32 0.03125, %v1753_v7 }
 0x6fa   :  { %v1759_v9 = vadd.f32 1e-05, %v1757_v8 }
 0x6fb   :  { %v1756_v10 = vpop.xlane.xlu1 %1755 }
 0x6fc   :  { %2243 = vrsqrt.f32 %v1759_v9  ;;  %v1758_v12 = vmul.f32 0.03125, %v1756_v10 }
 0x6fe   :  { %v1760_v13 = vadd.f32 1e-05, %v1758_v12 }
 0x700   :  { %2245 = vrsqrt.f32 %v1760_v13 }
 0x709   :  { %v2244_v17 = vpop.eup %2243 }
 0x70a   :  { %v1763_v18 = vmul.f32 %v2244_v17, %v1747_v60 }
 0x70c   :  { %v1769_v22 = vmul.f32 %v1768_v40, %v1763_v18 }
 0x70d   :  { %v2246_v20 = vpop.eup %2245 }
 0x70e   :  { %v1764_v21 = vmul.f32 %v2246_v20, %v1748_v1  ;;  %v1775_v26 = vadd.f32 %v1774_v24, %v1769_v22 }
 0x710   :  { %v1770_v23 = vmul.f32 %v1768_v40, %v1764_v21 }
 0x712   :  { %v1776_v27 = vadd.f32 %v1774_v24, %v1770_v23 }
 0x714   :  { %v1777_v28 = vpack.c.bf16 %v1776_v27, %v1775_v26 }
 0x716   :  { %2182 = vmatmul.mubr.msk.bf16.vlgmr.msra.gmra.mxu0 %vm135_vm1, %v1777_v28 }
 0x7d6   :  { %v1837_v36 = vpop.f32.mrf.mxu0 }
 0x7d7   :  { %v1838_v43 = vadd.f32 %v1837_v36, %v1787_v37 }
 0x7d8   :  { %v2183_v39 = vpop.f32.mrf.mxu0 }
 0x7da   :  { %v1840_v42 = vpop.f32.mrf.mxu0 }
 0x7db   :  { %v1841_v44 = vadd.f32 %v1840_v42, %v1787_v37 }
 0x7dc   :  { %v2184_v45 = vpop.f32.mrf.mxu0 }
 0x7dd   :  { %v1844_v38 = vpack.c.bf16 %v1841_v44, %v1838_v43 }
 0x7df   :  { %v1845_v25 = vmul.bf16 %v1844_v38, %v1844_v38 }
 0x7e1   :  { %v1846_v46 = vmul.bf16 %v1845_v25, %v1844_v38 }
 0x7e3   :  { %v1847_v47 = vmul.bf16 1027030327, %v1846_v46 }
 0x7e5   :  { %v1848_v48 = vadd.bf16 %v1847_v47, %v1844_v38 }
 0x7e7   :  { %v1849_v0 = vmul.bf16 1061961548, %v1848_v48 }
 0x7e9   :  { %2247 = vtanh.bf16 %v1849_v0 }
 0x7f7   :  { %v2248_v49 = vpop.eup %2247 }
 0x7f8   :  { %v1851_v50 = vadd.bf16 1065369472, %v2248_v49 }
 0x7fa   :  { %v1852_v51 = vmul.bf16 1056980736, %v1851_v50 }
 0x7fc   :  { %v1853_v52 = vmul.bf16 %v1852_v51, %v1844_v38 }
 0x7fe   :  { %2194 = vmatmul.mubr.msk.bf16.vlgmr.msra.gmra.mxu1 %vm1892_vm6, %v1853_v52 }
 0x8be   :  { %v1930_v56 = vpop.f32.mrf.mxu1 }
 0x8bf   :  { %v1931_v57 = vadd.f32 %v1930_v56, %v1867_v55 }
 0x8c0   :  { %v2195_v58 = vpop.f32.mrf.mxu1 }
 0x8c1   :  { %v1937_v30 = vadd.f32 %v1931_v57, %v1775_v26 }
 0x8c2   :  { %v1933_v41 = vpop.f32.mrf.mxu1 }
 0x8c3   :  { %v1934_v59 = vadd.f32 %v1933_v41, %v1867_v55  ;;  %v1943_v60 = vsel %vm135_vm1, %v1937_v30, 0.0 }
 0x8c4   :  { %1944 = vadd.xlane.f32.xlu1 %v1943_v60  ;;  %v2196_v61 = vpop.f32.mrf.mxu1 }
 0x8c5   :  { %v1938_v62 = vadd.f32 %v1934_v59, %v1776_v27 }
 0x8c7   :  { %v1946_v63 = vsel %vm135_vm1, %v1938_v62, 0.0 }
 0x8c8   :  { %1947 = vadd.xlane.f32.xlu1 %v1946_v63 }
 0x94d   :  { %v1945_v1 = vpop.xlane.xlu1 %1944 }
 0x94e   :  { %v1949_v2 = vmul.f32 0.03125, %v1945_v1 }
 0x950   :  { %v1951_v5 = vsub.f32 %v1937_v30, %v1949_v2 }
 0x951   :  { %v1948_v3 = vpop.xlane.xlu1 %1947 }
 0x952   :  { %v1950_v4 = vmul.f32 0.03125, %v1948_v3  ;;  %v1953_v6 = vmul.f32 %v1951_v5, %v1951_v5 }
 0x954   :  { %v1952_v7 = vsub.f32 %v1938_v62, %v1950_v4  ;;  %v1955_v8 = vsel %vm135_vm1, %v1953_v6, 0.0 }
 0x955   :  { %1956 = vadd.xlane.f32.xlu1 %v1955_v8 }
 0x956   :  { %v1954_v9 = vmul.f32 %v1952_v7, %v1952_v7 }
 0x958   :  { %v1958_v10 = vsel %vm135_vm1, %v1954_v9, 0.0 }
 0x959   :  { %1959 = vadd.xlane.f32.xlu0 %v1958_v10 }
 0x95a   :  { %2324 = shalt.err (!%p2321_p5)
}
 0x95b   :  { %2009 = dma.vmem_to_hbm [thread:$0]  %s2004_s28, 256, %s2839_s18, [#allocation10], %s2363_s19, %s2363_s19, %s2364_s1   ;;  %vm1983_vm7 = vcmask 257024  }
 0x95c   :  { %v1939_v18 = vld [vmem:[%s2836_s15] sm:$0x1]  ;;  %s2374_s15 = smov [#allocation8]  }
 0x95d   :  { %v1941_v19 = vld [vmem:[%s2837_s16] sm:$0x1]  ;;  %v1940_v40 = vunpack.c.l.bf16 %v1939_v18  ;;  %s1991_s18 = sshll.u32 %s2374_s15, 4  ;;  %s1992_s18 = int_to_ptr.vmem [resolvable:$true] %s1991_s18 }
 0x95e   :  { %v1942_v20 = vunpack.c.l.bf16 %v1941_v19  ;;  %s2333_s16 = scalar_lea.vmem %s1992_s18, 128  ;;  %p2338_p7 = scmp.lt.s32.totalorder %s1992_s18, %s1992_s18 }
 0x95f   :  { %v1972_v21 = vrot.slane %v1940_v40, %v2526_v11  ;;  %p2334_p6 = scmp.ne.s32.totalorder %s1992_s18, %s2333_s16  ;;  %p2339_p8 = scmp.lt.s32.totalorder %s2333_s16, %s2333_s16 }
 0x960   :  { %v1978_v23 = vrot.slane %v1942_v20, %v2526_v11 }
 0x961   :  { %p2340_p9 = por %p2339_p8, %p2338_p7 }
 0x963   :  { %p2341_p10 = pnand %p2340_p9, %p2334_p6 }
 0x9de   :  { %v1957_v12 = vpop.xlane.xlu1 %1956 }
 0x9df   :  { %v1961_v13 = vmul.f32 0.03125, %v1957_v12 }
 0x9e1   :  { %v1963_v14 = vadd.f32 1e-05, %v1961_v13 }
 0x9e2   :  { %v1960_v15 = vpop.xlane.xlu0 %1959 }
 0x9e3   :  { %2249 = vrsqrt.f32 %v1963_v14  ;;  %v1962_v16 = vmul.f32 0.03125, %v1960_v15 }
 0x9e5   :  { %v1964_v17 = vadd.f32 1e-05, %v1962_v16 }
 0x9e7   :  { %2251 = vrsqrt.f32 %v1964_v17 }
 0x9f0   :  { %v2250_v22 = vpop.eup %2249 }
 0x9f1   :  { %v1967_v24 = vmul.f32 %v2250_v22, %v1951_v5 }
 0x9f3   :  { %v1973_v26 = vmul.f32 %v1972_v21, %v1967_v24 }
 0x9f4   :  { %v2252_v27 = vpop.eup %2251 }
 0x9f5   :  { %v1968_v28 = vmul.f32 %v2252_v27, %v1952_v7  ;;  %v1979_v29 = vadd.f32 %v1978_v23, %v1973_v26 }
 0x9f7   :  { %v1974_v31 = vmul.f32 %v1972_v21, %v1968_v28  ;;  %v1981_v32 = vpack.c.bf16 %v1979_v29, %v1979_v29 }
 0x9f9   :  { %v1980_v33 = vadd.f32 %v1978_v23, %v1974_v31  ;;  %1984 = vst.msk [vmem:[#allocation8] sm:$0xf] %vm1983_vm7, %v1981_v32 }
 0x9fb   :  { %v1982_v34 = vpack.c.bf16 %v1980_v33, %v1980_v33 }
 0x9fd   :  { %1985 = vst.msk [vmem:[#allocation8 + $0x4] sm:$0xf] %vm1983_vm7, %v1982_v34 }
 0x9fe   :  { %2344 = shalt.err (!%p2341_p10)
}
 0x9ff   :  { %1997 = dma.vmem_to_hbm [thread:$0]  %s1992_s18, 128, %s2838_s17, [#allocation4], %s2363_s19, %s2363_s19, %s2364_s1  }
 0xa00   :  { %2357 = dma.done.wait [#allocation4], 128  }
 0xa01   :  { %2358 = vsyncadd [#allocation4], 4294967168 }
 0xa02   :  { %2359 = dma.done.wait [#allocation10], 256  }
 0xa03   :  { %2360 = vsyncadd [#allocation10], 4294967040 }
 0xa04   :  { %2016 = vsyncpa [#allocation3], 1 }
 0xa05   :  { %2017 = vsyncpa [#allocation6], 1 }
 0xa06   :  { %2018 = vsyncpa [#allocation4], 1 }
 0xa07   :  { %2019 = vsyncpa [#allocation10], 1 }

// kernel: tpu_custom_call.1
= control target key start
LH: loop header
LB: loop body
LE: loop exit
PB: predicated region body
PF: predicated region fallthrough
CT: control target
= control target key end

     0   :  { %s2821_s0 = inlined_call_operand.hbm [shape: bf16[2,8,32], index: 0, kind: input, shape index: {}]   ;;  %s2822_s1 = inlined_call_operand.vmem [shape: bf16[32,32], index: 1, kind: input, shape index: {}]   ;;  %s2823_s2 = inlined_call_operand.vmem [shape: bf16[32,32], index: 2, kind: input, shape index: {}]   ;;  %s2824_s3 = inlined_call_operand.vmem [shape: bf16[32,32], index: 3, kind: input, shape index: {}]   ;;  %s2825_s4 = inlined_call_operand.vmem [shape: bf16[1,32], index: 4, kind: input, shape index: {}]   ;;  %s2826_s5 = inlined_call_operand.vmem [shape: bf16[1,32], index: 5, kind: input, shape index: {}]   ;;  %s2827_s6 = inlined_call_operand.vmem [shape: bf16[1,32], index: 6, kind: input, shape index: {}]   ;;  %s2828_s7 = inlined_call_operand.hbm [shape: bf16[32,32], index: 7, kind: input, shape index: {}]   ;;  %s2829_s8 = inlined_call_operand.vmem [shape: bf16[1,32], index: 8, kind: input, shape index: {}]   ;;  %s2830_s9 = inlined_call_operand.vmem [shape: bf16[1,32], index: 9, kind: input, shape index: {}]   ;;  %s2831_s10 = inlined_call_operand.vmem [shape: bf16[1,32], index: 10, kind: input, shape index: {}]   ;;  %s2832_s11 = inlined_call_operand.hbm [shape: bf16[32,64], index: 11, kind: input, shape index: {}]   ;;  %s2833_s12 = inlined_call_operand.vmem [shape: bf16[1,64], index: 12, kind: input, shape index: {}]   ;;  %s2834_s13 = inlined_call_operand.vmem [shape: bf16[64,32], index: 13, kind: input, shape index: {}]   ;;  %s2835_s14 = inlined_call_operand.vmem [shape: bf16[1,32], index: 14, kind: input, shape index: {}]   ;;  %s2836_s15 = inlined_call_operand.vmem [shape: bf16[1,32], index: 15, kind: input, shape index: {}]   ;;  %s2837_s16 = inlined_call_operand.vmem [shape: bf16[1,32], index: 16, kind: input, shape index: {}]   ;;  %s2838_s17 = inlined_call_operand.hbm [shape: bf16[2,8,32], index: 17, kind: output, shape index: {0}]   ;;  %s2839_s18 = inlined_call_operand.hbm [shape: bf16[2,2,8,8], index: 18, kind: output, shape index: {1}]  }
   0x1   :  { %2842 = sst [smem:[#allocation15_spill]] %s2821_s0 }
   0x2   :  { %2843 = sst [smem:[#allocation16_spill]] %s2822_s1 }
   0x3   :  { %2844 = sst [smem:[#allocation17_spill]] %s2823_s2 }
   0x4   :  { %24 = vsyncpa [#allocation3], 0 }
   0x5   :  { %25 = vsyncpa [#allocation6], 0 }
   0x6   :  { %26 = vsyncpa [#allocation4], 0 }
   0x7   :  { %27 = vsyncpa [#allocation10], 0  ;;  %s2361_s27 = smov [#allocation5]   ;;  %s2362_s29 = smov [#allocation2]  }
   0x8   :  { %s57_s28 = sshll.u32 %s2361_s27, 4  ;;  %s33_s30 = sshll.u32 %s2362_s29, 4  ;;  %s58_s28 = int_to_ptr.vmem [resolvable:$true] %s57_s28  ;;  %s34_s30 = int_to_ptr.vmem [resolvable:$true] %s33_s30 }
   0x9   :  { %s2261_s0 = scalar_lea.vmem %s58_s28, 256  ;;  %p2266_p1 = scmp.lt.s32.totalorder %s58_s28, %s58_s28 }
   0xa   :  { %p2262_p0 = scmp.ne.s32.totalorder %s58_s28, %s2261_s0  ;;  %p2267_p2 = scmp.lt.s32.totalorder %s2261_s0, %s2261_s0 }
   0xc   :  { %p2268_p3 = por %p2267_p2, %p2266_p1 }
   0xe   :  { %p2269_p4 = pnand %p2268_p3, %p2262_p0 }
  0x10   :  { %2272 = shalt.err (!%p2269_p4)
}
  0x11   :  { %s2363_s19 = smov 64   ;;  %s2364_s1 = smov 4  }
  0x12   :  { %63 = dma.hbm_to_vmem [thread:$0]  %s2828_s7, 256, %s58_s28, [#allocation6], %s2363_s19, %s2363_s19, %s2364_s1  }
  0x13   :  { %s2281_s22 = scalar_lea.vmem %s34_s30, 128  ;;  %p2286_p6 = scmp.lt.s32.totalorder %s34_s30, %s34_s30 }
  0x14   :  { %p2282_p5 = scmp.ne.s32.totalorder %s34_s30, %s2281_s22  ;;  %p2287_p7 = scmp.lt.s32.totalorder %s2281_s22, %s2281_s22 }
  0x16   :  { %p2288_p8 = por %p2287_p7, %p2286_p6 }
  0x18   :  { %p2289_p9 = pnand %p2288_p8, %p2282_p5 }
  0x1a   :  { %2292 = shalt.err (!%p2289_p9)
}
  0x1b   :  { %s2845_s24 = sld [smem:[#allocation15_spill]]  ;;  %s2365_s25 = smov [#allocation7]  }
  0x1c   :  { %s75_s26 = sshll.u32 %s2365_s25, 4  ;;  %s76_s26 = int_to_ptr.vmem [resolvable:$true] %s75_s26 }
  0x1d   :  { %s2301_s27 = scalar_lea.vmem %s76_s26, 256  ;;  %p2306_p11 = scmp.lt.s32.totalorder %s76_s26, %s76_s26 }
  0x1e   :  { %p2302_p10 = scmp.ne.s32.totalorder %s76_s26, %s2301_s27  ;;  %p2307_p12 = scmp.lt.s32.totalorder %s2301_s27, %s2301_s27 }
  0x20   :  { %p2308_p13 = por %p2307_p12, %p2306_p11 }
  0x21   :  { %39 = dma.hbm_to_vmem [thread:$0]  %s2845_s24, 128, %s34_s30, [#allocation3], %s2363_s19, %s2363_s19, %s2364_s1  }
  0x22   :  { %p2309_p0 = pnand %p2308_p13, %p2302_p10 }
  0x24   :  { %2312 = shalt.err (!%p2309_p0)
}
  0x25   :  { %81 = dma.hbm_to_vmem [thread:$0]  %s2832_s11, 256, %s76_s26, [#allocation6], %s2363_s19, %s2363_s19, %s2364_s1  }
  0x26   :  { %2353 = dma.done.wait [#allocation3], 128  }
  0x27   :  { %2354 = vsyncadd [#allocation3], 4294967168 }
  0x28   :  { %2355 = dma.done.wait [#allocation6], 512  }
  0x29   :  { %2356 = vsyncadd [#allocation6], 4294966784  ;;  %v2366_v0 = vmov 0.0   ;;  %vm2367_vm0 = vmmov 0   ;;  %s2846_s0 = sld [smem:[#allocation17_spill]]  ;;  %v2508_v5 = vld [vmem:[#allocation2] sm:$0xff]   ;;  %v114_v6 = vlaneseq }
  0x2a   :  { %2105 = vmatprep.subr.bf16.mxu1 %v2366_v0  ;;  %2097 = vmatprep.subr.bf16.mxu0 %v2366_v0  ;;  %s2847_s21 = sld [smem:[#allocation16_spill]]  ;;  %vm135_vm1 = vcmask 261120   ;;  %v112_v7 = vld [vmem:[%s2825_s4] sm:$0x1]  ;;  %s2368_s4 = smov 112   ;;  %v2216_v31 = vld [vmem:[%s2824_s3 + $0x8] sm:$0xff]  }
  0x2b   :  { %2109 = vmatprep.mubr.msk.bf16.mxu1 %vm2367_vm0, %v2366_v0  ;;  %2101 = vmatprep.mubr.msk.bf16.mxu0 %vm2367_vm0, %v2366_v0  ;;  %v115_v8 = vshrl.u32 %v114_v6, 7  ;;  %v186_v9 = vld [vmem:[%s2826_s5] sm:$0x1]  ;;  %v113_v10 = vunpack.c.l.bf16 %v112_v7  ;;  %v2369_v33 = vmov 1983009808   ;;  %v2371_v40 = vmov 0  }
  0x2c   :  { %v187_v12 = vunpack.c.l.bf16 %v186_v9  ;;  %v2217_v32 = vld [vmem:[%s2824_s3] sm:$0xff]   ;;  %v328_v34 = vunpack.c.l.s4 %v2369_v33  ;;  %v2370_v36 = vmov 1934713408   ;;  %v2548_v41 = vpack.i.b16 %v2371_v40, %v2371_v40 }
  0x2d   :  { %v2526_v11 = vsub.s32 0, %v115_v8  ;;  %v343_v37 = vunpack.c.l.s4 %v2370_v36  ;;  %vm968_vm2 = vcmask 130048   ;;  %vm1153_vm3 = vcmask 64512  }
  0x2e   :  { %v329_v35 = vunpack.c.0.s8 %v328_v34  ;;  %vm1202_vm4 = vcmask 60416   ;;  %vm1210_vm5 = vcmask 1043456   ;;  %vm1892_vm6 = vcmask 523264  }
  0x2f   :  { %v2211_v1 = vld [vmem:[%s2846_s0 + $0x8] sm:$0xff]   ;;  %v2213_v3 = vld [vmem:[%s2846_s0] sm:$0xff]   ;;  %v117_v13 = vrot.slane %v113_v10, %v2526_v11  ;;  %v191_v15 = vrot.slane %v187_v12, %v2526_v11  ;;  %v344_v39 = vunpack.c.0.s8 %v343_v37 }
  0x30   :  { %v2212_v2 = vld [vmem:[%s2847_s21 + $0x8] sm:$0xff]   ;;  %2106 = vmatpush3.bf16.msra.mxu1 %v2211_v1  ;;  %v2214_v4 = vld [vmem:[%s2847_s21] sm:$0xff]   ;;  %v2544_v38 = vsub.s32 %v329_v35, %v115_v8 }
  0x31   :  { %2098 = vmatpush3.bf16.msra.mxu0 %v2212_v2  ;;  %2107 = vmatprep.subr.bf16.mxu1 %v2366_v0  ;;  %v2550_v46 = vsub.s32 %v344_v39, %v115_v8 }
  0x32   :  { %2099 = vmatprep.subr.bf16.mxu0 %v2366_v0 }
  0x34   :  { %2108 = vmatpush3.bf16.msra.mxu1 %v2213_v3 }
  0x35   :  { %2100 = vmatpush3.bf16.msra.mxu0 %v2214_v4  ;;  %2121 = vmatprep.subr.bf16.mxu1 %v2366_v0 }
  0x36   :  { %2113 = vmatprep.subr.bf16.mxu0 %v2366_v0 }
  0x37   :  { %2110 = vmatmul.mubr.msk.bf16.vlgmr.msra.gmra.mxu1 %vm135_vm1, %v2508_v5 }
  0x38   :  { %2102 = vmatmul.mubr.msk.bf16.vlgmr.msra.gmra.mxu0 %vm135_vm1, %v2508_v5  ;;  %2123 = vmatprep.mubr.msk.bf16.mxu1 %vm2367_vm0, %v2366_v0 }
  0x39   :  { %2117 = vmatprep.mubr.msk.bf16.mxu0 %vm2367_vm0, %v2366_v0  ;;  %2114 = vmatpush3.bf16.msra.mxu0 %v2216_v31 }
  0x3a   :  { %2115 = vmatprep.subr.bf16.mxu0 %v2366_v0 }
  0x3d   :  { %2116 = vmatpush3.bf16.msra.mxu0 %v2217_v32 }
  0x3e   :  { %2127 = vmatprep.subr.bf16.mxu0 %v2366_v0 }
  0x40   :  { %2118 = vmatmul.mubr.msk.bf16.vlgmr.msra.gmra.mxu0 %vm135_vm1, %v2508_v5 }
  0x41   :  { %2129 = vmatprep.mubr.msk.bf16.mxu0 %vm2367_vm0, %v2366_v0 }
  0xf7   :  { %v238_v14 = vpop.f32.mrf.mxu1 }
  0xf8   :  { %v173_v16 = vpop.f32.mrf.mxu0  ;;  %v239_v21 = vadd.f32 %v238_v14, %v191_v15 }
  0xf9   :  { %v174_v17 = vadd.f32 %v173_v16, %v117_v13  ;;  %v2111_v18 = vpop.f32.mrf.mxu1 }
  0xfa   :  { %v2103_v19 = vpop.f32.mrf.mxu0 }
  0xfb   :  { %v241_v20 = vpop.f32.mrf.mxu1  ;;  %v180_v24 = vmul.f32 0.25, %v174_v17 }
  0xfc   :  { %v242_v22 = vadd.f32 %v241_v20, %v191_v15  ;;  %v176_v23 = vpop.f32.mrf.mxu0 }
  0xfd   :  { %v177_v25 = vadd.f32 %v176_v23, %v117_v13  ;;  %v2112_v26 = vpop.f32.mrf.mxu1 }
  0xfe   :  { %v532_v27 = vpack.c.bf16 %v242_v22, %v239_v21  ;;  %v2104_v28 = vpop.f32.mrf.mxu0 }
  0xff   :  { %v181_v29 = vmul.f32 0.25, %v177_v25 }
 0x100   :  { %534 = vrot.lane.b32.xlu0 %v532_v27, %s2368_s4  ;;  %v540_v44 = vshrl.u32 %v532_v27, 16 }
 0x101   :  { %v308_v30 = vpack.c.bf16 %v181_v29, %v180_v24 }
 0x103   :  { %v316_v56 = vshrl.u32 %v308_v30, 16 }
 0x104   :  { %310 = vrot.lane.b32.xlu0 %v308_v30, %s2368_s4 }
 0x172   :  { %v535_v42 = vpop.permute.xlu0 %534 }
 0x173   :  { %v538_v43 = vpack.i.b16 %v535_v42, %v532_v27  ;;  %v541_v45 = vshrl.u32 %v535_v42, 16 }
 0x175   :  { %v542_v47 = vpack.i.b16 %v541_v45, %v540_v44  ;;  %v544_v48 = vcombine.high %v538_v43, %v2548_v41  ;;  %v551_v49 = vrot.slane %v538_v43, %v2544_v38 }
 0x176   :  { %v311_v50 = vpop.permute.xlu0 %310 }
 0x177   :  { %v558_v51 = vrot.slane %v544_v48, %v2544_v38  ;;  %v559_v52 = vcombine.high %v551_v49, %v2371_v40  ;;  %v593_v53 = vcombine.high %v542_v47, %v2548_v41  ;;  %v600_v54 = vrot.slane %v542_v47, %v2544_v38 }
 0x178   :  { %v314_v55 = vpack.i.b16 %v311_v50, %v308_v30  ;;  %v317_v57 = vshrl.u32 %v311_v50, 16  ;;  %v566_v58 = vrot.slane %v551_v49, %v2550_v46 }
 0x179   :  { %v573_v59 = vrot.slane %v559_v52, %v2550_v46  ;;  %v574_v60 = vcombine.high %v558_v51, %v2371_v40  ;;  %v607_v61 = vrot.slane %v593_v53, %v2544_v38  ;;  %v608_v62 = vcombine.high %v600_v54, %v2371_v40 }
 0x17a   :  { %v615_v63 = vrot.slane %v600_v54, %v2550_v46  ;;  %v326_v1 = vcombine.high %v314_v55, %v2548_v41  ;;  %v318_v6 = vpack.i.b16 %v317_v57, %v316_v56  ;;  %v333_v9 = vrot.slane %v314_v55, %v2544_v38 }
 0x17b   :  { %v588_v2 = vrot.slane %v574_v60, %v2550_v46  ;;  %v623_v3 = vcombine.high %v607_v61, %v2371_v40  ;;  %v642_v4 = vcombine.low %v566_v58, %v573_v59  ;;  %v622_v7 = vrot.slane %v608_v62, %v2550_v46 }
 0x17c   :  { %v2034_v8 = vcombine.high %v566_v58, %v573_v59  ;;  %v340_v10 = vrot.slane %v326_v1, %v2544_v38  ;;  %v581_v12 = vrot.slane %v558_v51, %v2550_v46  ;;  %v341_v17 = vcombine.high %v333_v9, %v2371_v40 }
 0x17d   :  { %v649_v13 = vrot.slane %v642_v4, %v2544_v38  ;;  %v666_v15 = vcombine.low %v615_v63, %v622_v7  ;;  %v2035_v16 = vcombine.high %v615_v63, %v622_v7  ;;  %v630_v18 = vrot.slane %v607_v61, %v2550_v46 }
 0x17e   :  { %v657_v14 = vrot.slane %v2034_v8, %v2544_v38  ;;  %v637_v19 = vrot.slane %v623_v3, %v2550_v46  ;;  %v690_v20 = vcombine.low %v581_v12, %v588_v2  ;;  %v356_v21 = vcombine.high %v340_v10, %v2371_v40 }
 0x17f   :  { %v348_v22 = vrot.slane %v333_v9, %v2550_v46  ;;  %v355_v23 = vrot.slane %v341_v17, %v2550_v46  ;;  %v375_v24 = vcombine.high %v318_v6, %v2548_v41  ;;  %v382_v25 = vrot.slane %v318_v6, %v2544_v38 }
 0x180   :  { %v370_v26 = vrot.slane %v356_v21, %v2550_v46  ;;  %v658_v27 = vcombine.low %v649_v13, %v657_v14  ;;  %v673_v28 = vrot.slane %v666_v15, %v2544_v38  ;;  %v681_v29 = vrot.slane %v2035_v16, %v2544_v38 }
 0x181   :  { %v2036_v30 = vcombine.high %v581_v12, %v588_v2  ;;  %v389_v31 = vrot.slane %v375_v24, %v2544_v38  ;;  %v390_v32 = vcombine.high %v382_v25, %v2371_v40  ;;  %v424_v33 = vcombine.low %v348_v22, %v355_v23 }
 0x182   :  { %v714_v34 = vcombine.low %v630_v18, %v637_v19  ;;  %v2037_v35 = vcombine.high %v630_v18, %v637_v19  ;;  %v363_v36 = vrot.slane %v340_v10, %v2550_v46  ;;  %v2030_v37 = vcombine.high %v348_v22, %v355_v23 }
 0x183   :  { %v397_v39 = vrot.slane %v382_v25, %v2550_v46  ;;  %v404_v42 = vrot.slane %v390_v32, %v2550_v46  ;;  %v405_v43 = vcombine.high %v389_v31, %v2371_v40  ;;  %v431_v44 = vrot.slane %v424_v33, %v2544_v38 }
 0x184   :  { %v439_v45 = vrot.slane %v2030_v37, %v2544_v38  ;;  %v472_v47 = vcombine.low %v363_v36, %v370_v26  ;;  %v665_v48 = vrot.slane %v658_v27, %v2550_v46  ;;  %v682_v49 = vcombine.low %v673_v28, %v681_v29 }
 0x185   :  { %v412_v50 = vrot.slane %v389_v31, %v2550_v46  ;;  %v419_v51 = vrot.slane %v405_v43, %v2550_v46  ;;  %v448_v52 = vcombine.low %v397_v39, %v404_v42  ;;  %v2031_v53 = vcombine.high %v397_v39, %v404_v42  ;;  %v249_v42 = vld [vmem:[%s2827_s6] sm:$0x1]  ;;  %s2372_s6 = smov 16  }
 0x186   :  { %v440_v54 = vcombine.low %v431_v44, %v439_v45  ;;  %v2032_v55 = vcombine.high %v363_v36, %v370_v26  ;;  %v689_v56 = vrot.slane %v682_v49, %v2550_v46  ;;  %v697_v57 = vrot.slane %v690_v20, %v2544_v38  ;;  %v301_v45 = vpop.f32.mrf.mxu0 }
 0x187   :  { %v455_v58 = vrot.slane %v448_v52, %v2544_v38  ;;  %v463_v59 = vrot.slane %v2031_v53, %v2544_v38  ;;  %v496_v60 = vcombine.low %v412_v50, %v419_v51  ;;  %v2033_v61 = vcombine.high %v412_v50, %v419_v51 }
 0x188   :  { %v740_v62 = vpack.i.b16 %v689_v56, %v665_v48  ;;  %v741_v63 = vshrl.u32 %v665_v48, 16  ;;  %v742_v1 = vshrl.u32 %v689_v56, 16  ;;  %v705_v2 = vrot.slane %v2036_v30, %v2544_v38 }
 0x189   :  { %v464_v3 = vcombine.low %v455_v58, %v463_v59  ;;  %v503_v4 = vrot.slane %v496_v60, %v2544_v38  ;;  %v511_v6 = vrot.slane %v2033_v61, %v2544_v38  ;;  %v721_v7 = vrot.slane %v714_v34, %v2544_v38 }
 0x18a   :  { %v973_v8 = vsel %vm968_vm2, %v740_v62, 0  ;;  %v743_v9 = vpack.i.b16 %v742_v1, %v741_v63  ;;  %v706_v10 = vcombine.low %v697_v57, %v705_v2  ;;  %v729_v12 = vrot.slane %v2037_v35, %v2544_v38 }
 0x18b   :  { %v447_v13 = vrot.slane %v440_v54, %v2550_v46  ;;  %v479_v14 = vrot.slane %v472_v47, %v2544_v38  ;;  %v487_v15 = vrot.slane %v2032_v55, %v2544_v38  ;;  %2122 = vmatpush3.bf16.xpose.msra.mxu1 %v973_v8  ;;  %v471_v16 = vrot.slane %v464_v3, %v2550_v46  ;;  %v2119_v47 = vpop.f32.mrf.mxu0 }
 0x18c   :  { %v1019_v17 = vsel %vm968_vm2, %v743_v9, 0  ;;  %2133 = vmatprep.subr.bf16.mxu1 %v2366_v0  ;;  %v713_v18 = vrot.slane %v706_v10, %v2550_v46  ;;  %v730_v19 = vcombine.low %v721_v7, %v729_v12  ;;  %v512_v20 = vcombine.low %v503_v4, %v511_v6 }
 0x18d   :  { %2128 = vmatpush3.bf16.xpose.msra.mxu0 %v1019_v17  ;;  %v524_v22 = vshrl.u32 %v471_v16, 16  ;;  %v488_v23 = vcombine.low %v479_v14, %v487_v15  ;;  %v523_v24 = vshrl.u32 %v447_v13, 16  ;;  %v522_v25 = vpack.i.b16 %v471_v16, %v447_v13  ;;  %v304_v49 = vpop.f32.mrf.mxu0 }
 0x18e   :  { %v737_v21 = vrot.slane %v730_v19, %v2550_v46  ;;  %2139 = vmatprep.subr.bf16.mxu0 %v2366_v0  ;;  %v747_v27 = vshrl.u32 %v713_v18, 16  ;;  %v519_v32 = vrot.slane %v512_v20, %v2550_v46  ;;  %v250_v43 = vunpack.c.l.bf16 %v249_v42 }
 0x18f   :  { %v525_v30 = vpack.i.b16 %v524_v22, %v523_v24  ;;  %v495_v34 = vrot.slane %v488_v23, %v2550_v46  ;;  %v2120_v51 = vpop.f32.mrf.mxu0 }
 0x190   :  { %v746_v26 = vpack.i.b16 %v737_v21, %v713_v18  ;;  %v748_v28 = vshrl.u32 %v737_v21, 16  ;;  %v530_v35 = vshrl.u32 %v519_v32, 16  ;;  %v254_v44 = vrot.slane %v250_v43, %v2526_v11 }
 0x191   :  { %v528_v36 = vpack.i.b16 %v519_v32, %v495_v34  ;;  %v529_v37 = vshrl.u32 %v495_v34, 16 }
 0x192   :  { %2124 = vmatmul.mubr.msk.bf16.vlgmr.msra.gmra.mxu1 %vm968_vm2, %v522_v25  ;;  %v1065_v29 = vsel %vm968_vm2, %v746_v26, 0  ;;  %v749_v31 = vpack.i.b16 %v748_v28, %v747_v27  ;;  %v302_v48 = vadd.f32 %v301_v45, %v254_v44  ;;  %v305_v50 = vadd.f32 %v304_v49, %v254_v44 }
 0x193   :  { %2134 = vmatpush3.bf16.xpose.msra.mxu1 %v1065_v29  ;;  %2135 = vmatprep.mubr.msk.bf16.mxu1 %vm2367_vm0, %v2366_v0  ;;  %v531_v39 = vpack.i.b16 %v530_v35, %v529_v37 }
 0x194   :  { %2130 = vmatmul.mubr.msk.bf16.vlgmr.msra.gmra.mxu0 %vm968_vm2, %v525_v30  ;;  %v1111_v33 = vsel %vm968_vm2, %v749_v31, 0  ;;  %2145 = vmatprep.subr.bf16.mxu1 %v2366_v0  ;;  %v2636_v52 = vpack.c.bf16 %v305_v50, %v302_v48 }
 0x195   :  { %2140 = vmatpush3.bf16.xpose.msra.mxu0 %v1111_v33  ;;  %2141 = vmatprep.mubr.msk.bf16.mxu0 %vm2367_vm0, %v2366_v0 }
 0x196   :  { %2151 = vmatprep.subr.bf16.mxu0 %v2366_v0  ;;  %v758_v35 = vshrl.u32 %v2636_v52, 16 }
 0x19a   :  { %2136 = vmatmul.mubr.msk.bf16.vlgmr.msra.gmra.mxu1 %vm968_vm2, %v528_v36 }
 0x19b   :  { %2147 = vmatprep.mubr.msk.bf16.mxu1 %vm2367_vm0, %v2366_v0 }
 0x19c   :  { %2142 = vmatmul.mubr.msk.bf16.vlgmr.msra.gmra.mxu0 %vm968_vm2, %v531_v39 }
 0x19d   :  { %2153 = vmatprep.mubr.msk.bf16.mxu0 %vm2367_vm0, %v2366_v0 }
 0x252   :  { %v1009_v53 = vpop.f32.mrf.mxu1 }
 0x253   :  { %v1154_v54 = vsel %vm1153_vm3, %v1009_v53, -inf }
 0x254   :  { %1155 = vmax.xlane.f32.xlu1 %v1154_v54  ;;  %v2125_v55 = vpop.f32.mrf.mxu1  ;;  %v1055_v56 = vpop.f32.mrf.mxu0 }
 0x255   :  { %v1157_v59 = vsel %vm1153_vm3, %v1055_v56, -inf }
 0x256   :  { %v1012_v57 = vpop.f32.mrf.mxu1  ;;  %v2131_v58 = vpop.f32.mrf.mxu0 }
 0x258   :  { %v2126_v60 = vpop.f32.mrf.mxu1  ;;  %1158 = vmax.xlane.f32.xlu1 %v1157_v59  ;;  %v1058_v61 = vpop.f32.mrf.mxu0 }
 0x25a   :  { %v2132_v62 = vpop.f32.mrf.mxu0  ;;  %v1101_v63 = vpop.f32.mrf.mxu1 }
 0x25b   :  { %v1160_v1 = vsel %vm1153_vm3, %v1101_v63, -inf }
 0x25c   :  { %1161 = vmax.xlane.f32.xlu0 %v1160_v1  ;;  %v2137_v2 = vpop.f32.mrf.mxu1  ;;  %v1147_v3 = vpop.f32.mrf.mxu0 }
 0x25d   :  { %v1163_v4 = vsel %vm1153_vm3, %v1147_v3, -inf }
 0x25e   :  { %v1104_v6 = vpop.f32.mrf.mxu1  ;;  %1164 = vmax.xlane.f32.xlu1 %v1163_v4  ;;  %v2143_v7 = vpop.f32.mrf.mxu0 }
 0x260   :  { %v2138_v8 = vpop.f32.mrf.mxu1  ;;  %v1150_v9 = vpop.f32.mrf.mxu0 }
 0x262   :  { %v2144_v10 = vpop.f32.mrf.mxu0 }
 0x2dd   :  { %v1156_v12 = vpop.xlane.xlu1 %1155 }
 0x2de   :  { %v1166_v13 = vsub.f32 %v1009_v53, %v1156_v12 }
 0x2e0   :  { %v1170_v14 = vmul.f32 1.442695, %v1166_v13 }
 0x2e1   :  { %v1159_v15 = vpop.xlane.xlu1 %1158 }
 0x2e2   :  { %2227 = vpow2.f32 %v1170_v14  ;;  %v1167_v16 = vsub.f32 %v1055_v56, %v1159_v15 }
 0x2e4   :  { %v1172_v17 = vmul.f32 1.442695, %v1167_v16 }
 0x2e5   :  { %v1162_v27 = vpop.xlane.xlu0 %1161 }
 0x2e6   :  { %2229 = vpow2.f32 %v1172_v17  ;;  %v1168_v28 = vsub.f32 %v1101_v63, %v1162_v27 }
 0x2e7   :  { %v1165_v18 = vpop.xlane.xlu1 %1164 }
 0x2e8   :  { %v1169_v19 = vsub.f32 %v1147_v3, %v1165_v18  ;;  %v1174_v29 = vmul.f32 1.442695, %v1168_v28 }
 0x2ea   :  { %v1176_v20 = vmul.f32 1.442695, %v1169_v19 }
 0x2ec   :  { %2231 = vpow2.f32 %v1176_v20 }
 0x2ed   :  { %2233 = vpow2.f32 %v1174_v29 }
 0x2ef   :  { %v2228_v21 = vpop.eup %2227 }
 0x2f0   :  { %v1178_v22 = vsel %vm1153_vm3, %v2228_v21, 0.0 }
 0x2f1   :  { %1179 = vadd.xlane.f32.xlu1 %v1178_v22 }
 0x2f3   :  { %v2230_v23 = vpop.eup %2229 }
 0x2f4   :  { %v1181_v24 = vsel %vm1153_vm3, %v2230_v23, 0.0 }
 0x2f5   :  { %1182 = vadd.xlane.f32.xlu1 %v1181_v24 }
 0x2f9   :  { %v2644_v25 = vpop.eup %2231 }
 0x2fa   :  { %v1187_v26 = vsel %vm1153_vm3, %v2644_v25, 0.0  ;;  %v2650_v30 = vpop.eup %2233 }
 0x2fb   :  { %1188 = vadd.xlane.f32.xlu0 %v1187_v26  ;;  %v1184_v31 = vsel %vm1153_vm3, %v2650_v30, 0.0 }
 0x306   :  { %752 = vrot.lane.b32.xlu1 %v2636_v52, %s2368_s4 }
 0x32a   :  { %1185 = vadd.xlane.f32.xlu1 %v1184_v31 }
 0x37a   :  { %v1180_v32 = vpop.xlane.xlu1 %1179 }
 0x37b   :  { %2235 = vrcp.f32 %v1180_v32 }
 0x37e   :  { %v1183_v33 = vpop.xlane.xlu1 %1182 }
 0x37f   :  { %2237 = vrcp.f32 %v1183_v33 }
 0x382   :  { %v753_v34 = vpop.permute.xlu1 %752 }
 0x383   :  { %v756_v36 = vpack.i.b16 %v753_v34, %v2636_v52  ;;  %v759_v37 = vshrl.u32 %v753_v34, 16 }
 0x384   :  { %v1189_v39 = vpop.xlane.xlu0 %1188 }
 0x385   :  { %v760_v42 = vpack.i.b16 %v759_v37, %v758_v35  ;;  %v762_v43 = vcombine.high %v756_v36, %v2548_v41  ;;  %v769_v44 = vrot.slane %v756_v36, %v2544_v38  ;;  %2239 = vrcp.f32 %v1189_v39 }
 0x387   :  { %v776_v45 = vrot.slane %v762_v43, %v2544_v38  ;;  %v777_v47 = vcombine.high %v769_v44, %v2371_v40  ;;  %v811_v48 = vcombine.high %v760_v42, %v2548_v41  ;;  %v818_v50 = vrot.slane %v760_v42, %v2544_v38 }
 0x388   :  { %v2236_v49 = vpop.eup %2235  ;;  %v784_v51 = vrot.slane %v769_v44, %v2550_v46 }
 0x389   :  { %v791_v52 = vrot.slane %v777_v47, %v2550_v46  ;;  %v792_v53 = vcombine.high %v776_v45, %v2371_v40  ;;  %v825_v54 = vrot.slane %v811_v48, %v2544_v38  ;;  %v799_v55 = vrot.slane %v776_v45, %v2550_v46 }
 0x38a   :  { %v826_v56 = vcombine.high %v818_v50, %v2371_v40  ;;  %v1194_v57 = vmul.f32 %v2236_v49, %v2228_v21  ;;  %v833_v41 = vrot.slane %v818_v50, %v2550_v46 }
 0x38b   :  { %v806_v58 = vrot.slane %v792_v53, %v2550_v46  ;;  %v841_v59 = vcombine.high %v825_v54, %v2371_v40  ;;  %v860_v60 = vcombine.low %v784_v51, %v791_v52  ;;  %v848_v63 = vrot.slane %v825_v54, %v2550_v46  ;;  %v2218_v54 = vld [vmem:[#allocation5 + $0x8] sm:$0xff]  }
 0x38c   :  { %v2238_v61 = vpop.eup %2237  ;;  %v840_v62 = vrot.slane %v826_v56, %v2550_v46  ;;  %v2038_v1 = vcombine.high %v784_v51, %v791_v52  ;;  %v1198_v2 = vpack.c.bf16 %v1194_v57, %v1194_v57 }
 0x38d   :  { %v855_v3 = vrot.slane %v841_v59, %v2550_v46  ;;  %v867_v4 = vrot.slane %v860_v60, %v2544_v38  ;;  %v908_v6 = vcombine.low %v799_v55, %v806_v58  ;;  %v2040_v7 = vcombine.high %v799_v55, %v806_v58  ;;  %v2219_v55 = vld [vmem:[#allocation5] sm:$0xff]  }
 0x38e   :  { %v875_v8 = vrot.slane %v2038_v1, %v2544_v38  ;;  %v884_v9 = vcombine.low %v833_v41, %v840_v62  ;;  %v2039_v10 = vcombine.high %v833_v41, %v840_v62  ;;  %v1195_v12 = vmul.f32 %v2238_v61, %v2230_v23  ;;  %1203 = vst.msk [vmem:[#allocation9] sm:$0xf] %vm1202_vm4, %v1198_v2 }
 0x38f   :  { %v932_v13 = vcombine.low %v848_v63, %v855_v3  ;;  %v2041_v14 = vcombine.high %v848_v63, %v855_v3  ;;  %v915_v15 = vrot.slane %v908_v6, %v2544_v38  ;;  %v923_v16 = vrot.slane %v2040_v7, %v2544_v38 }
 0x390   :  { %v876_v17 = vcombine.low %v867_v4, %v875_v8  ;;  %v891_v18 = vrot.slane %v884_v9, %v2544_v38  ;;  %v899_v19 = vrot.slane %v2039_v10, %v2544_v38  ;;  %v1199_v20 = vpack.c.bf16 %v1195_v12, %v1195_v12 }
 0x391   :  { %v924_v21 = vcombine.low %v915_v15, %v923_v16  ;;  %v939_v22 = vrot.slane %v932_v13, %v2544_v38  ;;  %v947_v24 = vrot.slane %v2041_v14, %v2544_v38 }
 0x392   :  { %v2240_v23 = vpop.eup %2239  ;;  %v883_v26 = vrot.slane %v876_v17, %v2550_v46  ;;  %v900_v27 = vcombine.low %v891_v18, %v899_v19  ;;  %1204 = vst.msk [vmem:[#allocation9 + $0x4] sm:$0xf] %vm1202_vm4, %v1199_v20 }
 0x393   :  { %v948_v28 = vcombine.low %v939_v22, %v947_v24  ;;  %v1197_v29 = vmul.f32 %v2240_v23, %v2644_v25  ;;  %v931_v32 = vrot.slane %v924_v21, %v2550_v46 }
 0x394   :  { %v907_v31 = vrot.slane %v900_v27, %v2550_v46  ;;  %v959_v36 = vshrl.u32 %v883_v26, 16 }
 0x395   :  { %v955_v33 = vrot.slane %v948_v28, %v2550_v46  ;;  %v1201_v34 = vpack.c.bf16 %v1197_v29, %v1197_v29  ;;  %v965_v45 = vshrl.u32 %v931_v32, 16 }
 0x396   :  { %v958_v35 = vpack.i.b16 %v907_v31, %v883_v26  ;;  %v960_v37 = vshrl.u32 %v907_v31, 16 }
 0x397   :  { %v966_v39 = vshrl.u32 %v955_v33, 16  ;;  %1206 = vst.msk [vmem:[#allocation9 + $0xc] sm:$0xf] %vm1202_vm4, %v1201_v34  ;;  %v964_v44 = vpack.i.b16 %v955_v33, %v931_v32 }
 0x398   :  { %v1212_v42 = vsel %vm1210_vm5, %v958_v35, 0  ;;  %v961_v43 = vpack.i.b16 %v960_v37, %v959_v36 }
 0x399   :  { %2146 = vmatpush3.bf16.msra.mxu1 %v1212_v42  ;;  %v967_v47 = vpack.i.b16 %v966_v39, %v965_v45  ;;  %v1304_v48 = vsel %vm1210_vm5, %v964_v44, 0 }
 0x39a   :  { %v1258_v25 = vsel %vm1210_vm5, %v961_v43, 0  ;;  %2157 = vmatprep.subr.bf16.mxu1 %v2366_v0 }
 0x39b   :  { %2152 = vmatpush3.bf16.msra.mxu0 %v1258_v25  ;;  %v1350_v49 = vsel %vm1210_vm5, %v967_v47, 0 }
 0x39c   :  { %2148 = vmatmul.mubr.msk.bf16.vlgmr.msra.gmra.mxu1 %vm1153_vm3, %v1198_v2  ;;  %2163 = vmatprep.subr.bf16.mxu0 %v2366_v0 }
 0x39d   :  { %2158 = vmatpush3.bf16.msra.mxu1 %v1304_v48  ;;  %2159 = vmatprep.mubr.msk.bf16.mxu1 %vm2367_vm0, %v2366_v0 }
 0x39e   :  { %2154 = vmatmul.mubr.msk.bf16.vlgmr.msra.gmra.mxu0 %vm1153_vm3, %v1199_v20  ;;  %2169 = vmatprep.subr.bf16.mxu1 %v2366_v0 }
 0x39f   :  { %2164 = vmatpush3.bf16.msra.mxu0 %v1350_v49  ;;  %2165 = vmatprep.mubr.msk.bf16.mxu0 %vm2367_vm0, %v2366_v0 }
 0x3a0   :  { %2177 = vmatprep.subr.bf16.mxu0 %v2366_v0 }
 0x3a6   :  { %2166 = vmatmul.mubr.msk.bf16.vlgmr.msra.gmra.mxu0 %vm1153_vm3, %v1201_v34 }
 0x3a7   :  { %2181 = vmatprep.mubr.msk.bf16.mxu0 %vm2367_vm0, %v2366_v0 }
 0x3b3   :  { %v1186_v50 = vpop.xlane.xlu1 %1185 }
 0x3b4   :  { %2241 = vrcp.f32 %v1186_v50 }
 0x3c1   :  { %v2242_v51 = vpop.eup %2241 }
 0x3c2   :  { %v1196_v52 = vmul.f32 %v2242_v51, %v2650_v30 }
 0x3c4   :  { %v1200_v53 = vpack.c.bf16 %v1196_v52, %v1196_v52 }
 0x3c6   :  { %2160 = vmatmul.mubr.msk.bf16.vlgmr.msra.gmra.mxu1 %vm1153_vm3, %v1200_v53  ;;  %1205 = vst.msk [vmem:[#allocation9 + $0x8] sm:$0xf] %vm1202_vm4, %v1200_v53 }
 0x3c7   :  { %2173 = vmatprep.mubr.msk.bf16.mxu1 %vm2367_vm0, %v2366_v0  ;;  %2170 = vmatpush3.bf16.msra.mxu1 %v2218_v54 }
 0x3c8   :  { %2171 = vmatprep.subr.bf16.mxu1 %v2366_v0 }
 0x3cb   :  { %2172 = vmatpush3.bf16.msra.mxu1 %v2219_v55 }
 0x3cc   :  { %2185 = vmatprep.subr.bf16.mxu1 %v2366_v0 }
 0x45c   :  { %v1248_v56 = vpop.f32.mrf.mxu1 }
 0x45d   :  { %v1392_v4 = vpack.c.bf16 %v1248_v56, %v1248_v56 }
 0x45e   :  { %v2149_v57 = vpop.f32.mrf.mxu1  ;;  %v1294_v58 = vpop.f32.mrf.mxu0 }
 0x45f   :  { %v1417_v3 = vpack.c.bf16 %v1294_v58, %v1294_v58  ;;  %v1399_v7 = vrot.slane %v1392_v4, %v2544_v38 }
 0x460   :  { %v1251_v30 = vpop.f32.mrf.mxu1  ;;  %v2155_v41 = vpop.f32.mrf.mxu0 }
 0x461   :  { %v1424_v6 = vrot.slane %v1417_v3, %v2544_v38  ;;  %v1400_v9 = vcombine.high %v1399_v7, %v2371_v40  ;;  %v1407_v16 = vrot.slane %v1399_v7, %v2550_v46 }
 0x462   :  { %v2150_v59 = vpop.f32.mrf.mxu1  ;;  %v1297_v60 = vpop.f32.mrf.mxu0 }
 0x463   :  { %v1425_v8 = vcombine.high %v1424_v6, %v2371_v40  ;;  %v1414_v13 = vrot.slane %v1400_v9, %v2550_v46  ;;  %v1432_v14 = vrot.slane %v1424_v6, %v2550_v46  ;;  %v1415_v21 = vcombine.high %v1407_v16, %v2371_v40 }
 0x464   :  { %v2156_v61 = vpop.f32.mrf.mxu0  ;;  %v1496_v36 = vshrl.u32 %v1407_v16, 16 }
 0x465   :  { %v1439_v12 = vrot.slane %v1425_v8, %v2550_v46  ;;  %v1416_v18 = vcombine.high %v1414_v13, %v2371_v40  ;;  %v1440_v19 = vcombine.high %v1432_v14, %v2371_v40  ;;  %v1512_v27 = vshrl.u32 %v1414_v13, 16 }
 0x466   :  { %v1386_v62 = vpop.f32.mrf.mxu0  ;;  %v1497_v32 = vshrl.u32 %v1432_v14, 16  ;;  %v1504_v43 = vshrl.u32 %v1415_v21, 16  ;;  %v1494_v48 = vpack.i.b16 %v1432_v14, %v1407_v16 }
 0x467   :  { %v1467_v10 = vpack.c.bf16 %v1386_v62, %v1386_v62  ;;  %v1441_v17 = vcombine.high %v1439_v12, %v2371_v40  ;;  %v1513_v22 = vshrl.u32 %v1439_v12, 16  ;;  %v1520_v31 = vshrl.u32 %v1416_v18, 16 }
 0x468   :  { %v2167_v63 = vpop.f32.mrf.mxu0  ;;  %v1502_v33 = vpack.i.b16 %v1440_v19, %v1415_v21  ;;  %v1505_v34 = vshrl.u32 %v1440_v19, 16  ;;  %v1510_v37 = vpack.i.b16 %v1439_v12, %v1414_v13  ;;  %v1498_v52 = vpack.i.b16 %v1497_v32, %v1496_v36 }
 0x469   :  { %v1474_v15 = vrot.slane %v1467_v10, %v2544_v38  ;;  %v1518_v24 = vpack.i.b16 %v1441_v17, %v1416_v18  ;;  %v1521_v23 = vshrl.u32 %v1441_v17, 16  ;;  %v1514_v44 = vpack.i.b16 %v1513_v22, %v1512_v27 }
 0x46a   :  { %v1389_v1 = vpop.f32.mrf.mxu0  ;;  %v1506_v53 = vpack.i.b16 %v1505_v34, %v1504_v43  ;;  %v1556_v55 = vcombine.low %v1494_v48, %v1510_v37  ;;  %v1730_v48 = vunpack.c.l.bf16 %v2508_v5 }
 0x46b   :  { %v1475_v20 = vcombine.high %v1474_v15, %v2371_v40  ;;  %v1482_v28 = vrot.slane %v1474_v15, %v2550_v46  ;;  %v1522_v45 = vpack.i.b16 %v1521_v23, %v1520_v31  ;;  %v1564_v25 = vcombine.low %v1502_v33, %v1518_v24 }
 0x46c   :  { %v2168_v2 = vpop.f32.mrf.mxu0  ;;  %v1605_v30 = vcombine.low %v1498_v52, %v1514_v44  ;;  %v1563_v12 = vrot.slane %v1556_v55, %v2544_v38 }
 0x46d   :  { %v1489_v39 = vrot.slane %v1475_v20, %v2550_v46  ;;  %v1490_v49 = vcombine.high %v1482_v28, %v2371_v40  ;;  %v1613_v41 = vcombine.low %v1506_v53, %v1522_v45  ;;  %v1571_v60 = vrot.slane %v1564_v25, %v2544_v38  ;;  %v1669_v25 = vld [vmem:[%s2829_s8] sm:$0x1] }
 0x46e   :  { %v1529_v61 = vshrl.u32 %v1482_v28, 16  ;;  %v1612_v20 = vrot.slane %v1605_v30, %v2544_v38  ;;  %v1731_v53 = vunpack.c.h.bf16 %v2508_v5 }
 0x46f   :  { %v1491_v56 = vcombine.high %v1489_v39, %v2371_v40  ;;  %v1537_v62 = vshrl.u32 %v1490_v49, 16  ;;  %v1545_v2 = vshrl.u32 %v1489_v39, 16  ;;  %v1620_v19 = vrot.slane %v1613_v41, %v2544_v38 }
 0x470   :  { %v1588_v23 = vcombine.low %v1563_v12, %v1571_v60 }
 0x471   :  { %v1553_v7 = vshrl.u32 %v1491_v56, 16 }
 0x472   :  { %v1595_v31 = vrot.slane %v1588_v23, %v2550_v46 }
 0x486   :  { %v1340_v26 = vpop.f32.mrf.mxu1 }
 0x487   :  { %v1442_v29 = vpack.c.bf16 %v1340_v26, %v1340_v26 }
 0x488   :  { %v2161_v35 = vpop.f32.mrf.mxu1 }
 0x489   :  { %v1449_v42 = vrot.slane %v1442_v29, %v2544_v38  ;;  %v1637_v29 = vcombine.low %v1612_v20, %v1620_v19 }
 0x48a   :  { %v1343_v47 = vpop.f32.mrf.mxu1 }
 0x48b   :  { %v1450_v50 = vcombine.high %v1449_v42, %v2371_v40  ;;  %v1457_v51 = vrot.slane %v1449_v42, %v2550_v46  ;;  %v1644_v35 = vrot.slane %v1637_v29, %v2550_v46  ;;  %v2222_v29 = vld [vmem:[%s2834_s13 + $0x18] sm:$0xff]  }
 0x48c   :  { %v2162_v54 = vpop.f32.mrf.mxu1 }
 0x48d   :  { %v1464_v57 = vrot.slane %v1450_v50, %v2550_v46  ;;  %v1465_v58 = vcombine.high %v1457_v51, %v2371_v40  ;;  %v1528_v59 = vshrl.u32 %v1457_v51, 16  ;;  %v1526_v3 = vpack.i.b16 %v1482_v28, %v1457_v51 }
 0x48f   :  { %v1466_v63 = vcombine.high %v1464_v57, %v2371_v40  ;;  %v1536_v1 = vshrl.u32 %v1465_v58, 16  ;;  %v1542_v4 = vpack.i.b16 %v1489_v39, %v1464_v57  ;;  %v1544_v6 = vshrl.u32 %v1464_v57, 16 }
 0x490   :  { %v1534_v8 = vpack.i.b16 %v1490_v49, %v1465_v58  ;;  %v1530_v13 = vpack.i.b16 %v1529_v61, %v1528_v59 }
 0x491   :  { %v1550_v9 = vpack.i.b16 %v1491_v56, %v1466_v63  ;;  %v1552_v10 = vshrl.u32 %v1466_v63, 16  ;;  %v1546_v14 = vpack.i.b16 %v1545_v2, %v1544_v6  ;;  %v1572_v15 = vcombine.low %v1526_v3, %v1542_v4  ;;  %v2220_v4 = vld [vmem:[#allocation7 + $0x8] sm:$0xff]   ;;  %v2221_v6 = vld [vmem:[#allocation7] sm:$0xff]  }
 0x492   :  { %v1538_v16 = vpack.i.b16 %v1537_v62, %v1536_v1  ;;  %2178 = vmatpush3.bf16.msra.mxu0 %v2220_v4 }
 0x493   :  { %v1554_v17 = vpack.i.b16 %v1553_v7, %v1552_v10  ;;  %v1580_v18 = vcombine.low %v1534_v8, %v1550_v9  ;;  %v1621_v40 = vcombine.low %v1530_v13, %v1546_v14  ;;  %v1579_v21 = vrot.slane %v1572_v15, %v2544_v38  ;;  %2179 = vmatprep.subr.bf16.mxu0 %v2366_v0  ;;  %v1734_v14 = vld [vmem:[%s2830_s9] sm:$0x1] }
 0x494   :  { %v1735_v15 = vunpack.c.l.bf16 %v1734_v14 }
 0x495   :  { %v1629_v22 = vcombine.low %v1538_v16, %v1554_v17  ;;  %v1587_v24 = vrot.slane %v1580_v18, %v2544_v38  ;;  %v1628_v27 = vrot.slane %v1621_v40, %v2544_v38  ;;  %v1736_v16 = vld [vmem:[%s2831_s10] sm:$0x1] }
 0x496   :  { %2180 = vmatpush3.bf16.msra.mxu0 %v2221_v6  ;;  %v1737_v19 = vunpack.c.l.bf16 %v1736_v16  ;;  %v1768_v40 = vrot.slane %v1735_v15, %v2526_v11 }
 0x497   :  { %v1596_v26 = vcombine.low %v1579_v21, %v1587_v24  ;;  %v1636_v28 = vrot.slane %v1629_v22, %v2544_v38 }
 0x498   :  { %v1774_v24 = vrot.slane %v1737_v19, %v2526_v11 }
 0x499   :  { %v1603_v32 = vrot.slane %v1596_v26, %v2550_v46  ;;  %v1645_v33 = vcombine.low %v1628_v27, %v1636_v28 }
 0x49b   :  { %v1604_v34 = vcombine.low %v1595_v31, %v1603_v32  ;;  %v1652_v36 = vrot.slane %v1645_v33, %v2550_v46  ;;  %v1670_v46 = vunpack.c.l.bf16 %v1669_v25  ;;  %v2223_v31 = vld [vmem:[%s2834_s13 + $0x10] sm:$0xff]   ;;  %v2224_v32 = vld [vmem:[%s2834_s13 + $0x8] sm:$0xff]   ;;  %v2225_v33 = vld [vmem:[%s2834_s13] sm:$0xff]  }
 0x49d   :  { %v1653_v37 = vcombine.low %v1644_v35, %v1652_v36  ;;  %v1657_v39 = vshrl.u32 %v1604_v34, 16  ;;  %v1674_v47 = vrot.slane %v1670_v46, %v2526_v11 }
 0x49f   :  { %v1658_v42 = vshrl.u32 %v1653_v37, 16  ;;  %v1656_v43 = vpack.i.b16 %v1653_v37, %v1604_v34  ;;  %v1782_v34 = vld [vmem:[%s2833_s12] sm:$0x1] }
 0x4a0   :  { %v1783_v35 = vunpack.c.l.bf16 %v1782_v34 }
 0x4a1   :  { %v1659_v44 = vpack.i.b16 %v1658_v42, %v1657_v39 }
 0x4a2   :  { %v1787_v37 = vrot.slane %v1783_v35, %v2526_v11 }
 0x4a3   :  { %1660 = vrot.lane.b32.xlu0 %v1659_v44, %s2372_s6 }
 0x515   :  { %v1661_v45 = vpop.permute.xlu0 %1660 }
 0x516   :  { %v1664_v38 = vsel %vm968_vm2, %v1656_v43, %v1661_v45 }
 0x517   :  { %2174 = vmatmul.mubr.msk.bf16.vlgmr.msra.gmra.mxu1 %vm135_vm1, %v1664_v38 }
 0x518   :  { %2193 = vmatprep.mubr.msk.bf16.mxu1 %vm2367_vm0, %v2366_v0  ;;  %2186 = vmatpush3.bf16.msra.mxu1 %v2222_v29 }
 0x519   :  { %2187 = vmatprep.subr.bf16.mxu1 %v2366_v0 }
 0x51c   :  { %2188 = vmatpush3.bf16.msra.mxu1 %v2223_v31 }
 0x51d   :  { %2189 = vmatprep.subr.bf16.mxu1 %v2366_v0 }
 0x520   :  { %2190 = vmatpush3.bf16.msra.mxu1 %v2224_v32 }
 0x521   :  { %2191 = vmatprep.subr.bf16.mxu1 %v2366_v0 }
 0x524   :  { %2192 = vmatpush3.bf16.msra.mxu1 %v2225_v33 }
 0x5d7   :  { %v1723_v49 = vpop.f32.mrf.mxu1 }
 0x5d8   :  { %v1724_v50 = vadd.f32 %v1723_v49, %v1674_v47 }
 0x5d9   :  { %v2175_v51 = vpop.f32.mrf.mxu1 }
 0x5da   :  { %v1732_v52 = vadd.f32 %v1730_v48, %v1724_v50 }
 0x5db   :  { %v1726_v54 = vpop.f32.mrf.mxu1 }
 0x5dc   :  { %v1727_v55 = vadd.f32 %v1726_v54, %v1674_v47  ;;  %v1738_v56 = vsel %vm135_vm1, %v1732_v52, 0.0 }
 0x5dd   :  { %1739 = vadd.xlane.f32.xlu0 %v1738_v56  ;;  %v2176_v57 = vpop.f32.mrf.mxu1 }
 0x5de   :  { %v1733_v58 = vadd.f32 %v1731_v53, %v1727_v55  ;;  %v1862_v53 = vld [vmem:[%s2835_s14] sm:$0x1]  ;;  %s2373_s14 = smov [#allocation9]  }
 0x5df   :  { %v1863_v54 = vunpack.c.l.bf16 %v1862_v53  ;;  %s2003_s28 = sshll.u32 %s2373_s14, 4  ;;  %s2004_s28 = int_to_ptr.vmem [resolvable:$true] %s2003_s28 }
 0x5e0   :  { %v1741_v30 = vsel %vm135_vm1, %v1733_v58, 0.0  ;;  %s2313_s29 = scalar_lea.vmem %s2004_s28, 256  ;;  %p2318_p2 = scmp.lt.s32.totalorder %s2004_s28, %s2004_s28 }
 0x5e1   :  { %1742 = vadd.xlane.f32.xlu1 %v1741_v30  ;;  %v1867_v55 = vrot.slane %v1863_v54, %v2526_v11  ;;  %p2314_p1 = scmp.ne.s32.totalorder %s2004_s28, %s2313_s29  ;;  %p2319_p3 = scmp.lt.s32.totalorder %s2313_s29, %s2313_s29 }
 0x5e3   :  { %p2320_p4 = por %p2319_p3, %p2318_p2 }
 0x5e5   :  { %p2321_p5 = pnand %p2320_p4, %p2314_p1 }
 0x666   :  { %v1740_v41 = vpop.xlane.xlu0 %1739 }
 0x667   :  { %v1745_v59 = vmul.f32 0.03125, %v1740_v41 }
 0x669   :  { %v1747_v60 = vsub.f32 %v1732_v52, %v1745_v59 }
 0x66a   :  { %v1743_v61 = vpop.xlane.xlu1 %1742 }
 0x66b   :  { %v1746_v62 = vmul.f32 0.03125, %v1743_v61  ;;  %v1749_v63 = vmul.f32 %v1747_v60, %v1747_v60 }
 0x66d   :  { %v1748_v1 = vsub.f32 %v1733_v58, %v1746_v62  ;;  %v1751_v2 = vsel %vm135_vm1, %v1749_v63, 0.0 }
 0x66e   :  { %1752 = vadd.xlane.f32.xlu1 %v1751_v2 }
 0x66f   :  { %v1750_v5 = vmul.f32 %v1748_v1, %v1748_v1 }
 0x671   :  { %v1754_v3 = vsel %vm135_vm1, %v1750_v5, 0.0 }
 0x672   :  { %1755 = vadd.xlane.f32.xlu1 %v1754_v3 }
 0x6f7   :  { %v1753_v7 = vpop.xlane.xlu1 %1752 }
 0x6f8   :  { %v1757_v8 = vmul.f32 0.03125, %v1753_v7 }
 0x6fa   :  { %v1759_v9 = vadd.f32 1e-05, %v1757_v8 }
 0x6fb   :  { %v1756_v10 = vpop.xlane.xlu1 %1755 }
 0x6fc   :  { %2243 = vrsqrt.f32 %v1759_v9  ;;  %v1758_v12 = vmul.f32 0.03125, %v1756_v10 }
 0x6fe   :  { %v1760_v13 = vadd.f32 1e-05, %v1758_v12 }
 0x700   :  { %2245 = vrsqrt.f32 %v1760_v13 }
 0x709   :  { %v2244_v17 = vpop.eup %2243 }
 0x70a   :  { %v1763_v18 = vmul.f32 %v2244_v17, %v1747_v60 }
 0x70c   :  { %v1769_v22 = vmul.f32 %v1768_v40, %v1763_v18 }
 0x70d   :  { %v2246_v20 = vpop.eup %2245 }
 0x70e   :  { %v1764_v21 = vmul.f32 %v2246_v20, %v1748_v1  ;;  %v1775_v26 = vadd.f32 %v1774_v24, %v1769_v22 }
 0x710   :  { %v1770_v23 = vmul.f32 %v1768_v40, %v1764_v21 }
 0x712   :  { %v1776_v27 = vadd.f32 %v1774_v24, %v1770_v23 }
 0x714   :  { %v1777_v28 = vpack.c.bf16 %v1776_v27, %v1775_v26 }
 0x716   :  { %2182 = vmatmul.mubr.msk.bf16.vlgmr.msra.gmra.mxu0 %vm135_vm1, %v1777_v28 }
 0x7d6   :  { %v1837_v36 = vpop.f32.mrf.mxu0 }
 0x7d7   :  { %v1838_v43 = vadd.f32 %v1837_v36, %v1787_v37 }
 0x7d8   :  { %v2183_v39 = vpop.f32.mrf.mxu0 }
 0x7da   :  { %v1840_v42 = vpop.f32.mrf.mxu0 }
 0x7db   :  { %v1841_v44 = vadd.f32 %v1840_v42, %v1787_v37 }
 0x7dc   :  { %v2184_v45 = vpop.f32.mrf.mxu0 }
 0x7dd   :  { %v1844_v38 = vpack.c.bf16 %v1841_v44, %v1838_v43 }
 0x7df   :  { %v1845_v25 = vmul.bf16 %v1844_v38, %v1844_v38 }
 0x7e1   :  { %v1846_v46 = vmul.bf16 %v1845_v25, %v1844_v38 }
 0x7e3   :  { %v1847_v47 = vmul.bf16 1027030327, %v1846_v46 }
 0x7e5   :  { %v1848_v48 = vadd.bf16 %v1847_v47, %v1844_v38 }
 0x7e7   :  { %v1849_v0 = vmul.bf16 1061961548, %v1848_v48 }
 0x7e9   :  { %2247 = vtanh.bf16 %v1849_v0 }
 0x7f7   :  { %v2248_v49 = vpop.eup %2247 }
 0x7f8   :  { %v1851_v50 = vadd.bf16 1065369472, %v2248_v49 }
 0x7fa   :  { %v1852_v51 = vmul.bf16 1056980736, %v1851_v50 }
 0x7fc   :  { %v1853_v52 = vmul.bf16 %v1852_v51, %v1844_v38 }
 0x7fe   :  { %2194 = vmatmul.mubr.msk.bf16.vlgmr.msra.gmra.mxu1 %vm1892_vm6, %v1853_v52 }
 0x8be   :  { %v1930_v56 = vpop.f32.mrf.mxu1 }
 0x8bf   :  { %v1931_v57 = vadd.f32 %v1930_v56, %v1867_v55 }
 0x8c0   :  { %v2195_v58 = vpop.f32.mrf.mxu1 }
 0x8c1   :  { %v1937_v30 = vadd.f32 %v1931_v57, %v1775_v26 }
 0x8c2   :  { %v1933_v41 = vpop.f32.mrf.mxu1 }
 0x8c3   :  { %v1934_v59 = vadd.f32 %v1933_v41, %v1867_v55  ;;  %v1943_v60 = vsel %vm135_vm1, %v1937_v30, 0.0 }
 0x8c4   :  { %1944 = vadd.xlane.f32.xlu1 %v1943_v60  ;;  %v2196_v61 = vpop.f32.mrf.mxu1 }
 0x8c5   :  { %v1938_v62 = vadd.f32 %v1934_v59, %v1776_v27 }
 0x8c7   :  { %v1946_v63 = vsel %vm135_vm1, %v1938_v62, 0.0 }
 0x8c8   :  { %1947 = vadd.xlane.f32.xlu1 %v1946_v63 }
 0x94d   :  { %v1945_v1 = vpop.xlane.xlu1 %1944 }
 0x94e   :  { %v1949_v2 = vmul.f32 0.03125, %v1945_v1 }
 0x950   :  { %v1951_v5 = vsub.f32 %v1937_v30, %v1949_v2 }
 0x951   :  { %v1948_v3 = vpop.xlane.xlu1 %1947 }
 0x952   :  { %v1950_v4 = vmul.f32 0.03125, %v1948_v3  ;;  %v1953_v6 = vmul.f32 %v1951_v5, %v1951_v5 }
 0x954   :  { %v1952_v7 = vsub.f32 %v1938_v62, %v1950_v4  ;;  %v1955_v8 = vsel %vm135_vm1, %v1953_v6, 0.0 }
 0x955   :  { %1956 = vadd.xlane.f32.xlu1 %v1955_v8 }
 0x956   :  { %v1954_v9 = vmul.f32 %v1952_v7, %v1952_v7 }
 0x958   :  { %v1958_v10 = vsel %vm135_vm1, %v1954_v9, 0.0 }
 0x959   :  { %1959 = vadd.xlane.f32.xlu0 %v1958_v10 }
 0x95a   :  { %2324 = shalt.err (!%p2321_p5)
}
 0x95b   :  { %2009 = dma.vmem_to_hbm [thread:$0]  %s2004_s28, 256, %s2839_s18, [#allocation10], %s2363_s19, %s2363_s19, %s2364_s1   ;;  %vm1983_vm7 = vcmask 257024  }
 0x95c   :  { %v1939_v18 = vld [vmem:[%s2836_s15] sm:$0x1]  ;;  %s2374_s15 = smov [#allocation8]  }
 0x95d   :  { %v1941_v19 = vld [vmem:[%s2837_s16] sm:$0x1]  ;;  %v1940_v40 = vunpack.c.l.bf16 %v1939_v18  ;;  %s1991_s18 = sshll.u32 %s2374_s15, 4  ;;  %s1992_s18 = int_to_ptr.vmem [resolvable:$true] %s1991_s18 }
 0x95e   :  { %v1942_v20 = vunpack.c.l.bf16 %v1941_v19  ;;  %s2333_s16 = scalar_lea.vmem %s1992_s18, 128  ;;  %p2338_p7 = scmp.lt.s32.totalorder %s1992_s18, %s1992_s18 }
 0x95f   :  { %v1972_v21 = vrot.slane %v1940_v40, %v2526_v11  ;;  %p2334_p6 = scmp.ne.s32.totalorder %s1992_s18, %s2333_s16  ;;  %p2339_p8 = scmp.lt.s32.totalorder %s2333_s16, %s2333_s16 }
 0x960   :  { %v1978_v23 = vrot.slane %v1942_v20, %v2526_v11 }
 0x961   :  { %p2340_p9 = por %p2339_p8, %p2338_p7 }
 0x963   :  { %p2341_p10 = pnand %p2340_p9, %p2334_p6 }
 0x9de   :  { %v1957_v12 = vpop.xlane.xlu1 %1956 }
 0x9df   :  { %v1961_v13 = vmul.f32 0.03125, %v1957_v12 }
 0x9e1   :  { %v1963_v14 = vadd.f32 1e-05, %v1961_v13 }
 0x9e2   :  { %v1960_v15 = vpop.xlane.xlu0 %1959 }
 0x9e3   :  { %2249 = vrsqrt.f32 %v1963_v14  ;;  %v1962_v16 = vmul.f32 0.03125, %v1960_v15 }
 0x9e5   :  { %v1964_v17 = vadd.f32 1e-05, %v1962_v16 }
 0x9e7   :  { %2251 = vrsqrt.f32 %v1964_v17 }
 0x9f0   :  { %v2250_v22 = vpop.eup %2249 }
 0x9f1   :  { %v1967_v24 = vmul.f32 %v2250_v22, %v1951_v5 }
 0x9f3   :  { %v1973_v26 = vmul.f32 %v1972_v21, %v1967_v24 }
 0x9f4   :  { %v2252_v27 = vpop.eup %2251 }
 0x9f5   :  { %v1968_v28 = vmul.f32 %v2252_v27, %v1952_v7  ;;  %v1979_v29 = vadd.f32 %v1978_v23, %v1973_v26 }
 0x9f7   :  { %v1974_v31 = vmul.f32 %v1972_v21, %v1968_v28  ;;  %v1981_v32 = vpack.c.bf16 %v1979_v29, %v1979_v29 }
 0x9f9   :  { %v1980_v33 = vadd.f32 %v1978_v23, %v1974_v31  ;;  %1984 = vst.msk [vmem:[#allocation8] sm:$0xf] %vm1983_vm7, %v1981_v32 }
 0x9fb   :  { %v1982_v34 = vpack.c.bf16 %v1980_v33, %v1980_v33 }
 0x9fd   :  { %1985 = vst.msk [vmem:[#allocation8 + $0x4] sm:$0xf] %vm1983_vm7, %v1982_v34 }
 0x9fe   :  { %2344 = shalt.err (!%p2341_p10)
}
 0x9ff   :  { %1997 = dma.vmem_to_hbm [thread:$0]  %s1992_s18, 128, %s2838_s17, [#allocation4], %s2363_s19, %s2363_s19, %s2364_s1  }
 0xa00   :  { %2357 = dma.done.wait [#allocation4], 128  }
 0xa01   :  { %2358 = vsyncadd [#allocation4], 4294967168 }
 0xa02   :  { %2359 = dma.done.wait [#allocation10], 256  }
 0xa03   :  { %2360 = vsyncadd [#allocation10], 4294967040 }
 0xa04   :  { %2016 = vsyncpa [#allocation3], 1 }
 0xa05   :  { %2017 = vsyncpa [#allocation6], 1 }
 0xa06   :  { %2018 = vsyncpa [#allocation4], 1 }
 0xa07   :  { %2019 = vsyncpa [#allocation10], 1 }

</bundles_post_ra>
